<compile_context>
chip_gen: v7x
topology: tpu7x:2x2x1
jax: 0.10.0
libtpu: 0.0.40
codegen_flags: <defaults>
</compile_context>

<pallas_src>
import functools

import jax
import jax.numpy as jnp
from jax.experimental import pallas as pl
from jax.experimental.pallas import tpu as pltpu

INPUT_DIM = 20
TIME_DIM = 128
HIDDEN_DIM = 512
PAD_DIM = 128          # lane-aligned padding for the 20-wide input/output

_W_NAMES = ("wt1", "tb1", "tw2", "tb2",
            "w0", "nb0",
            "nw1", "nb1", "nw2", "nb2", "nw3", "nb3", "nw4", "nb4",
            "nw5", "nb5")


def _round_up(n, m):
    return ((n + m - 1) // m) * m


def _default_bf16_act():
    """bf16 SiLU/cast path on v6e/v7x; f32 SiLU math on v5e (no bf16 VPU/EUP)."""
    try:
        kind = jax.devices()[0].device_kind.lower()
    except Exception:
        return True
    return "v5" not in kind


def _silu_to_bf16(z_f32, bf16_act):
    """SiLU via the tanh form of sigmoid; returns bf16 ready for the next matmul."""
    if bf16_act:
        zb = z_f32.astype(jnp.bfloat16)
        # Weak-typed Python scalars keep this in bf16 on the VPU/EUP.
        return zb * (0.5 * (1.0 + jnp.tanh(0.5 * zb)))
    s = z_f32 * (0.5 * (1.0 + jnp.tanh(0.5 * z_f32)))
    return s.astype(jnp.bfloat16)


def _mlp_kernel(x_ref,
                wt1_ref, tb1_ref, tw2_ref, tb2_ref,
                w0_ref, nb0_ref,
                nw1_ref, nb1_ref, nw2_ref, nb2_ref,
                nw3_ref, nb3_ref, nw4_ref, nb4_ref,
                nw5_ref, nb5_ref,
                out_ref, *, bf16_act):
    f32 = jnp.float32
    silu = lambda z: _silu_to_bf16(z, bf16_act)

    # x tile (bf16): lanes 0..19 = x, lane 20 = t, remaining lanes zero.
    xb = x_ref[...]                                                   # (TB, 128)

    # --- time_mlp: Linear(1,128) -> SiLU -> Linear(128,128) -> SiLU ---
    # The 1->128 layer is folded into a padded 128x128 matmul (row 20 = tw1).
    h = silu(jnp.dot(xb, wt1_ref[...], preferred_element_type=f32) + tb1_ref[...])
    h = silu(jnp.dot(h, tw2_ref[...], preferred_element_type=f32) + tb2_ref[...])

    # --- net layer 0: concat([x, t_emb]) @ W0 + b0, as one K=256 matmul ---
    xh = jnp.concatenate([xb, h], axis=-1)                            # (TB, 256) bf16
    z = silu(jnp.dot(xh, w0_ref[...], preferred_element_type=f32) + nb0_ref[...])

    # --- net hidden layers (512 -> 512) x 4, SiLU ---
    z = silu(jnp.dot(z, nw1_ref[...], preferred_element_type=f32) + nb1_ref[...])
    z = silu(jnp.dot(z, nw2_ref[...], preferred_element_type=f32) + nb2_ref[...])
    z = silu(jnp.dot(z, nw3_ref[...], preferred_element_type=f32) + nb3_ref[...])
    z = silu(jnp.dot(z, nw4_ref[...], preferred_element_type=f32) + nb4_ref[...])

    # --- final projection (512 -> 20, padded to 128 lanes) ---
    out_ref[...] = (jnp.dot(z, nw5_ref[...], preferred_element_type=f32)
                    + nb5_ref[...])


def init_params(key, input_dim=INPUT_DIM, time_dim=TIME_DIM, hidden_dim=HIDDEN_DIM):
    """PyTorch-Linear-style init (uniform +-1/sqrt(fan_in)); weights stored (in, out)."""
    def lin(k, fan_in, fan_out):
        kw, kb = jax.random.split(k)
        lim = 1.0 / jnp.sqrt(jnp.float32(fan_in))
        w = jax.random.uniform(kw, (fan_in, fan_out), jnp.float32, -lim, lim)
        b = jax.random.uniform(kb, (1, fan_out), jnp.float32, -lim, lim)
        return w, b

    ks = jax.random.split(key, 8)
    p = {}
    p["tw1"], p["tb1"] = lin(ks[0], 1, time_dim)
    p["tw2"], p["tb2"] = lin(ks[1], time_dim, time_dim)
    p["nw0"], p["nb0"] = lin(ks[2], input_dim + time_dim, hidden_dim)
    p["nw1"], p["nb1"] = lin(ks[3], hidden_dim, hidden_dim)
    p["nw2"], p["nb2"] = lin(ks[4], hidden_dim, hidden_dim)
    p["nw3"], p["nb3"] = lin(ks[5], hidden_dim, hidden_dim)
    p["nw4"], p["nb4"] = lin(ks[6], hidden_dim, hidden_dim)
    p["nw5"], p["nb5"] = lin(ks[7], hidden_dim, input_dim)
    return p


def prepare_params(p):
    """One-time weight preprocessing: padding, layer-0 stacking, bf16 casts."""
    bf16 = jnp.bfloat16
    f32 = jnp.float32
    # Linear(1,128) folded into a (128,128) matmul weight: row 20 holds tw1.
    wt1 = jnp.zeros((PAD_DIM, TIME_DIM), f32).at[INPUT_DIM].set(p["tw1"][0])
    # Layer 0 as one K=256 weight: rows 0..19 = x-part (padded to 128), rows
    # 128..255 = t_emb-part.  Matches concat([xb(128 lanes), h(128 lanes)]).
    wx = jnp.zeros((PAD_DIM, HIDDEN_DIM), f32).at[:INPUT_DIM].set(p["nw0"][:INPUT_DIM])
    w0 = jnp.concatenate([wx, p["nw0"][INPUT_DIM:]], axis=0)          # (256, 512)
    # Final projection padded to 128 output lanes.
    w_out = jnp.zeros((HIDDEN_DIM, PAD_DIM), f32).at[:, :INPUT_DIM].set(p["nw5"])
    b_out = jnp.zeros((1, PAD_DIM), f32).at[:, :INPUT_DIM].set(p["nb5"])

    prepared = {
        "wt1": wt1.astype(bf16), "tb1": p["tb1"].astype(f32),
        "tw2": p["tw2"].astype(bf16), "tb2": p["tb2"].astype(f32),
        "w0": w0.astype(bf16), "nb0": p["nb0"].astype(f32),
        "nw1": p["nw1"].astype(bf16), "nb1": p["nb1"].astype(f32),
        "nw2": p["nw2"].astype(bf16), "nb2": p["nb2"].astype(f32),
        "nw3": p["nw3"].astype(bf16), "nb3": p["nb3"].astype(f32),
        "nw4": p["nw4"].astype(bf16), "nb4": p["nb4"].astype(f32),
        "nw5": w_out.astype(bf16), "nb5": b_out,
    }
    return jax.tree_util.tree_map(jax.block_until_ready, prepared)


def _pick_tile(B, block_b):
    """Sublane-aligned batch tile; keep >=2 grid steps when B is large enough."""
    b8 = _round_up(max(B, 1), 8)
    if B < 16:
        return b8
    half = _round_up((B + 1) // 2, 8)
    return min(block_b, half)


def big_time_conditional_net(x, t, prepared, *, block_b=1024, bf16_act=None):
    """Forward pass.  x: (B, 20), t: (B,).  Returns (B, 20)."""
    if bf16_act is None:
        bf16_act = _default_bf16_act()

    B = x.shape[0]
    TB = _pick_tile(B, block_b)
    Bp = _round_up(B, TB)
    grid = (Bp // TB,)

    # Pad batch + features in bf16; fold t into lane 20 of the padded x tile.
    x_pad = jnp.zeros((Bp, PAD_DIM), jnp.bfloat16)
    x_pad = x_pad.at[:B, :INPUT_DIM].set(x.astype(jnp.bfloat16))
    x_pad = x_pad.at[:B, INPUT_DIM].set(t.reshape(-1).astype(jnp.bfloat16))

    tile_map = lambda i: (i, 0)
    const_map = lambda i: (0, 0)

    operands = [x_pad] + [prepared[k] for k in _W_NAMES]
    in_specs = [pl.BlockSpec((TB, PAD_DIM), tile_map)]
    in_specs += [pl.BlockSpec(prepared[k].shape, const_map) for k in _W_NAMES]
    out_spec = pl.BlockSpec((TB, PAD_DIM), tile_map)

    flops = 2 * Bp * (PAD_DIM * TIME_DIM                  # folded time layer 1
                      + TIME_DIM * TIME_DIM               # time layer 2
                      + (PAD_DIM + TIME_DIM) * HIDDEN_DIM # fused net layer 0
                      + 4 * HIDDEN_DIM * HIDDEN_DIM
                      + HIDDEN_DIM * PAD_DIM)
    weight_bytes = sum(int(prepared[k].size) * int(prepared[k].dtype.itemsize)
                       for k in _W_NAMES)
    cost = pl.CostEstimate(
        flops=int(flops),
        transcendentals=int(Bp * (2 * TIME_DIM + 5 * HIDDEN_DIM)),   # one tanh/SiLU
        bytes_accessed=int(weight_bytes + Bp * PAD_DIM * (2 + 4)),
    )

    kernel = functools.partial(_mlp_kernel, bf16_act=bf16_act)
    out = pl.pallas_call(
        kernel,
        out_shape=jax.ShapeDtypeStruct((Bp, PAD_DIM), jnp.float32),
        grid=grid,
        in_specs=in_specs,
        out_specs=out_spec,
        compiler_params=pltpu.CompilerParams(
            dimension_semantics=("parallel",),
            vmem_limit_bytes=32 * 1024 * 1024,
        ),
        cost_estimate=cost,
    )(*operands)

    # Rows B..Bp and lanes 20..127 are padding - never read them.
    return out[:B, :INPUT_DIM]


# ---------------------------------------------------------------------------
# References
# ---------------------------------------------------------------------------
def ref_forward_f32(x, t, p):
    """Pure-fp32 reference matching the PyTorch module semantics exactly."""
    t = t.reshape(-1, 1)
    h = jax.nn.silu(t @ p["tw1"] + p["tb1"])
    h = jax.nn.silu(h @ p["tw2"] + p["tb2"])
    z = jnp.concatenate([x, h], axis=-1)
    z = jax.nn.silu(z @ p["nw0"] + p["nb0"])
    z = jax.nn.silu(z @ p["nw1"] + p["nb1"])
    z = jax.nn.silu(z @ p["nw2"] + p["nb2"])
    z = jax.nn.silu(z @ p["nw3"] + p["nb3"])
    z = jax.nn.silu(z @ p["nw4"] + p["nb4"])
    return z @ p["nw5"] + p["nb5"]


def ref_forward_kernel_numerics(x, t, prepared, bf16_act):
    """Reference mirroring the kernel numerics (bf16 matmuls, f32 accum, tanh SiLU)."""
    f32, bf16 = jnp.float32, jnp.bfloat16
    B = x.shape[0]
    xp = jnp.zeros((B, PAD_DIM), bf16)
    xp = xp.at[:, :INPUT_DIM].set(x.astype(bf16)).at[:, INPUT_DIM].set(
        t.reshape(-1).astype(bf16))

    dot = lambda a, w: jnp.dot(a.astype(bf16), w, preferred_element_type=f32)

    def silu(z):
        if bf16_act:
            zb = z.astype(bf16)
            return zb * (0.5 * (1.0 + jnp.tanh(0.5 * zb)))
        return (z * (0.5 * (1.0 + jnp.tanh(0.5 * z)))).astype(bf16)

    h = silu(dot(xp, prepared["wt1"]) + prepared["tb1"])
    h = silu(dot(h, prepared["tw2"]) + prepared["tb2"])
    xh = jnp.concatenate([xp, h.astype(bf16)], axis=-1)
    z = silu(dot(xh, prepared["w0"]) + prepared["nb0"])
    z = silu(dot(z, prepared["nw1"]) + prepared["nb1"])
    z = silu(dot(z, prepared["nw2"]) + prepared["nb2"])
    z = silu(dot(z, prepared["nw3"]) + prepared["nb3"])
    z = silu(dot(z, prepared["nw4"]) + prepared["nb4"])
    out = dot(z, prepared["nw5"]) + prepared["nb5"]
    return out[:, :INPUT_DIM]


if __name__ == "__main__":
    key = jax.random.PRNGKey(0)
    k_param, k_x, k_t = jax.random.split(key, 3)

    params = init_params(k_param)
    prepared = prepare_params(params)   # one-time weight prep (padding/stack/bf16)

    B = 4
    x = jax.random.normal(k_x, (B, INPUT_DIM), jnp.float32)
    t = jax.random.uniform(k_t, (B,), jnp.float32)

    bf16_act = _default_bf16_act()
    out = big_time_conditional_net(x, t, prepared, bf16_act=bf16_act)
    out = jax.block_until_ready(out)
    assert out.shape == (B, INPUT_DIM)

    # Tight check against a reference mirroring the kernel's bf16/f32 numerics.
    ref_q = ref_forward_kernel_numerics(x, t, prepared, bf16_act)
    assert jnp.allclose(out, ref_q, atol=3e-2, rtol=3e-2), (
        f"max abs err vs kernel-numerics ref: {jnp.max(jnp.abs(out - ref_q))}")

    # Loose sanity check against the exact fp32 PyTorch-semantics reference
    # (difference is only bf16 weight/activation quantization).
    ref_f = ref_forward_f32(x, t, params)
    assert jnp.max(jnp.abs(out - ref_f)) < 0.25, (
        f"max abs err vs fp32 ref: {jnp.max(jnp.abs(out - ref_f))}")

    print("KERNEL_OK")
</pallas_src>

<mosaic_0001>
module attributes {stable_mosaic.version = 11 : i64} {
  func.func @_mlp_kernel(%arg0: i32, %arg1: memref<8x128xbf16, #tpu.memory_space<vmem>>, %arg2: memref<128x128xbf16, #tpu.memory_space<vmem>>, %arg3: memref<1x128xf32, #tpu.memory_space<vmem>>, %arg4: memref<128x128xbf16, #tpu.memory_space<vmem>>, %arg5: memref<1x128xf32, #tpu.memory_space<vmem>>, %arg6: memref<256x512xbf16, #tpu.memory_space<vmem>>, %arg7: memref<1x512xf32, #tpu.memory_space<vmem>>, %arg8: memref<512x512xbf16, #tpu.memory_space<vmem>>, %arg9: memref<1x512xf32, #tpu.memory_space<vmem>>, %arg10: memref<512x512xbf16, #tpu.memory_space<vmem>>, %arg11: memref<1x512xf32, #tpu.memory_space<vmem>>, %arg12: memref<512x512xbf16, #tpu.memory_space<vmem>>, %arg13: memref<1x512xf32, #tpu.memory_space<vmem>>, %arg14: memref<512x512xbf16, #tpu.memory_space<vmem>>, %arg15: memref<1x512xf32, #tpu.memory_space<vmem>>, %arg16: memref<512x128xbf16, #tpu.memory_space<vmem>>, %arg17: memref<1x128xf32, #tpu.memory_space<vmem>>, %arg18: memref<8x128xf32, #tpu.memory_space<vmem>>) attributes {dimension_semantics = [#tpu.dimension_semantics<parallel>], iteration_bounds = array<i64: 1>, scalar_prefetch = 0 : i64, scratch_operands = 0 : i64, tpu.core_type = #tpu.core_type<tc>, window_params = [{transform_indices = @transform_0, window_bounds = array<i64: 8, 128>}, {pipeline_mode = #tpu.pipeline_mode<synchronous>, transform_indices = @transform_1, window_bounds = array<i64: 128, 128>}, {pipeline_mode = #tpu.pipeline_mode<synchronous>, transform_indices = @transform_2, window_bounds = array<i64: 1, 128>}, {pipeline_mode = #tpu.pipeline_mode<synchronous>, transform_indices = @transform_3, window_bounds = array<i64: 128, 128>}, {pipeline_mode = #tpu.pipeline_mode<synchronous>, transform_indices = @transform_4, window_bounds = array<i64: 1, 128>}, {pipeline_mode = #tpu.pipeline_mode<synchronous>, transform_indices = @transform_5, window_bounds = array<i64: 256, 512>}, {pipeline_mode = #tpu.pipeline_mode<synchronous>, transform_indices = @transform_6, window_bounds = array<i64: 1, 512>}, {pipeline_mode = #tpu.pipeline_mode<synchronous>, transform_indices = @transform_7, window_bounds = array<i64: 512, 512>}, {pipeline_mode = #tpu.pipeline_mode<synchronous>, transform_indices = @transform_8, window_bounds = array<i64: 1, 512>}, {pipeline_mode = #tpu.pipeline_mode<synchronous>, transform_indices = @transform_9, window_bounds = array<i64: 512, 512>}, {pipeline_mode = #tpu.pipeline_mode<synchronous>, transform_indices = @transform_10, window_bounds = array<i64: 1, 512>}, {pipeline_mode = #tpu.pipeline_mode<synchronous>, transform_indices = @transform_11, window_bounds = array<i64: 512, 512>}, {pipeline_mode = #tpu.pipeline_mode<synchronous>, transform_indices = @transform_12, window_bounds = array<i64: 1, 512>}, {pipeline_mode = #tpu.pipeline_mode<synchronous>, transform_indices = @transform_13, window_bounds = array<i64: 512, 512>}, {pipeline_mode = #tpu.pipeline_mode<synchronous>, transform_indices = @transform_14, window_bounds = array<i64: 1, 512>}, {pipeline_mode = #tpu.pipeline_mode<synchronous>, transform_indices = @transform_15, window_bounds = array<i64: 512, 128>}, {pipeline_mode = #tpu.pipeline_mode<synchronous>, transform_indices = @transform_16, window_bounds = array<i64: 1, 128>}, {transform_indices = @transform_17, window_bounds = array<i64: 8, 128>}]} {
    %c0 = arith.constant 0 : index
    %c0_0 = arith.constant 0 : index
    %0 = vector.load %arg1[%c0, %c0_0] : memref<8x128xbf16, #tpu.memory_space<vmem>>, vector<8x128xbf16>
    %c0_1 = arith.constant 0 : index
    %c0_2 = arith.constant 0 : index
    %1 = vector.load %arg2[%c0_1, %c0_2] : memref<128x128xbf16, #tpu.memory_space<vmem>>, vector<128x128xbf16>
    %cst = arith.constant dense<0.000000e+00> : vector<8x128xf32>
    %2 = tpu.matmul %0, %1, %cst {dimension_numbers = #tpu.dot_dimension_numbers<[1], [0], [0], [1], [0, 0, 1, 1], [], []>} : vector<8x128xbf16>, vector<128x128xbf16>, vector<8x128xf32> -> vector<8x128xf32>
    %c0_3 = arith.constant 0 : index
    %c0_4 = arith.constant 0 : index
    %3 = vector.load %arg3[%c0_3, %c0_4] : memref<1x128xf32, #tpu.memory_space<vmem>>, vector<1x128xf32>
    %4 = vector.broadcast %3 : vector<1x128xf32> to vector<8x128xf32>
    %5 = arith.addf %2, %4 : vector<8x128xf32>
    %6 = arith.truncf %5 : vector<8x128xf32> to vector<8x128xbf16>
    %cst_5 = arith.constant 5.000000e-01 : bf16
    %7 = vector.broadcast %cst_5 : bf16 to vector<8x128xbf16>
    %8 = arith.mulf %7, %6 : vector<8x128xbf16>
    %9 = math.tanh %8 : vector<8x128xbf16>
    %cst_6 = arith.constant 1.000000e+00 : bf16
    %10 = vector.broadcast %cst_6 : bf16 to vector<8x128xbf16>
    %11 = arith.addf %10, %9 : vector<8x128xbf16>
    %cst_7 = arith.constant 5.000000e-01 : bf16
    %12 = vector.broadcast %cst_7 : bf16 to vector<8x128xbf16>
    %13 = arith.mulf %12, %11 : vector<8x128xbf16>
    %14 = arith.mulf %6, %13 : vector<8x128xbf16>
    %c0_8 = arith.constant 0 : index
    %c0_9 = arith.constant 0 : index
    %15 = vector.load %arg4[%c0_8, %c0_9] : memref<128x128xbf16, #tpu.memory_space<vmem>>, vector<128x128xbf16>
    %cst_10 = arith.constant dense<0.000000e+00> : vector<8x128xf32>
    %16 = tpu.matmul %14, %15, %cst_10 {dimension_numbers = #tpu.dot_dimension_numbers<[1], [0], [0], [1], [0, 0, 1, 1], [], []>} : vector<8x128xbf16>, vector<128x128xbf16>, vector<8x128xf32> -> vector<8x128xf32>
    %c0_11 = arith.constant 0 : index
    %c0_12 = arith.constant 0 : index
    %17 = vector.load %arg5[%c0_11, %c0_12] : memref<1x128xf32, #tpu.memory_space<vmem>>, vector<1x128xf32>
    %18 = vector.broadcast %17 : vector<1x128xf32> to vector<8x128xf32>
    %19 = arith.addf %16, %18 : vector<8x128xf32>
    %20 = arith.truncf %19 : vector<8x128xf32> to vector<8x128xbf16>
    %cst_13 = arith.constant 5.000000e-01 : bf16
    %21 = vector.broadcast %cst_13 : bf16 to vector<8x128xbf16>
    %22 = arith.mulf %21, %20 : vector<8x128xbf16>
    %23 = math.tanh %22 : vector<8x128xbf16>
    %cst_14 = arith.constant 1.000000e+00 : bf16
    %24 = vector.broadcast %cst_14 : bf16 to vector<8x128xbf16>
    %25 = arith.addf %24, %23 : vector<8x128xbf16>
    %cst_15 = arith.constant 5.000000e-01 : bf16
    %26 = vector.broadcast %cst_15 : bf16 to vector<8x128xbf16>
    %27 = arith.mulf %26, %25 : vector<8x128xbf16>
    %28 = arith.mulf %20, %27 : vector<8x128xbf16>
    %29 = tpu.concatenate %0, %28 in 1 : vector<8x128xbf16>, vector<8x128xbf16> -> vector<8x256xbf16>
    %c0_16 = arith.constant 0 : index
    %c0_17 = arith.constant 0 : index
    %30 = vector.load %arg6[%c0_16, %c0_17] : memref<256x512xbf16, #tpu.memory_space<vmem>>, vector<256x512xbf16>
    %cst_18 = arith.constant dense<0.000000e+00> : vector<8x512xf32>
    %31 = tpu.matmul %29, %30, %cst_18 {dimension_numbers = #tpu.dot_dimension_numbers<[1], [0], [0], [1], [0, 0, 1, 1], [], []>} : vector<8x256xbf16>, vector<256x512xbf16>, vector<8x512xf32> -> vector<8x512xf32>
    %c0_19 = arith.constant 0 : index
    %c0_20 = arith.constant 0 : index
    %32 = vector.load %arg7[%c0_19, %c0_20] : memref<1x512xf32, #tpu.memory_space<vmem>>, vector<1x512xf32>
    %33 = vector.broadcast %32 : vector<1x512xf32> to vector<8x512xf32>
    %34 = arith.addf %31, %33 : vector<8x512xf32>
    %35 = arith.truncf %34 : vector<8x512xf32> to vector<8x512xbf16>
    %cst_21 = arith.constant 5.000000e-01 : bf16
    %36 = vector.broadcast %cst_21 : bf16 to vector<8x512xbf16>
    %37 = arith.mulf %36, %35 : vector<8x512xbf16>
    %38 = math.tanh %37 : vector<8x512xbf16>
    %cst_22 = arith.constant 1.000000e+00 : bf16
    %39 = vector.broadcast %cst_22 : bf16 to vector<8x512xbf16>
    %40 = arith.addf %39, %38 : vector<8x512xbf16>
    %cst_23 = arith.constant 5.000000e-01 : bf16
    %41 = vector.broadcast %cst_23 : bf16 to vector<8x512xbf16>
    %42 = arith.mulf %41, %40 : vector<8x512xbf16>
    %43 = arith.mulf %35, %42 : vector<8x512xbf16>
    %c0_24 = arith.constant 0 : index
    %c0_25 = arith.constant 0 : index
    %44 = vector.load %arg8[%c0_24, %c0_25] : memref<512x512xbf16, #tpu.memory_space<vmem>>, vector<512x512xbf16>
    %cst_26 = arith.constant dense<0.000000e+00> : vector<8x512xf32>
    %45 = tpu.matmul %43, %44, %cst_26 {dimension_numbers = #tpu.dot_dimension_numbers<[1], [0], [0], [1], [0, 0, 1, 1], [], []>} : vector<8x512xbf16>, vector<512x512xbf16>, vector<8x512xf32> -> vector<8x512xf32>
    %c0_27 = arith.constant 0 : index
    %c0_28 = arith.constant 0 : index
    %46 = vector.load %arg9[%c0_27, %c0_28] : memref<1x512xf32, #tpu.memory_space<vmem>>, vector<1x512xf32>
    %47 = vector.broadcast %46 : vector<1x512xf32> to vector<8x512xf32>
    %48 = arith.addf %45, %47 : vector<8x512xf32>
    %49 = arith.truncf %48 : vector<8x512xf32> to vector<8x512xbf16>
    %cst_29 = arith.constant 5.000000e-01 : bf16
    %50 = vector.broadcast %cst_29 : bf16 to vector<8x512xbf16>
    %51 = arith.mulf %50, %49 : vector<8x512xbf16>
    %52 = math.tanh %51 : vector<8x512xbf16>
    %cst_30 = arith.constant 1.000000e+00 : bf16
    %53 = vector.broadcast %cst_30 : bf16 to vector<8x512xbf16>
    %54 = arith.addf %53, %52 : vector<8x512xbf16>
    %cst_31 = arith.constant 5.000000e-01 : bf16
    %55 = vector.broadcast %cst_31 : bf16 to vector<8x512xbf16>
    %56 = arith.mulf %55, %54 : vector<8x512xbf16>
    %57 = arith.mulf %49, %56 : vector<8x512xbf16>
    %c0_32 = arith.constant 0 : index
    %c0_33 = arith.constant 0 : index
    %58 = vector.load %arg10[%c0_32, %c0_33] : memref<512x512xbf16, #tpu.memory_space<vmem>>, vector<512x512xbf16>
    %cst_34 = arith.constant dense<0.000000e+00> : vector<8x512xf32>
    %59 = tpu.matmul %57, %58, %cst_34 {dimension_numbers = #tpu.dot_dimension_numbers<[1], [0], [0], [1], [0, 0, 1, 1], [], []>} : vector<8x512xbf16>, vector<512x512xbf16>, vector<8x512xf32> -> vector<8x512xf32>
    %c0_35 = arith.constant 0 : index
    %c0_36 = arith.constant 0 : index
    %60 = vector.load %arg11[%c0_35, %c0_36] : memref<1x512xf32, #tpu.memory_space<vmem>>, vector<1x512xf32>
    %61 = vector.broadcast %60 : vector<1x512xf32> to vector<8x512xf32>
    %62 = arith.addf %59, %61 : vector<8x512xf32>
    %63 = arith.truncf %62 : vector<8x512xf32> to vector<8x512xbf16>
    %cst_37 = arith.constant 5.000000e-01 : bf16
    %64 = vector.broadcast %cst_37 : bf16 to vector<8x512xbf16>
    %65 = arith.mulf %64, %63 : vector<8x512xbf16>
    %66 = math.tanh %65 : vector<8x512xbf16>
    %cst_38 = arith.constant 1.000000e+00 : bf16
    %67 = vector.broadcast %cst_38 : bf16 to vector<8x512xbf16>
    %68 = arith.addf %67, %66 : vector<8x512xbf16>
    %cst_39 = arith.constant 5.000000e-01 : bf16
    %69 = vector.broadcast %cst_39 : bf16 to vector<8x512xbf16>
    %70 = arith.mulf %69, %68 : vector<8x512xbf16>
    %71 = arith.mulf %63, %70 : vector<8x512xbf16>
    %c0_40 = arith.constant 0 : index
    %c0_41 = arith.constant 0 : index
    %72 = vector.load %arg12[%c0_40, %c0_41] : memref<512x512xbf16, #tpu.memory_space<vmem>>, vector<512x512xbf16>
    %cst_42 = arith.constant dense<0.000000e+00> : vector<8x512xf32>
    %73 = tpu.matmul %71, %72, %cst_42 {dimension_numbers = #tpu.dot_dimension_numbers<[1], [0], [0], [1], [0, 0, 1, 1], [], []>} : vector<8x512xbf16>, vector<512x512xbf16>, vector<8x512xf32> -> vector<8x512xf32>
    %c0_43 = arith.constant 0 : index
    %c0_44 = arith.constant 0 : index
    %74 = vector.load %arg13[%c0_43, %c0_44] : memref<1x512xf32, #tpu.memory_space<vmem>>, vector<1x512xf32>
    %75 = vector.broadcast %74 : vector<1x512xf32> to vector<8x512xf32>
    %76 = arith.addf %73, %75 : vector<8x512xf32>
    %77 = arith.truncf %76 : vector<8x512xf32> to vector<8x512xbf16>
    %cst_45 = arith.constant 5.000000e-01 : bf16
    %78 = vector.broadcast %cst_45 : bf16 to vector<8x512xbf16>
    %79 = arith.mulf %78, %77 : vector<8x512xbf16>
    %80 = math.tanh %79 : vector<8x512xbf16>
    %cst_46 = arith.constant 1.000000e+00 : bf16
    %81 = vector.broadcast %cst_46 : bf16 to vector<8x512xbf16>
    %82 = arith.addf %81, %80 : vector<8x512xbf16>
    %cst_47 = arith.constant 5.000000e-01 : bf16
    %83 = vector.broadcast %cst_47 : bf16 to vector<8x512xbf16>
    %84 = arith.mulf %83, %82 : vector<8x512xbf16>
    %85 = arith.mulf %77, %84 : vector<8x512xbf16>
    %c0_48 = arith.constant 0 : index
    %c0_49 = arith.constant 0 : index
    %86 = vector.load %arg14[%c0_48, %c0_49] : memref<512x512xbf16, #tpu.memory_space<vmem>>, vector<512x512xbf16>
    %cst_50 = arith.constant dense<0.000000e+00> : vector<8x512xf32>
    %87 = tpu.matmul %85, %86, %cst_50 {dimension_numbers = #tpu.dot_dimension_numbers<[1], [0], [0], [1], [0, 0, 1, 1], [], []>} : vector<8x512xbf16>, vector<512x512xbf16>, vector<8x512xf32> -> vector<8x512xf32>
    %c0_51 = arith.constant 0 : index
    %c0_52 = arith.constant 0 : index
    %88 = vector.load %arg15[%c0_51, %c0_52] : memref<1x512xf32, #tpu.memory_space<vmem>>, vector<1x512xf32>
    %89 = vector.broadcast %88 : vector<1x512xf32> to vector<8x512xf32>
    %90 = arith.addf %87, %89 : vector<8x512xf32>
    %91 = arith.truncf %90 : vector<8x512xf32> to vector<8x512xbf16>
    %cst_53 = arith.constant 5.000000e-01 : bf16
    %92 = vector.broadcast %cst_53 : bf16 to vector<8x512xbf16>
    %93 = arith.mulf %92, %91 : vector<8x512xbf16>
    %94 = math.tanh %93 : vector<8x512xbf16>
    %cst_54 = arith.constant 1.000000e+00 : bf16
    %95 = vector.broadcast %cst_54 : bf16 to vector<8x512xbf16>
    %96 = arith.addf %95, %94 : vector<8x512xbf16>
    %cst_55 = arith.constant 5.000000e-01 : bf16
    %97 = vector.broadcast %cst_55 : bf16 to vector<8x512xbf16>
    %98 = arith.mulf %97, %96 : vector<8x512xbf16>
    %99 = arith.mulf %91, %98 : vector<8x512xbf16>
    %c0_56 = arith.constant 0 : index
    %c0_57 = arith.constant 0 : index
    %100 = vector.load %arg16[%c0_56, %c0_57] : memref<512x128xbf16, #tpu.memory_space<vmem>>, vector<512x128xbf16>
    %cst_58 = arith.constant dense<0.000000e+00> : vector<8x128xf32>
    %101 = tpu.matmul %99, %100, %cst_58 {dimension_numbers = #tpu.dot_dimension_numbers<[1], [0], [0], [1], [0, 0, 1, 1], [], []>} : vector<8x512xbf16>, vector<512x128xbf16>, vector<8x128xf32> -> vector<8x128xf32>
    %c0_59 = arith.constant 0 : index
    %c0_60 = arith.constant 0 : index
    %102 = vector.load %arg17[%c0_59, %c0_60] : memref<1x128xf32, #tpu.memory_space<vmem>>, vector<1x128xf32>
    %103 = vector.broadcast %102 : vector<1x128xf32> to vector<8x128xf32>
    %104 = arith.addf %101, %103 : vector<8x128xf32>
    %c0_61 = arith.constant 0 : index
    %c0_62 = arith.constant 0 : index
    %105 = vector.load %arg18[%c0_61, %c0_62] : memref<8x128xf32, #tpu.memory_space<vmem>>, vector<8x128xf32>
    tpu.vector_store %arg18[%c0_61, %c0_62], %104 {strides = array<i32>} : memref<8x128xf32, #tpu.memory_space<vmem>>, vector<8x128xf32>,
    return
  }
  func.func @transform_0(%arg0: i32) -> (i32, i32) {
    %c0_i32 = arith.constant 0 : i32
    %c0_i32_0 = arith.constant 0 : i32
    return %arg0, %c0_i32 : i32, i32
  }
  func.func @transform_1(%arg0: i32) -> (i32, i32) {
    %c0_i32 = arith.constant 0 : i32
    %c0_i32_0 = arith.constant 0 : i32
    %c0_i32_1 = arith.constant 0 : i32
    return %c0_i32, %c0_i32_0 : i32, i32
  }
  func.func @transform_2(%arg0: i32) -> (i32, i32) {
    %c0_i32 = arith.constant 0 : i32
    %c0_i32_0 = arith.constant 0 : i32
    %c0_i32_1 = arith.constant 0 : i32
    return %c0_i32, %c0_i32_0 : i32, i32
  }
  func.func @transform_3(%arg0: i32) -> (i32, i32) {
    %c0_i32 = arith.constant 0 : i32
    %c0_i32_0 = arith.constant 0 : i32
    %c0_i32_1 = arith.constant 0 : i32
    return %c0_i32, %c0_i32_0 : i32, i32
  }
  func.func @transform_4(%arg0: i32) -> (i32, i32) {
    %c0_i32 = arith.constant 0 : i32
    %c0_i32_0 = arith.constant 0 : i32
    %c0_i32_1 = arith.constant 0 : i32
    return %c0_i32, %c0_i32_0 : i32, i32
  }
  func.func @transform_5(%arg0: i32) -> (i32, i32) {
    %c0_i32 = arith.constant 0 : i32
    %c0_i32_0 = arith.constant 0 : i32
    %c0_i32_1 = arith.constant 0 : i32
    return %c0_i32, %c0_i32_0 : i32, i32
  }
  func.func @transform_6(%arg0: i32) -> (i32, i32) {
    %c0_i32 = arith.constant 0 : i32
    %c0_i32_0 = arith.constant 0 : i32
    %c0_i32_1 = arith.constant 0 : i32
    return %c0_i32, %c0_i32_0 : i32, i32
  }
  func.func @transform_7(%arg0: i32) -> (i32, i32) {
    %c0_i32 = arith.constant 0 : i32
    %c0_i32_0 = arith.constant 0 : i32
    %c0_i32_1 = arith.constant 0 : i32
    return %c0_i32, %c0_i32_0 : i32, i32
  }
  func.func @transform_8(%arg0: i32) -> (i32, i32) {
    %c0_i32 = arith.constant 0 : i32
    %c0_i32_0 = arith.constant 0 : i32
    %c0_i32_1 = arith.constant 0 : i32
    return %c0_i32, %c0_i32_0 : i32, i32
  }
  func.func @transform_9(%arg0: i32) -> (i32, i32) {
    %c0_i32 = arith.constant 0 : i32
    %c0_i32_0 = arith.constant 0 : i32
    %c0_i32_1 = arith.constant 0 : i32
    return %c0_i32, %c0_i32_0 : i32, i32
  }
  func.func @transform_10(%arg0: i32) -> (i32, i32) {
    %c0_i32 = arith.constant 0 : i32
    %c0_i32_0 = arith.constant 0 : i32
    %c0_i32_1 = arith.constant 0 : i32
    return %c0_i32, %c0_i32_0 : i32, i32
  }
  func.func @transform_11(%arg0: i32) -> (i32, i32) {
    %c0_i32 = arith.constant 0 : i32
    %c0_i32_0 = arith.constant 0 : i32
    %c0_i32_1 = arith.constant 0 : i32
    return %c0_i32, %c0_i32_0 : i32, i32
  }
  func.func @transform_12(%arg0: i32) -> (i32, i32) {
    %c0_i32 = arith.constant 0 : i32
    %c0_i32_0 = arith.constant 0 : i32
    %c0_i32_1 = arith.constant 0 : i32
    return %c0_i32, %c0_i32_0 : i32, i32
  }
  func.func @transform_13(%arg0: i32) -> (i32, i32) {
    %c0_i32 = arith.constant 0 : i32
    %c0_i32_0 = arith.constant 0 : i32
    %c0_i32_1 = arith.constant 0 : i32
    return %c0_i32, %c0_i32_0 : i32, i32
  }
  func.func @transform_14(%arg0: i32) -> (i32, i32) {
    %c0_i32 = arith.constant 0 : i32
    %c0_i32_0 = arith.constant 0 : i32
    %c0_i32_1 = arith.constant 0 : i32
    return %c0_i32, %c0_i32_0 : i32, i32
  }
  func.func @transform_15(%arg0: i32) -> (i32, i32) {
    %c0_i32 = arith.constant 0 : i32
    %c0_i32_0 = arith.constant 0 : i32
    %c0_i32_1 = arith.constant 0 : i32
    return %c0_i32, %c0_i32_0 : i32, i32
  }
  func.func @transform_16(%arg0: i32) -> (i32, i32) {
    %c0_i32 = arith.constant 0 : i32
    %c0_i32_0 = arith.constant 0 : i32
    %c0_i32_1 = arith.constant 0 : i32
    return %c0_i32, %c0_i32_0 : i32, i32
  }
  func.func @transform_17(%arg0: i32) -> (i32, i32) {
    %c0_i32 = arith.constant 0 : i32
    %c0_i32_0 = arith.constant 0 : i32
    return %arg0, %c0_i32 : i32, i32
  }
}

</mosaic_0001>

<bundles_post_ra>
// kernel: tpu_custom_call.1
= control target key start
LH: loop header
LB: loop body
LE: loop exit
PB: predicated region body
PF: predicated region fallthrough
CT: control target
= control target key end

     0   :  { %s7565_s0 = inlined_call_operand.hbm [shape: bf16[8,128], index: 0, kind: input, shape index: {}]   ;;  %s7566_s1 = inlined_call_operand.hbm [shape: bf16[128,128], index: 1, kind: input, shape index: {}]   ;;  %s7567_s2 = inlined_call_operand.vmem [shape: f32[1,128], index: 2, kind: input, shape index: {}]   ;;  %s7568_s3 = inlined_call_operand.hbm [shape: bf16[128,128], index: 3, kind: input, shape index: {}]   ;;  %s7569_s4 = inlined_call_operand.vmem [shape: f32[1,128], index: 4, kind: input, shape index: {}]   ;;  %s7570_s5 = inlined_call_operand.hbm [shape: bf16[256,512], index: 5, kind: input, shape index: {}]   ;;  %s7571_s6 = inlined_call_operand.vmem [shape: f32[1,512], index: 6, kind: input, shape index: {}]   ;;  %s7572_s7 = inlined_call_operand.hbm [shape: bf16[512,512], index: 7, kind: input, shape index: {}]   ;;  %s7573_s8 = inlined_call_operand.vmem [shape: f32[1,512], index: 8, kind: input, shape index: {}]   ;;  %s7574_s9 = inlined_call_operand.hbm [shape: bf16[512,512], index: 9, kind: input, shape index: {}]   ;;  %s7575_s10 = inlined_call_operand.vmem [shape: f32[1,512], index: 10, kind: input, shape index: {}]   ;;  %s7576_s11 = inlined_call_operand.hbm [shape: bf16[512,512], index: 11, kind: input, shape index: {}]   ;;  %s7577_s12 = inlined_call_operand.vmem [shape: f32[1,512], index: 12, kind: input, shape index: {}]   ;;  %s7578_s13 = inlined_call_operand.hbm [shape: bf16[512,512], index: 13, kind: input, shape index: {}]   ;;  %s7579_s14 = inlined_call_operand.vmem [shape: f32[1,512], index: 14, kind: input, shape index: {}]   ;;  %s7580_s15 = inlined_call_operand.hbm [shape: bf16[512,128], index: 15, kind: input, shape index: {}]   ;;  %s7581_s16 = inlined_call_operand.vmem [shape: f32[1,128], index: 16, kind: input, shape index: {}]   ;;  %s7582_s17 = inlined_call_operand.hbm [shape: f32[8,128], index: 17, kind: output, shape index: {}]  }
   0x1   :  { %7590 = sst [smem:[#allocation24_spill]] %s7565_s0 }
   0x2   :  { %7591 = sst [smem:[#allocation25_spill]] %s7566_s1 }
   0x3   :  { %7592 = sst [smem:[#allocation26_spill]] %s7582_s17 }
   0x4   :  { %22 = vsyncpa [#allocation3], 0 }
   0x5   :  { %23 = vsyncpa [#allocation6], 0 }
   0x6   :  { %24 = vsyncpa [#allocation9], 0 }
   0x7   :  { %25 = vsyncpa [#allocation12], 0 }
   0x8   :  { %26 = vsyncpa [#allocation15], 0 }
   0x9   :  { %27 = vsyncpa [#allocation4], 0  ;;  %s7184_s24 = smov [#allocation5]   ;;  %s7593_s28 = sld [smem:[#allocation25_spill]] }
   0xa   :  { %s43_s25 = sshll.u32 %s7184_s24, 4  ;;  %s44_s25 = int_to_ptr.vmem [resolvable:$true] %s43_s25 }
   0xf   :  { %s6952_s29 = scalar_lea.hbm %s7593_s28, 1024 }
  0x10   :  { %p6953_p0 = scmp.ne.s32.totalorder %s7593_s28, %s6952_s29  ;;  %p6956_p1 = scmp.lt.u32.totalorder %s6952_s29, %s7593_s28 }
  0x12   :  { %p6958_p2 = pnand %p6956_p1, %p6953_p0 }
  0x14   :  { %6961 = shalt.err (!%p6958_p2)
}
  0x15   :  { %s6962_s1 = scalar_lea.vmem %s44_s25, 1024  ;;  %p6967_p4 = scmp.lt.s32.totalorder %s44_s25, %s44_s25 }
  0x16   :  { %p6963_p3 = scmp.ne.s32.totalorder %s44_s25, %s6962_s1  ;;  %p6968_p5 = scmp.lt.s32.totalorder %s6962_s1, %s6962_s1 }
  0x18   :  { %p6969_p6 = por %p6968_p5, %p6967_p4 }
  0x1a   :  { %p6970_p7 = pnand %p6969_p6, %p6963_p3 }
  0x1c   :  { %6973 = shalt.err (!%p6970_p7)
}
  0x1d   :  { %s7586_s20 = smov 64   ;;  %s7588_s21 = smov 4  }
  0x1e   :  { %49 = dma.hbm_to_vmem [thread:$0]  %s7593_s28, 1024, %s44_s25, [#allocation6], %s7586_s20, %s7586_s20, %s7588_s21  }
  0x1f   :  { %s7187_s24 = smov [#allocation8]   ;;  %s6974_s0 = scalar_lea.hbm %s7570_s5, 8192 }
  0x20   :  { %s71_s26 = sshll.u32 %s7187_s24, 4  ;;  %p6975_p8 = scmp.ne.s32.totalorder %s7570_s5, %s6974_s0  ;;  %s72_s26 = int_to_ptr.vmem [resolvable:$true] %s71_s26 }
  0x21   :  { %p6978_p9 = scmp.lt.u32.totalorder %s6974_s0, %s7570_s5 }
  0x23   :  { %p6980_p10 = pnand %p6978_p9, %p6975_p8 }
  0x25   :  { %6983 = shalt.err (!%p6980_p10)
}
  0x26   :  { %s6984_s17 = scalar_lea.vmem %s72_s26, 8192  ;;  %p6989_p12 = scmp.lt.s32.totalorder %s72_s26, %s72_s26 }
  0x27   :  { %p6985_p11 = scmp.ne.s32.totalorder %s72_s26, %s6984_s17  ;;  %p6990_p13 = scmp.lt.s32.totalorder %s6984_s17, %s6984_s17 }
  0x29   :  { %p6991_p0 = por %p6990_p13, %p6989_p12 }
  0x2b   :  { %p6992_p1 = pnand %p6991_p0, %p6985_p11 }
  0x2d   :  { %6995 = shalt.err (!%p6992_p1)
}
  0x2e   :  { %s7188_s25 = smov 256   ;;  %s7189_s28 = smov 16  }
  0x2f   :  { %77 = dma.hbm_to_vmem [thread:$0]  %s7570_s5, 8192, %s72_s26, [#allocation9], %s7188_s25, %s7188_s25, %s7189_s28  }
  0x30   :  { %s7190_s24 = smov [#allocation11]   ;;  %s7191_s29 = smov [#allocation14]  }
  0x31   :  { %s99_s27 = sshll.u32 %s7190_s24, 4  ;;  %s127_s0 = sshll.u32 %s7191_s29, 4  ;;  %s100_s27 = int_to_ptr.vmem [resolvable:$true] %s99_s27  ;;  %s7320_s0 = int_to_ptr.vmem [resolvable:$true] %s127_s0 }
  0x32   :  { %s6996_s18 = scalar_lea.hbm %s7574_s9, 16384 }
  0x33   :  { %p6997_p2 = scmp.ne.s32.totalorder %s7574_s9, %s6996_s18  ;;  %p7000_p3 = scmp.lt.u32.totalorder %s6996_s18, %s7574_s9 }
  0x35   :  { %p7002_p4 = pnand %p7000_p3, %p6997_p2 }
  0x37   :  { %7005 = shalt.err (!%p7002_p4)
}
  0x38   :  { %s7006_s5 = scalar_lea.vmem %s100_s27, 16384  ;;  %p7011_p6 = scmp.lt.s32.totalorder %s100_s27, %s100_s27 }
  0x39   :  { %p7007_p5 = scmp.ne.s32.totalorder %s100_s27, %s7006_s5  ;;  %p7012_p7 = scmp.lt.s32.totalorder %s7006_s5, %s7006_s5 }
  0x3b   :  { %p7013_p8 = por %p7012_p7, %p7011_p6 }
  0x3d   :  { %p7014_p9 = pnand %p7013_p8, %p7007_p5 }
  0x3f   :  { %7017 = shalt.err (!%p7014_p9)
}
  0x40   :  { %105 = dma.hbm_to_vmem [thread:$0]  %s7574_s9, 16384, %s100_s27, [#allocation12], %s7188_s25, %s7188_s25, %s7189_s28  }
  0x41   :  { %s7018_s20 = scalar_lea.hbm %s7578_s13, 16384 }
  0x42   :  { %p7019_p10 = scmp.ne.s32.totalorder %s7578_s13, %s7018_s20  ;;  %p7022_p11 = scmp.lt.u32.totalorder %s7018_s20, %s7578_s13 }
  0x44   :  { %p7024_p12 = pnand %p7022_p11, %p7019_p10 }
  0x46   :  { %7027 = shalt.err (!%p7024_p12)
}
  0x47   :  { %s7028_s18 = scalar_lea.vmem %s7320_s0, 16384  ;;  %p7033_p0 = scmp.lt.s32.totalorder %s7320_s0, %s7320_s0 }
  0x48   :  { %p7029_p13 = scmp.ne.s32.totalorder %s7320_s0, %s7028_s18  ;;  %p7034_p1 = scmp.lt.s32.totalorder %s7028_s18, %s7028_s18 }
  0x4a   :  { %p7035_p2 = por %p7034_p1, %p7033_p0 }
  0x4c   :  { %p7036_p3 = pnand %p7035_p2, %p7029_p13 }
  0x4e   :  { %7039 = shalt.err (!%p7036_p3)
}
  0x4f   :  { %133 = dma.hbm_to_vmem [thread:$0]  %s7578_s13, 16384, %s7320_s0, [#allocation15], %s7188_s25, %s7188_s25, %s7189_s28  }
  0x50   :  { %s7192_s19 = smov [#allocation2]   ;;  %s7193_s5 = smov [#allocation7]  }
  0x51   :  { %s34_s1 = sshll.u32 %s7192_s19, 4  ;;  %s57_s26 = sshll.u32 %s7193_s5, 4  ;;  %s35_s1 = int_to_ptr.vmem [resolvable:$true] %s34_s1  ;;  %s7357_s26 = int_to_ptr.vmem [resolvable:$true] %s57_s26 }
  0x52   :  { %s7594_s24 = sld [smem:[#allocation24_spill]] }
  0x58   :  { %s7040_s20 = scalar_lea.hbm %s7594_s24, 64 }
  0x59   :  { %p7041_p4 = scmp.ne.s32.totalorder %s7594_s24, %s7040_s20  ;;  %p7044_p5 = scmp.lt.u32.totalorder %s7040_s20, %s7594_s24 }
  0x5b   :  { %p7046_p6 = pnand %p7044_p5, %p7041_p4 }
  0x5d   :  { %7049 = shalt.err (!%p7046_p6)
}
  0x5e   :  { %s7050_s13 = scalar_lea.vmem %s35_s1, 64  ;;  %p7055_p8 = scmp.lt.s32.totalorder %s35_s1, %s35_s1 }
  0x5f   :  { %p7051_p7 = scmp.ne.s32.totalorder %s35_s1, %s7050_s13  ;;  %p7056_p9 = scmp.lt.s32.totalorder %s7050_s13, %s7050_s13 }
  0x61   :  { %p7057_p10 = por %p7056_p9, %p7055_p8 }
  0x63   :  { %p7058_p11 = pnand %p7057_p10, %p7051_p7 }
  0x65   :  { %7061 = shalt.err (!%p7058_p11)
}
  0x66   :  { %37 = dma.hbm_to_vmem [thread:$0]  %s7594_s24, 64, %s35_s1, [#allocation3]  }
  0x67   :  { %s7062_s19 = scalar_lea.hbm %s7568_s3, 1024 }
  0x68   :  { %p7063_p12 = scmp.ne.s32.totalorder %s7568_s3, %s7062_s19  ;;  %p7066_p13 = scmp.lt.u32.totalorder %s7062_s19, %s7568_s3 }
  0x6a   :  { %p7068_p0 = pnand %p7066_p13, %p7063_p12 }
  0x6c   :  { %7071 = shalt.err (!%p7068_p0)
}
  0x6d   :  { %s7072_s21 = scalar_lea.vmem %s7357_s26, 1024  ;;  %p7077_p2 = scmp.lt.s32.totalorder %s7357_s26, %s7357_s26 }
  0x6e   :  { %p7073_p1 = scmp.ne.s32.totalorder %s7357_s26, %s7072_s21  ;;  %p7078_p3 = scmp.lt.s32.totalorder %s7072_s21, %s7072_s21 }
  0x70   :  { %p7079_p4 = por %p7078_p3, %p7077_p2 }
  0x72   :  { %p7080_p5 = pnand %p7079_p4, %p7073_p1 }
  0x74   :  { %7083 = shalt.err (!%p7080_p5)
}
  0x75   :  { %s7595_s1 = smov 4   ;;  %s7596_s24 = smov 64  }
  0x76   :  { %63 = dma.hbm_to_vmem [thread:$0]  %s7568_s3, 1024, %s7357_s26, [#allocation6], %s7596_s24, %s7596_s24, %s7595_s1  }
  0x77   :  { %s7194_s30 = smov [#allocation10]   ;;  %s7195_s0 = smov [#allocation13]  }
  0x78   :  { %s85_s13 = sshll.u32 %s7194_s30, 4  ;;  %s113_s18 = sshll.u32 %s7195_s0, 4  ;;  %s86_s13 = int_to_ptr.vmem [resolvable:$true] %s85_s13  ;;  %s7391_s18 = int_to_ptr.vmem [resolvable:$true] %s113_s18 }
  0x79   :  { %s7084_s19 = scalar_lea.hbm %s7572_s7, 16384 }
  0x7a   :  { %p7085_p6 = scmp.ne.s32.totalorder %s7572_s7, %s7084_s19  ;;  %p7088_p7 = scmp.lt.u32.totalorder %s7084_s19, %s7572_s7 }
  0x7c   :  { %p7090_p8 = pnand %p7088_p7, %p7085_p6 }
  0x7e   :  { %7093 = shalt.err (!%p7090_p8)
}
  0x7f   :  { %s7094_s3 = scalar_lea.vmem %s86_s13, 16384  ;;  %p7099_p10 = scmp.lt.s32.totalorder %s86_s13, %s86_s13 }
  0x80   :  { %p7095_p9 = scmp.ne.s32.totalorder %s86_s13, %s7094_s3  ;;  %p7100_p11 = scmp.lt.s32.totalorder %s7094_s3, %s7094_s3 }
  0x82   :  { %p7101_p12 = por %p7100_p11, %p7099_p10 }
  0x84   :  { %p7102_p13 = pnand %p7101_p12, %p7095_p9 }
  0x86   :  { %7105 = shalt.err (!%p7102_p13)
}
  0x87   :  { %91 = dma.hbm_to_vmem [thread:$0]  %s7572_s7, 16384, %s86_s13, [#allocation9], %s7188_s25, %s7188_s25, %s7189_s28  }
  0x88   :  { %s7106_s30 = scalar_lea.hbm %s7576_s11, 16384 }
  0x89   :  { %p7107_p0 = scmp.ne.s32.totalorder %s7576_s11, %s7106_s30  ;;  %p7110_p1 = scmp.lt.u32.totalorder %s7106_s30, %s7576_s11 }
  0x8b   :  { %p7112_p2 = pnand %p7110_p1, %p7107_p0 }
  0x8d   :  { %7115 = shalt.err (!%p7112_p2)
}
  0x8e   :  { %s7116_s5 = scalar_lea.vmem %s7391_s18, 16384  ;;  %p7121_p4 = scmp.lt.s32.totalorder %s7391_s18, %s7391_s18 }
  0x8f   :  { %p7117_p3 = scmp.ne.s32.totalorder %s7391_s18, %s7116_s5  ;;  %p7122_p5 = scmp.lt.s32.totalorder %s7116_s5, %s7116_s5 }
  0x91   :  { %p7123_p6 = por %p7122_p5, %p7121_p4 }
  0x93   :  { %p7124_p7 = pnand %p7123_p6, %p7117_p3 }
  0x95   :  { %7127 = shalt.err (!%p7124_p7)
}
  0x96   :  { %119 = dma.hbm_to_vmem [thread:$0]  %s7576_s11, 16384, %s7391_s18, [#allocation12], %s7188_s25, %s7188_s25, %s7189_s28  }
  0x97   :  { %s7196_s22 = smov [#allocation16]   ;;  %s7128_s26 = scalar_lea.hbm %s7580_s15, 4096 }
  0x98   :  { %s141_s23 = sshll.u32 %s7196_s22, 4  ;;  %p7129_p8 = scmp.ne.s32.totalorder %s7580_s15, %s7128_s26  ;;  %s142_s23 = int_to_ptr.vmem [resolvable:$true] %s141_s23 }
  0x99   :  { %p7132_p9 = scmp.lt.u32.totalorder %s7128_s26, %s7580_s15 }
  0x9b   :  { %p7134_p10 = pnand %p7132_p9, %p7129_p8 }
  0x9d   :  { %7137 = shalt.err (!%p7134_p10)
}
  0x9e   :  { %s7138_s0 = scalar_lea.vmem %s142_s23, 4096  ;;  %p7143_p12 = scmp.lt.s32.totalorder %s142_s23, %s142_s23 }
  0x9f   :  { %p7139_p11 = scmp.ne.s32.totalorder %s142_s23, %s7138_s0  ;;  %p7144_p13 = scmp.lt.s32.totalorder %s7138_s0, %s7138_s0 }
  0xa1   :  { %p7145_p0 = por %p7144_p13, %p7143_p12 }
  0xa3   :  { %p7146_p1 = pnand %p7145_p0, %p7139_p11 }
  0xa5   :  { %7149 = shalt.err (!%p7146_p1)
}
  0xa6   :  { %147 = dma.hbm_to_vmem [thread:$0]  %s7580_s15, 4096, %s142_s23, [#allocation15], %s7596_s24, %s7596_s24, %s7595_s1  }
  0xa7   :  { %7172 = dma.done.wait [#allocation3], 64  }
  0xa8   :  { %7173 = vsyncadd [#allocation3], 4294967232 }
  0xa9   :  { %7174 = dma.done.wait [#allocation6], 2048  }
  0xaa   :  { %7175 = vsyncadd [#allocation6], 4294965248 }
  0xab   :  { %7176 = dma.done.wait [#allocation9], 24576  }
  0xac   :  { %7177 = vsyncadd [#allocation9], 4294942720 }
  0xad   :  { %7178 = dma.done.wait [#allocation12], 32768  }
  0xae   :  { %7179 = vsyncadd [#allocation12], 4294934528 }
  0xaf   :  { %7180 = dma.done.wait [#allocation15], 20480  }
  0xb0   :  { %7181 = vsyncadd [#allocation15], 4294946816  ;;  %v7197_v0 = vmov 0.0   ;;  %vm7198_vm0 = vmmov 0   ;;  %v5995_v1 = vld [vmem:[#allocation5] sm:$0xff]   ;;  %v5996_v2 = vld [vmem:[#allocation5 + $0x8] sm:$0xff]  }
  0xb1   :  { %5891 = vmatprep.subr.bf16.mxu0 %v7197_v0  ;;  %5907 = vmatprep.mubr.msk.bf16.mxu0 %vm7198_vm0, %v7197_v0  ;;  %v5997_v3 = vld [vmem:[#allocation5 + $0x10] sm:$0xff]   ;;  %v6003_v4 = vld [vmem:[#allocation7] sm:$0xff]   ;;  %v5998_v5 = vld [vmem:[#allocation5 + $0x18] sm:$0xff]   ;;  %s7199_s7 = smov [#allocation17]  }
  0xb2   :  { %5911 = vmatprep.subr.bf16.mxu1 %v7197_v0  ;;  %5927 = vmatprep.mubr.msk.bf16.mxu1 %vm7198_vm0, %v7197_v0  ;;  %v6004_v6 = vld [vmem:[#allocation7 + $0x8] sm:$0xff]   ;;  %v5999_v7 = vld [vmem:[#allocation5 + $0x20] sm:$0xff]   ;;  %v6001_v9 = vld [vmem:[#allocation5 + $0x30] sm:$0xff]   ;;  %s5189_s13 = sshll.u32 %s7199_s7, 4  ;;  %s5190_s13 = int_to_ptr.vmem [resolvable:$true] %s5189_s13 }
  0xb3   :  { %5892 = vmatpush3.bf16.msra.mxu0 %v5995_v1  ;;  %5912 = vmatpush3.bf16.msra.mxu1 %v6003_v4  ;;  %v6000_v8 = vld [vmem:[#allocation5 + $0x28] sm:$0xff]   ;;  %v6002_v10 = vld [vmem:[#allocation5 + $0x38] sm:$0xff]   ;;  %v6005_v12 = vld [vmem:[#allocation7 + $0x10] sm:$0xff]   ;;  %s7150_s22 = scalar_lea.vmem %s5190_s13, 128  ;;  %p7155_p3 = scmp.lt.s32.totalorder %s5190_s13, %s5190_s13 }
  0xb4   :  { %5893 = vmatprep.subr.bf16.mxu0 %v7197_v0  ;;  %5913 = vmatprep.subr.bf16.mxu1 %v7197_v0  ;;  %v180_v11 = vld [vmem:[#allocation2] sm:$0xf]  ;;  %v6007_v14 = vld [vmem:[#allocation7 + $0x20] sm:$0xff]   ;;  %v6008_v15 = vld [vmem:[#allocation7 + $0x28] sm:$0xff]   ;;  %p7151_p2 = scmp.ne.s32.totalorder %s5190_s13, %s7150_s22  ;;  %p7156_p4 = scmp.lt.s32.totalorder %s7150_s22, %s7150_s22 }
  0xb5   :  { %v6006_v13 = vld [vmem:[#allocation7 + $0x18] sm:$0xff]   ;;  %v6009_v16 = vld [vmem:[#allocation7 + $0x30] sm:$0xff]  }
  0xb6   :  { %v6010_v17 = vld [vmem:[#allocation7 + $0x38] sm:$0xff]   ;;  %v6011_v18 = vld [vmem:[#allocation8] ss:$16 sps:$4 sm:$0xff]   ;;  %v6013_v19 = vld [vmem:[#allocation8 + $0x4] ss:$16 sps:$4 sm:$0xff]   ;;  %p7157_p5 = por %p7156_p4, %p7155_p3 }
  0xb7   :  { %5894 = vmatpush3.bf16.msra.mxu0 %v5996_v2  ;;  %5914 = vmatpush3.bf16.msra.mxu1 %v6004_v6  ;;  %v6016_v20 = vld [vmem:[#allocation8 + $0x24] ss:$16 sps:$4 sm:$0xff]   ;;  %v6014_v21 = vld [vmem:[#allocation8 + $0x20] ss:$16 sps:$4 sm:$0xff]   ;;  %v5202_v38 = vld [vmem:[%s7567_s2] ss:$0 sm:$0xff] }
  0xb8   :  { %5895 = vmatprep.subr.bf16.mxu0 %v7197_v0  ;;  %5915 = vmatprep.subr.bf16.mxu1 %v7197_v0  ;;  %v6019_v22 = vld [vmem:[#allocation8 + $0x44] ss:$16 sps:$4 sm:$0xff]   ;;  %v6017_v23 = vld [vmem:[#allocation8 + $0x40] ss:$16 sps:$4 sm:$0xff]   ;;  %v6049_v53 = vld [vmem:[#allocation8 + $0xc] ss:$16 sps:$4 sm:$0xff]   ;;  %p7158_p6 = pnand %p7157_p5, %p7151_p2 }
  0xb9   :  { %v6022_v24 = vld [vmem:[#allocation8 + $0x64] ss:$16 sps:$4 sm:$0xff]   ;;  %v6020_v25 = vld [vmem:[#allocation8 + $0x60] ss:$16 sps:$4 sm:$0xff]   ;;  %v6047_v55 = vld [vmem:[#allocation8 + $0x8] ss:$16 sps:$4 sm:$0xff]  }
  0xba   :  { %v6025_v26 = vld [vmem:[#allocation8 + $0x84] ss:$16 sps:$4 sm:$0xff]   ;;  %v6023_v27 = vld [vmem:[#allocation8 + $0x80] ss:$16 sps:$4 sm:$0xff]   ;;  %v6055_v57 = vld [vmem:[#allocation8 + $0x2c] ss:$16 sps:$4 sm:$0xff]  }
  0xbb   :  { %5896 = vmatpush3.bf16.msra.mxu0 %v5997_v3  ;;  %5916 = vmatpush3.bf16.msra.mxu1 %v6005_v12  ;;  %v6028_v28 = vld [vmem:[#allocation8 + $0xa4] ss:$16 sps:$4 sm:$0xff]   ;;  %v6026_v29 = vld [vmem:[#allocation8 + $0xa0] ss:$16 sps:$4 sm:$0xff]   ;;  %v6053_v59 = vld [vmem:[#allocation8 + $0x28] ss:$16 sps:$4 sm:$0xff]  }
  0xbc   :  { %5897 = vmatprep.subr.bf16.mxu0 %v7197_v0  ;;  %5917 = vmatprep.subr.bf16.mxu1 %v7197_v0  ;;  %v6031_v30 = vld [vmem:[#allocation8 + $0xc4] ss:$16 sps:$4 sm:$0xff]   ;;  %v6029_v31 = vld [vmem:[#allocation8 + $0xc0] ss:$16 sps:$4 sm:$0xff]   ;;  %v6061_v61 = vld [vmem:[#allocation8 + $0x4c] ss:$16 sps:$4 sm:$0xff]  }
  0xbd   :  { %v6034_v32 = vld [vmem:[#allocation8 + $0xe4] ss:$16 sps:$4 sm:$0xff]   ;;  %v6032_v33 = vld [vmem:[#allocation8 + $0xe0] ss:$16 sps:$4 sm:$0xff]   ;;  %v6059_v63 = vld [vmem:[#allocation8 + $0x48] ss:$16 sps:$4 sm:$0xff]  }
  0xbe   :  { %v6037_v34 = vld [vmem:[#allocation8 + $0x104] ss:$16 sps:$4 sm:$0xff]   ;;  %v6035_v35 = vld [vmem:[#allocation8 + $0x100] ss:$16 sps:$4 sm:$0xff]   ;;  %v6067_v1 = vld [vmem:[#allocation8 + $0x6c] ss:$16 sps:$4 sm:$0xff]  }
  0xbf   :  { %5898 = vmatpush3.bf16.msra.mxu0 %v5998_v5  ;;  %5918 = vmatpush3.bf16.msra.mxu1 %v6006_v13  ;;  %v6040_v36 = vld [vmem:[#allocation8 + $0x124] ss:$16 sps:$4 sm:$0xff]   ;;  %v6038_v37 = vld [vmem:[#allocation8 + $0x120] ss:$16 sps:$4 sm:$0xff]   ;;  %v6065_v3 = vld [vmem:[#allocation8 + $0x68] ss:$16 sps:$4 sm:$0xff]  }
  0xc0   :  { %5899 = vmatprep.subr.bf16.mxu0 %v7197_v0  ;;  %5919 = vmatprep.subr.bf16.mxu1 %v7197_v0  ;;  %v6043_v50 = vld [vmem:[#allocation8 + $0x144] ss:$16 sps:$4 sm:$0xff]   ;;  %v6041_v51 = vld [vmem:[#allocation8 + $0x140] ss:$16 sps:$4 sm:$0xff]   ;;  %v6073_v5 = vld [vmem:[#allocation8 + $0x8c] ss:$16 sps:$4 sm:$0xff]  }
  0xc1   :  { %v6046_v52 = vld [vmem:[#allocation8 + $0x164] ss:$16 sps:$4 sm:$0xff]   ;;  %v6044_v54 = vld [vmem:[#allocation8 + $0x160] ss:$16 sps:$4 sm:$0xff]   ;;  %v6082_v12 = vld [vmem:[#allocation8 + $0xec] ss:$16 sps:$4 sm:$0xff]  }
  0xc2   :  { %v6052_v56 = vld [vmem:[#allocation8 + $0x184] ss:$16 sps:$4 sm:$0xff]   ;;  %v6050_v58 = vld [vmem:[#allocation8 + $0x180] ss:$16 sps:$4 sm:$0xff]   ;;  %v6080_v13 = vld [vmem:[#allocation8 + $0xe8] ss:$16 sps:$4 sm:$0xff]  }
  0xc3   :  { %5900 = vmatpush3.bf16.msra.mxu0 %v5999_v7  ;;  %5920 = vmatpush3.bf16.msra.mxu1 %v6007_v14  ;;  %v6058_v60 = vld [vmem:[#allocation8 + $0x1a4] ss:$16 sps:$4 sm:$0xff]   ;;  %v6056_v62 = vld [vmem:[#allocation8 + $0x1a0] ss:$16 sps:$4 sm:$0xff]   ;;  %v6071_v7 = vld [vmem:[#allocation8 + $0x88] ss:$16 sps:$4 sm:$0xff]  }
  0xc4   :  { %5901 = vmatprep.subr.bf16.mxu0 %v7197_v0  ;;  %5921 = vmatprep.subr.bf16.mxu1 %v7197_v0  ;;  %v6062_v2 = vld [vmem:[#allocation8 + $0x1c0] ss:$16 sps:$4 sm:$0xff]   ;;  %v6070_v4 = vld [vmem:[#allocation8 + $0x1e4] ss:$16 sps:$4 sm:$0xff]   ;;  %v6085_v14 = vld [vmem:[#allocation8 + $0x10c] ss:$16 sps:$4 sm:$0xff]  }
  0xc5   :  { %v6068_v6 = vld [vmem:[#allocation8 + $0x1e0] ss:$16 sps:$4 sm:$0xff]  }
  0xc7   :  { %5902 = vmatpush3.bf16.msra.mxu0 %v6000_v8  ;;  %5922 = vmatpush3.bf16.msra.mxu1 %v6008_v15  ;;  %v6076_v8 = vld [vmem:[#allocation8 + $0xac] ss:$16 sps:$4 sm:$0xff]   ;;  %v6109_v15 = vld [vmem:[#allocation10 + $0x4] ss:$16 sps:$4 sm:$0xff]  }
  0xc8   :  { %5903 = vmatprep.subr.bf16.mxu0 %v7197_v0  ;;  %5923 = vmatprep.subr.bf16.mxu1 %v7197_v0 }
  0xcb   :  { %5904 = vmatpush3.bf16.msra.mxu0 %v6001_v9  ;;  %5924 = vmatpush3.bf16.msra.mxu1 %v6009_v16  ;;  %v6074_v9 = vld [vmem:[#allocation8 + $0xa8] ss:$16 sps:$4 sm:$0xff]  }
  0xcc   :  { %5905 = vmatprep.subr.bf16.mxu0 %v7197_v0  ;;  %5925 = vmatprep.subr.bf16.mxu1 %v7197_v0  ;;  %v6064_v0 = vld [vmem:[#allocation8 + $0x1c4] ss:$16 sps:$4 sm:$0xff]   ;;  %v6083_v16 = vld [vmem:[#allocation8 + $0x108] ss:$16 sps:$4 sm:$0xff]  }
  0xcf   :  { %5906 = vmatpush3.bf16.msra.mxu0 %v6002_v10  ;;  %5926 = vmatpush3.bf16.msra.mxu1 %v6010_v17  ;;  %v6079_v10 = vld [vmem:[#allocation8 + $0xcc] ss:$16 sps:$4 sm:$0xff]  }
  0xd0   :  { %821 = vmatprep.subr.bf16.mxu0 %v6013_v19  ;;  %862 = vmatprep.subr.bf16.mxu1 %v6049_v53  ;;  %v6088_v17 = vld [vmem:[#allocation8 + $0x12c] ss:$16 sps:$4 sm:$0xff]   ;;  %v6119_v53 = vld [vmem:[#allocation10 + $0x40] ss:$16 sps:$4 sm:$0xff]  }
  0xd1   :  { %v6091_v19 = vld [vmem:[#allocation8 + $0x14c] ss:$16 sps:$4 sm:$0xff]  }
  0xd2   :  { %5908 = vmatmul.mubr.bf16.vlgmr.msra.gmra.mrb[0].mxu0 %v180_v11  ;;  %v6077_v11 = vld [vmem:[#allocation8 + $0xc8] ss:$16 sps:$4 sm:$0xff]  }
  0xd3   :  { %822 = vmatpush1.bf16.msra.mxu0 %v6011_v18  ;;  %v6086_v18 = vld [vmem:[#allocation8 + $0x128] ss:$16 sps:$4 sm:$0xff]  }
  0xd4   :  { %823 = vmatprep.subr.bf16.mxu0 %v6016_v20  ;;  %v6089_v20 = vld [vmem:[#allocation8 + $0x148] ss:$16 sps:$4 sm:$0xff]  }
  0xd7   :  { %824 = vmatpush1.bf16.msra.mxu0 %v6014_v21  ;;  %v6094_v21 = vld [vmem:[#allocation8 + $0x16c] ss:$16 sps:$4 sm:$0xff]  }
  0xd8   :  { %825 = vmatprep.subr.bf16.mxu0 %v6019_v22  ;;  %v6092_v22 = vld [vmem:[#allocation8 + $0x168] ss:$16 sps:$4 sm:$0xff]  }
  0xdb   :  { %826 = vmatpush1.bf16.msra.mxu0 %v6017_v23  ;;  %v6097_v23 = vld [vmem:[#allocation8 + $0x18c] ss:$16 sps:$4 sm:$0xff]  }
  0xdc   :  { %827 = vmatprep.subr.bf16.mxu0 %v6022_v24  ;;  %v6095_v24 = vld [vmem:[#allocation8 + $0x188] ss:$16 sps:$4 sm:$0xff]  }
  0xdf   :  { %828 = vmatpush1.bf16.msra.mxu0 %v6020_v25  ;;  %v6100_v25 = vld [vmem:[#allocation8 + $0x1ac] ss:$16 sps:$4 sm:$0xff]  }
  0xe0   :  { %829 = vmatprep.subr.bf16.mxu0 %v6025_v26  ;;  %v6098_v26 = vld [vmem:[#allocation8 + $0x1a8] ss:$16 sps:$4 sm:$0xff]  }
  0xe3   :  { %830 = vmatpush1.bf16.msra.mxu0 %v6023_v27  ;;  %v6103_v27 = vld [vmem:[#allocation8 + $0x1cc] ss:$16 sps:$4 sm:$0xff]  }
  0xe4   :  { %831 = vmatprep.subr.bf16.mxu0 %v6028_v28  ;;  %v6101_v28 = vld [vmem:[#allocation8 + $0x1c8] ss:$16 sps:$4 sm:$0xff]  }
  0xe7   :  { %832 = vmatpush1.bf16.msra.mxu0 %v6026_v29  ;;  %v6106_v29 = vld [vmem:[#allocation8 + $0x1ec] ss:$16 sps:$4 sm:$0xff]  }
  0xe8   :  { %833 = vmatprep.subr.bf16.mxu0 %v6031_v30  ;;  %v6104_v30 = vld [vmem:[#allocation8 + $0x1e8] ss:$16 sps:$4 sm:$0xff]  }
  0xeb   :  { %834 = vmatpush1.bf16.msra.mxu0 %v6029_v31  ;;  %v6112_v31 = vld [vmem:[#allocation10 + $0xc] ss:$16 sps:$4 sm:$0xff]  }
  0xec   :  { %835 = vmatprep.subr.bf16.mxu0 %v6034_v32  ;;  %v5211_v32 = vld [vmem:[%s7569_s4] ss:$0 sm:$0xff] }
  0xef   :  { %836 = vmatpush1.bf16.msra.mxu0 %v6032_v33 }
  0xf0   :  { %837 = vmatprep.subr.bf16.mxu0 %v6037_v34 }
  0xf3   :  { %838 = vmatpush1.bf16.msra.mxu0 %v6035_v35 }
  0xf4   :  { %839 = vmatprep.subr.bf16.mxu0 %v6040_v36 }
  0xf7   :  { %840 = vmatpush1.bf16.msra.mxu0 %v6038_v37 }
  0xf8   :  { %841 = vmatprep.subr.bf16.mxu0 %v6043_v50  ;;  %v6116_v50 = vld [vmem:[#allocation10 + $0x28] ss:$16 sps:$4 sm:$0xff]  }
  0xfb   :  { %842 = vmatpush1.bf16.msra.mxu0 %v6041_v51  ;;  %v6121_v51 = vld [vmem:[#allocation10 + $0x44] ss:$16 sps:$4 sm:$0xff]  }
  0xfc   :  { %843 = vmatprep.subr.bf16.mxu0 %v6046_v52  ;;  %v6124_v52 = vld [vmem:[#allocation10 + $0x4c] ss:$16 sps:$4 sm:$0xff]  }
  0xff   :  { %844 = vmatpush1.bf16.msra.mxu0 %v6044_v54  ;;  %v6122_v54 = vld [vmem:[#allocation10 + $0x48] ss:$16 sps:$4 sm:$0xff]  }
 0x100   :  { %845 = vmatprep.subr.bf16.mxu0 %v6052_v56  ;;  %v6130_v56 = vld [vmem:[#allocation10 + $0x6c] ss:$16 sps:$4 sm:$0xff]  }
 0x103   :  { %846 = vmatpush1.bf16.msra.mxu0 %v6050_v58  ;;  %v6128_v58 = vld [vmem:[#allocation10 + $0x68] ss:$16 sps:$4 sm:$0xff]  }
 0x104   :  { %847 = vmatprep.subr.bf16.mxu0 %v6058_v60  ;;  %v6136_v60 = vld [vmem:[#allocation10 + $0x8c] ss:$16 sps:$4 sm:$0xff]  }
 0x107   :  { %848 = vmatpush1.bf16.msra.mxu0 %v6056_v62  ;;  %v6134_v62 = vld [vmem:[#allocation10 + $0x88] ss:$16 sps:$4 sm:$0xff]  }
 0x108   :  { %849 = vmatprep.subr.bf16.mxu0 %v6064_v0  ;;  %v6142_v0 = vld [vmem:[#allocation10 + $0xac] ss:$16 sps:$4 sm:$0xff]  }
 0x10b   :  { %850 = vmatpush1.bf16.msra.mxu0 %v6062_v2  ;;  %v6140_v2 = vld [vmem:[#allocation10 + $0xa8] ss:$16 sps:$4 sm:$0xff]  }
 0x10c   :  { %851 = vmatprep.subr.bf16.mxu0 %v6070_v4  ;;  %v6148_v4 = vld [vmem:[#allocation10 + $0xcc] ss:$16 sps:$4 sm:$0xff]  }
 0x10f   :  { %852 = vmatpush1.bf16.msra.mxu0 %v6068_v6  ;;  %v6146_v6 = vld [vmem:[#allocation10 + $0xc8] ss:$16 sps:$4 sm:$0xff]  }
 0x110   :  { %1717 = vmatprep.subr.bf16.mxu0 %v6109_v15  ;;  %v6163_v15 = vld [vmem:[#allocation10 + $0x124] ss:$16 sps:$4 sm:$0xff]  }
 0x1a5   :  { %v286_v39 = vpop.f32.mrb[0].mxu0 }
 0x1a6   :  { %v287_v40 = vadd.f32 %v5202_v38, %v286_v39  ;;  %v5909_v41 = vpop.f32.mrb[1].mxu0 }
 0x1a7   :  { %v289_v42 = vpop.f32.mrb[2].mxu0 }
 0x1a8   :  { %v292_v43 = vpack.c.bf16 %v287_v40, %v287_v40  ;;  %v5910_v44 = vpop.f32.mrb[3].mxu0 }
 0x1a9   :  { %v6107_v44 = vld [vmem:[#allocation10] ss:$16 sps:$4 sm:$0xff]  }
 0x1aa   :  { %v293_v45 = vmul.bf16 1056980736, %v292_v43 }
 0x1ac   :  { %6907 = vtanh.bf16 %v293_v45  ;;  %v6110_v45 = vld [vmem:[#allocation10 + $0x8] ss:$16 sps:$4 sm:$0xff]  }
 0x1b7   :  { %v6908_v46 = vpop.eup %6907 }
 0x1b8   :  { %v295_v47 = vadd.bf16 1065369472, %v6908_v46  ;;  %v6115_v46 = vld [vmem:[#allocation10 + $0x24] ss:$16 sps:$4 sm:$0xff]  }
 0x1ba   :  { %v296_v48 = vmul.bf16 1056980736, %v295_v47  ;;  %v6118_v47 = vld [vmem:[#allocation10 + $0x2c] ss:$16 sps:$4 sm:$0xff]  }
 0x1bc   :  { %v297_v49 = vmul.bf16 %v296_v48, %v292_v43  ;;  %v6951_v48 = vld [vmem:[#allocation2] sm:$0xf] }
 0x1be   :  { %5928 = vmatmul.mubr.bf16.vlgmr.msra.gmra.mrb[0].mxu1 %v297_v49  ;;  %v6113_v49 = vld [vmem:[#allocation10 + $0x20] ss:$16 sps:$4 sm:$0xff]  }
 0x1bf   :  { %863 = vmatpush1.bf16.msra.mxu1 %v6047_v55  ;;  %v6127_v55 = vld [vmem:[#allocation10 + $0x64] ss:$16 sps:$4 sm:$0xff]  }
 0x1c0   :  { %864 = vmatprep.subr.bf16.mxu1 %v6055_v57  ;;  %v6125_v57 = vld [vmem:[#allocation10 + $0x60] ss:$16 sps:$4 sm:$0xff]  }
 0x1c3   :  { %865 = vmatpush1.bf16.msra.mxu1 %v6053_v59  ;;  %v6133_v59 = vld [vmem:[#allocation10 + $0x84] ss:$16 sps:$4 sm:$0xff]  }
 0x1c4   :  { %866 = vmatprep.subr.bf16.mxu1 %v6061_v61  ;;  %v6131_v61 = vld [vmem:[#allocation10 + $0x80] ss:$16 sps:$4 sm:$0xff]  }
 0x1c7   :  { %867 = vmatpush1.bf16.msra.mxu1 %v6059_v63  ;;  %v6139_v63 = vld [vmem:[#allocation10 + $0xa4] ss:$16 sps:$4 sm:$0xff]  }
 0x1c8   :  { %868 = vmatprep.subr.bf16.mxu1 %v6067_v1  ;;  %v6137_v1 = vld [vmem:[#allocation10 + $0xa0] ss:$16 sps:$4 sm:$0xff]  }
 0x1cb   :  { %869 = vmatpush1.bf16.msra.mxu1 %v6065_v3  ;;  %v6145_v3 = vld [vmem:[#allocation10 + $0xc4] ss:$16 sps:$4 sm:$0xff]  }
 0x1cc   :  { %870 = vmatprep.subr.bf16.mxu1 %v6073_v5  ;;  %v6143_v5 = vld [vmem:[#allocation10 + $0xc0] ss:$16 sps:$4 sm:$0xff]  }
 0x1cf   :  { %871 = vmatpush1.bf16.msra.mxu1 %v6071_v7  ;;  %v6151_v7 = vld [vmem:[#allocation10 + $0xe4] ss:$16 sps:$4 sm:$0xff]  }
 0x1d0   :  { %872 = vmatprep.subr.bf16.mxu1 %v6076_v8  ;;  %v6154_v8 = vld [vmem:[#allocation10 + $0xec] ss:$16 sps:$4 sm:$0xff]  }
 0x1d3   :  { %873 = vmatpush1.bf16.msra.mxu1 %v6074_v9  ;;  %v6149_v9 = vld [vmem:[#allocation10 + $0xe0] ss:$16 sps:$4 sm:$0xff]  }
 0x1d4   :  { %874 = vmatprep.subr.bf16.mxu1 %v6079_v10  ;;  %v6152_v10 = vld [vmem:[#allocation10 + $0xe8] ss:$16 sps:$4 sm:$0xff]  }
 0x1d7   :  { %875 = vmatpush1.bf16.msra.mxu1 %v6077_v11  ;;  %v6157_v11 = vld [vmem:[#allocation10 + $0x104] ss:$16 sps:$4 sm:$0xff]  }
 0x1d8   :  { %876 = vmatprep.subr.bf16.mxu1 %v6082_v12  ;;  %v6160_v12 = vld [vmem:[#allocation10 + $0x10c] ss:$16 sps:$4 sm:$0xff]  }
 0x1db   :  { %877 = vmatpush1.bf16.msra.mxu1 %v6080_v13  ;;  %v6155_v13 = vld [vmem:[#allocation10 + $0x100] ss:$16 sps:$4 sm:$0xff]  }
 0x1dc   :  { %878 = vmatprep.subr.bf16.mxu1 %v6085_v14  ;;  %v6158_v14 = vld [vmem:[#allocation10 + $0x108] ss:$16 sps:$4 sm:$0xff]  }
 0x1df   :  { %879 = vmatpush1.bf16.msra.mxu1 %v6083_v16  ;;  %v6166_v16 = vld [vmem:[#allocation10 + $0x12c] ss:$16 sps:$4 sm:$0xff]  }
 0x1e0   :  { %880 = vmatprep.subr.bf16.mxu1 %v6088_v17  ;;  %v6161_v17 = vld [vmem:[#allocation10 + $0x120] ss:$16 sps:$4 sm:$0xff]  }
 0x1e3   :  { %881 = vmatpush1.bf16.msra.mxu1 %v6086_v18  ;;  %v6164_v18 = vld [vmem:[#allocation10 + $0x128] ss:$16 sps:$4 sm:$0xff]  }
 0x1e4   :  { %882 = vmatprep.subr.bf16.mxu1 %v6091_v19  ;;  %v6169_v19 = vld [vmem:[#allocation10 + $0x144] ss:$16 sps:$4 sm:$0xff]  }
 0x1e7   :  { %883 = vmatpush1.bf16.msra.mxu1 %v6089_v20  ;;  %v6172_v20 = vld [vmem:[#allocation10 + $0x14c] ss:$16 sps:$4 sm:$0xff]  }
 0x1e8   :  { %884 = vmatprep.subr.bf16.mxu1 %v6094_v21  ;;  %v6167_v21 = vld [vmem:[#allocation10 + $0x140] ss:$16 sps:$4 sm:$0xff]  }
 0x1eb   :  { %885 = vmatpush1.bf16.msra.mxu1 %v6092_v22  ;;  %v6170_v22 = vld [vmem:[#allocation10 + $0x148] ss:$16 sps:$4 sm:$0xff]  }
 0x1ec   :  { %886 = vmatprep.subr.bf16.mxu1 %v6097_v23  ;;  %v6175_v23 = vld [vmem:[#allocation10 + $0x164] ss:$16 sps:$4 sm:$0xff]  }
 0x1ef   :  { %887 = vmatpush1.bf16.msra.mxu1 %v6095_v24  ;;  %v6178_v24 = vld [vmem:[#allocation10 + $0x16c] ss:$16 sps:$4 sm:$0xff]  }
 0x1f0   :  { %888 = vmatprep.subr.bf16.mxu1 %v6100_v25  ;;  %v6173_v25 = vld [vmem:[#allocation10 + $0x160] ss:$16 sps:$4 sm:$0xff]  }
 0x1f3   :  { %889 = vmatpush1.bf16.msra.mxu1 %v6098_v26  ;;  %v6176_v26 = vld [vmem:[#allocation10 + $0x168] ss:$16 sps:$4 sm:$0xff]  }
 0x1f4   :  { %890 = vmatprep.subr.bf16.mxu1 %v6103_v27  ;;  %v6181_v27 = vld [vmem:[#allocation10 + $0x184] ss:$16 sps:$4 sm:$0xff]  }
 0x1f7   :  { %891 = vmatpush1.bf16.msra.mxu1 %v6101_v28  ;;  %v6184_v28 = vld [vmem:[#allocation10 + $0x18c] ss:$16 sps:$4 sm:$0xff]  }
 0x1f8   :  { %892 = vmatprep.subr.bf16.mxu1 %v6106_v29  ;;  %v6179_v29 = vld [vmem:[#allocation10 + $0x180] ss:$16 sps:$4 sm:$0xff]  }
 0x1fb   :  { %893 = vmatpush1.bf16.msra.mxu1 %v6104_v30  ;;  %v6182_v30 = vld [vmem:[#allocation10 + $0x188] ss:$16 sps:$4 sm:$0xff]  }
 0x1fc   :  { %1799 = vmatprep.subr.bf16.mxu1 %v6112_v31  ;;  %v6187_v31 = vld [vmem:[#allocation10 + $0x1a4] ss:$16 sps:$4 sm:$0xff]  }
 0x291   :  { %v403_v33 = vpop.f32.mrb[0].mxu1 }
 0x292   :  { %v404_v34 = vadd.f32 %v5211_v32, %v403_v33  ;;  %v5929_v35 = vpop.f32.mrb[1].mxu1  ;;  %v6190_v32 = vld [vmem:[#allocation10 + $0x1ac] ss:$16 sps:$4 sm:$0xff]   ;;  %v6185_v33 = vld [vmem:[#allocation10 + $0x1a0] ss:$16 sps:$4 sm:$0xff]  }
 0x293   :  { %v406_v36 = vpop.f32.mrb[2].mxu1  ;;  %v6193_v35 = vld [vmem:[#allocation10 + $0x1c4] ss:$16 sps:$4 sm:$0xff]  }
 0x294   :  { %v409_v37 = vpack.c.bf16 %v404_v34, %v404_v34  ;;  %v5930_v38 = vpop.f32.mrb[3].mxu1  ;;  %v6188_v34 = vld [vmem:[#allocation10 + $0x1a8] ss:$16 sps:$4 sm:$0xff]   ;;  %v6196_v36 = vld [vmem:[#allocation10 + $0x1cc] ss:$16 sps:$4 sm:$0xff]  }
 0x295   :  { %v6194_v38 = vld [vmem:[#allocation10 + $0x1c8] ss:$16 sps:$4 sm:$0xff]  }
 0x296   :  { %v410_v39 = vmul.bf16 1056980736, %v409_v37 }
 0x298   :  { %6909 = vtanh.bf16 %v410_v39  ;;  %v6199_v39 = vld [vmem:[#allocation10 + $0x1e4] ss:$16 sps:$4 sm:$0xff]  }
 0x2a3   :  { %v6910_v40 = vpop.eup %6909 }
 0x2a4   :  { %v412_v41 = vadd.bf16 1065369472, %v6910_v40  ;;  %v6202_v40 = vld [vmem:[#allocation10 + $0x1ec] ss:$16 sps:$4 sm:$0xff]  }
 0x2a6   :  { %v413_v42 = vmul.bf16 1056980736, %v412_v41  ;;  %v6197_v41 = vld [vmem:[#allocation10 + $0x1e0] ss:$16 sps:$4 sm:$0xff]  }
 0x2a8   :  { %v414_v43 = vmul.bf16 %v413_v42, %v409_v37  ;;  %v6191_v37 = vld [vmem:[#allocation10 + $0x1c0] ss:$16 sps:$4 sm:$0xff]   ;;  %v6200_v42 = vld [vmem:[#allocation10 + $0x1e8] ss:$16 sps:$4 sm:$0xff]  }
 0x2aa   :  { %853 = vmatprep.mubr.bf16.mxu0 %v414_v43  ;;  %894 = vmatprep.mubr.bf16.mxu1 %v414_v43  ;;  %v6205_v43 = vld [vmem:[#allocation10 + $0x204] ss:$16 sps:$4 sm:$0xff]  }
 0x2ab   :  { %854 = vmatmul.mubr.bf16.vlgmr.msra.gmra.mrb[4].mxu0 %v6951_v48  ;;  %895 = vmatmul.mubr.bf16.vlgmr.msra.gmra.mrb[4].mxu1 %v6951_v48  ;;  %v7457_v48 = vld [vmem:[%s7571_s6] sm:$0xf] }
 0x2ac   :  { %1718 = vmatpush1.bf16.msra.mxu0 %v6107_v44  ;;  %1800 = vmatpush1.bf16.msra.mxu1 %v6110_v45  ;;  %v6208_v44 = vld [vmem:[#allocation10 + $0x20c] ss:$16 sps:$4 sm:$0xff]   ;;  %v481_v45 = vlaneseq }
 0x2ad   :  { %1719 = vmatprep.subr.bf16.mxu0 %v6115_v46  ;;  %1801 = vmatprep.subr.bf16.mxu1 %v6118_v47 }
 0x2ae   :  { %v7449_v46 = vshrl.u32 %v481_v45, 7  ;;  %v6242_v45 = vld [vmem:[#allocation10 + $0x2c8] ss:$16 sps:$4 sm:$0xff]  }
 0x2b0   :  { %1720 = vmatpush1.bf16.msra.mxu0 %v6113_v49  ;;  %1802 = vmatpush1.bf16.msra.mxu1 %v6116_v50  ;;  %v7452_v47 = vsub.s32 0, %v7449_v46  ;;  %v7460_v49 = vsub.s32 1, %v7449_v46  ;;  %v7463_v50 = vsub.s32 3, %v7449_v46 }
 0x2b1   :  { %1721 = vmatprep.subr.bf16.mxu0 %v6121_v51  ;;  %1803 = vmatprep.subr.bf16.mxu1 %v6124_v52 }
 0x2b2   :  { %v484_v51 = vrot.slane %v7457_v48, %v7452_v47  ;;  %v488_v52 = vrot.slane %v7457_v48, %v7460_v49 }
 0x2b4   :  { %1722 = vmatpush1.bf16.msra.mxu0 %v6119_v53  ;;  %1804 = vmatpush1.bf16.msra.mxu1 %v6122_v54  ;;  %v496_v53 = vrot.slane %v7457_v48, %v7463_v50 }
 0x2b5   :  { %1723 = vmatprep.subr.bf16.mxu0 %v6127_v55  ;;  %1805 = vmatprep.subr.bf16.mxu1 %v6130_v56 }
 0x2b8   :  { %1724 = vmatpush1.bf16.msra.mxu0 %v6125_v57  ;;  %1806 = vmatpush1.bf16.msra.mxu1 %v6128_v58 }
 0x2b9   :  { %1725 = vmatprep.subr.bf16.mxu0 %v6133_v59  ;;  %1807 = vmatprep.subr.bf16.mxu1 %v6136_v60 }
 0x2bc   :  { %1726 = vmatpush1.bf16.msra.mxu0 %v6131_v61  ;;  %1808 = vmatpush1.bf16.msra.mxu1 %v6134_v62 }
 0x2bd   :  { %1727 = vmatprep.subr.bf16.mxu0 %v6139_v63  ;;  %1809 = vmatprep.subr.bf16.mxu1 %v6142_v0 }
 0x2c0   :  { %1728 = vmatpush1.bf16.msra.mxu0 %v6137_v1  ;;  %1810 = vmatpush1.bf16.msra.mxu1 %v6140_v2 }
 0x2c1   :  { %1729 = vmatprep.subr.bf16.mxu0 %v6145_v3  ;;  %1811 = vmatprep.subr.bf16.mxu1 %v6148_v4 }
 0x2c4   :  { %1730 = vmatpush1.bf16.msra.mxu0 %v6143_v5  ;;  %1812 = vmatpush1.bf16.msra.mxu1 %v6146_v6 }
 0x2c5   :  { %1731 = vmatprep.subr.bf16.mxu0 %v6151_v7  ;;  %1813 = vmatprep.subr.bf16.mxu1 %v6154_v8 }
 0x2c8   :  { %1732 = vmatpush1.bf16.msra.mxu0 %v6149_v9  ;;  %1814 = vmatpush1.bf16.msra.mxu1 %v6152_v10 }
 0x2c9   :  { %1733 = vmatprep.subr.bf16.mxu0 %v6157_v11  ;;  %1815 = vmatprep.subr.bf16.mxu1 %v6160_v12 }
 0x2cc   :  { %1734 = vmatpush1.bf16.msra.mxu0 %v6155_v13  ;;  %1816 = vmatpush1.bf16.msra.mxu1 %v6158_v14 }
 0x2cd   :  { %1735 = vmatprep.subr.bf16.mxu0 %v6163_v15  ;;  %1817 = vmatprep.subr.bf16.mxu1 %v6166_v16  ;;  %v6203_v16 = vld [vmem:[#allocation10 + $0x200] ss:$16 sps:$4 sm:$0xff]  }
 0x2d0   :  { %1736 = vmatpush1.bf16.msra.mxu0 %v6161_v17  ;;  %1818 = vmatpush1.bf16.msra.mxu1 %v6164_v18  ;;  %v6206_v17 = vld [vmem:[#allocation10 + $0x208] ss:$16 sps:$4 sm:$0xff]  }
 0x2d1   :  { %1737 = vmatprep.subr.bf16.mxu0 %v6169_v19  ;;  %1819 = vmatprep.subr.bf16.mxu1 %v6172_v20  ;;  %v6211_v20 = vld [vmem:[#allocation10 + $0x224] ss:$16 sps:$4 sm:$0xff]  }
 0x2d4   :  { %1738 = vmatpush1.bf16.msra.mxu0 %v6167_v21  ;;  %1820 = vmatpush1.bf16.msra.mxu1 %v6170_v22  ;;  %v6214_v21 = vld [vmem:[#allocation10 + $0x22c] ss:$16 sps:$4 sm:$0xff]  }
 0x2d5   :  { %1739 = vmatprep.subr.bf16.mxu0 %v6175_v23  ;;  %1821 = vmatprep.subr.bf16.mxu1 %v6178_v24  ;;  %v6209_v23 = vld [vmem:[#allocation10 + $0x220] ss:$16 sps:$4 sm:$0xff]   ;;  %v6212_v24 = vld [vmem:[#allocation10 + $0x228] ss:$16 sps:$4 sm:$0xff]  }
 0x2d8   :  { %1740 = vmatpush1.bf16.msra.mxu0 %v6173_v25  ;;  %1822 = vmatpush1.bf16.msra.mxu1 %v6176_v26  ;;  %v6217_v25 = vld [vmem:[#allocation10 + $0x244] ss:$16 sps:$4 sm:$0xff]   ;;  %v6220_v26 = vld [vmem:[#allocation10 + $0x24c] ss:$16 sps:$4 sm:$0xff]  }
 0x2d9   :  { %1741 = vmatprep.subr.bf16.mxu0 %v6181_v27  ;;  %1823 = vmatprep.subr.bf16.mxu1 %v6184_v28  ;;  %v6215_v27 = vld [vmem:[#allocation10 + $0x240] ss:$16 sps:$4 sm:$0xff]   ;;  %v6218_v28 = vld [vmem:[#allocation10 + $0x248] ss:$16 sps:$4 sm:$0xff]  }
 0x2dc   :  { %1742 = vmatpush1.bf16.msra.mxu0 %v6179_v29  ;;  %1824 = vmatpush1.bf16.msra.mxu1 %v6182_v30  ;;  %v6223_v29 = vld [vmem:[#allocation10 + $0x264] ss:$16 sps:$4 sm:$0xff]   ;;  %v6226_v30 = vld [vmem:[#allocation10 + $0x26c] ss:$16 sps:$4 sm:$0xff]  }
 0x2dd   :  { %1743 = vmatprep.subr.bf16.mxu0 %v6187_v31  ;;  %1825 = vmatprep.subr.bf16.mxu1 %v6190_v32  ;;  %v6221_v31 = vld [vmem:[#allocation10 + $0x260] ss:$16 sps:$4 sm:$0xff]   ;;  %v6224_v32 = vld [vmem:[#allocation10 + $0x268] ss:$16 sps:$4 sm:$0xff]  }
 0x2e0   :  { %1744 = vmatpush1.bf16.msra.mxu0 %v6185_v33  ;;  %1826 = vmatpush1.bf16.msra.mxu1 %v6188_v34  ;;  %v6229_v33 = vld [vmem:[#allocation10 + $0x284] ss:$16 sps:$4 sm:$0xff]   ;;  %v6232_v34 = vld [vmem:[#allocation10 + $0x28c] ss:$16 sps:$4 sm:$0xff]  }
 0x2e1   :  { %1745 = vmatprep.subr.bf16.mxu0 %v6193_v35  ;;  %1827 = vmatprep.subr.bf16.mxu1 %v6196_v36  ;;  %v6227_v35 = vld [vmem:[#allocation10 + $0x280] ss:$16 sps:$4 sm:$0xff]   ;;  %v6230_v36 = vld [vmem:[#allocation10 + $0x288] ss:$16 sps:$4 sm:$0xff]  }
 0x2e4   :  { %1746 = vmatpush1.bf16.msra.mxu0 %v6191_v37  ;;  %1828 = vmatpush1.bf16.msra.mxu1 %v6194_v38  ;;  %v6235_v37 = vld [vmem:[#allocation10 + $0x2a4] ss:$16 sps:$4 sm:$0xff]   ;;  %v6238_v38 = vld [vmem:[#allocation10 + $0x2ac] ss:$16 sps:$4 sm:$0xff]  }
 0x2e5   :  { %1747 = vmatprep.subr.bf16.mxu0 %v6199_v39  ;;  %1829 = vmatprep.subr.bf16.mxu1 %v6202_v40  ;;  %v6233_v39 = vld [vmem:[#allocation10 + $0x2a0] ss:$16 sps:$4 sm:$0xff]   ;;  %v6236_v40 = vld [vmem:[#allocation10 + $0x2a8] ss:$16 sps:$4 sm:$0xff]  }
 0x2e8   :  { %1748 = vmatpush1.bf16.msra.mxu0 %v6197_v41  ;;  %1830 = vmatpush1.bf16.msra.mxu1 %v6200_v42  ;;  %v6241_v41 = vld [vmem:[#allocation10 + $0x2c4] ss:$16 sps:$4 sm:$0xff]   ;;  %v6244_v42 = vld [vmem:[#allocation10 + $0x2cc] ss:$16 sps:$4 sm:$0xff]  }
 0x2e9   :  { %1758 = vmatprep.subr.bf16.mxu0 %v6205_v43  ;;  %1840 = vmatprep.subr.bf16.mxu1 %v6208_v44  ;;  %v7474_v43 = vsub.s32 2, %v7449_v46  ;;  %v6239_v44 = vld [vmem:[#allocation10 + $0x2c0] ss:$16 sps:$4 sm:$0xff]   ;;  %v6256_v46 = vld [vmem:[#allocation10 + $0x30c] ss:$16 sps:$4 sm:$0xff]  }
 0x37e   :  { %v855_v54 = vpop.f32.mrb[4].mxu0  ;;  %v7471_v55 = vpop.f32.mrb[4].mxu1 }
 0x37f   :  { %v856_v56 = vadd.f32 %v855_v54, %v484_v51  ;;  %v857_v57 = vpop.f32.mrb[5].mxu0  ;;  %v898_v58 = vpop.f32.mrb[5].mxu1  ;;  %v6247_v51 = vld [vmem:[#allocation10 + $0x2e4] ss:$16 sps:$4 sm:$0xff]   ;;  %v6245_v54 = vld [vmem:[#allocation10 + $0x2e0] ss:$16 sps:$4 sm:$0xff]  }
 0x380   :  { %v858_v59 = vadd.f32 %v857_v57, %v488_v52  ;;  %v859_v60 = vpop.f32.mrb[6].mxu0  ;;  %v899_v61 = vadd.f32 %v898_v58, %v496_v53  ;;  %v900_v62 = vpop.f32.mrb[6].mxu1  ;;  %v6250_v52 = vld [vmem:[#allocation10 + $0x2ec] ss:$16 sps:$4 sm:$0xff]   ;;  %v492_v53 = vrot.slane %v7457_v48, %v7474_v43  ;;  %v6253_v57 = vld [vmem:[#allocation10 + $0x304] ss:$16 sps:$4 sm:$0xff]  }
 0x381   :  { %v903_v63 = vpack.c.bf16 %v856_v56, %v856_v56  ;;  %v860_v0 = vpop.f32.mrb[7].mxu0  ;;  %v901_v1 = vpop.f32.mrb[7].mxu1  ;;  %v6248_v56 = vld [vmem:[#allocation10 + $0x2e8] ss:$16 sps:$4 sm:$0xff]   ;;  %v6262_v62 = vld [vmem:[#allocation10 + $0x32c] ss:$16 sps:$4 sm:$0xff]  }
 0x382   :  { %v904_v2 = vpack.c.bf16 %v858_v59, %v858_v59  ;;  %v906_v3 = vpack.c.bf16 %v899_v61, %v899_v61  ;;  %v897_v58 = vadd.f32 %v7471_v55, %v492_v53  ;;  %v6251_v59 = vld [vmem:[#allocation10 + $0x300] ss:$16 sps:$4 sm:$0xff]   ;;  %v6254_v60 = vld [vmem:[#allocation10 + $0x308] ss:$16 sps:$4 sm:$0xff]   ;;  %v6259_v61 = vld [vmem:[#allocation10 + $0x324] ss:$16 sps:$4 sm:$0xff]  }
 0x383   :  { %v907_v4 = vmul.bf16 1056980736, %v903_v63  ;;  %v6257_v48 = vld [vmem:[#allocation10 + $0x320] ss:$16 sps:$4 sm:$0xff]   ;;  %v6260_v0 = vld [vmem:[#allocation10 + $0x328] ss:$16 sps:$4 sm:$0xff]  }
 0x384   :  { %v908_v5 = vmul.bf16 1056980736, %v904_v2  ;;  %v910_v6 = vmul.bf16 1056980736, %v906_v3  ;;  %v6265_v1 = vld [vmem:[#allocation10 + $0x344] ss:$16 sps:$4 sm:$0xff]  }
 0x385   :  { %6911 = vtanh.bf16 %v907_v4  ;;  %v6266_v4 = vld [vmem:[#allocation10 + $0x348] ss:$16 sps:$4 sm:$0xff]   ;;  %v6323_v53 = vld [vmem:[#allocation11 + $0x80] ss:$16 sps:$4 sm:$0xff]  }
 0x386   :  { %6913 = vtanh.bf16 %v908_v5  ;;  %v6271_v5 = vld [vmem:[#allocation10 + $0x364] ss:$16 sps:$4 sm:$0xff]  }
 0x387   :  { %6915 = vtanh.bf16 %v910_v6  ;;  %v6274_v6 = vld [vmem:[#allocation10 + $0x36c] ss:$16 sps:$4 sm:$0xff]  }
 0x390   :  { %v6912_v7 = vpop.eup %6911 }
 0x391   :  { %v6914_v8 = vpop.eup %6913  ;;  %v915_v9 = vadd.bf16 1065369472, %v6912_v7  ;;  %v6269_v7 = vld [vmem:[#allocation10 + $0x360] ss:$16 sps:$4 sm:$0xff]  }
 0x392   :  { %v916_v10 = vadd.bf16 1065369472, %v6914_v8  ;;  %v6916_v11 = vpop.eup %6915  ;;  %v6272_v8 = vld [vmem:[#allocation10 + $0x368] ss:$16 sps:$4 sm:$0xff]  }
 0x393   :  { %v919_v12 = vmul.bf16 1056980736, %v915_v9  ;;  %v918_v14 = vadd.bf16 1065369472, %v6916_v11  ;;  %v6277_v9 = vld [vmem:[#allocation10 + $0x384] ss:$16 sps:$4 sm:$0xff]  }
 0x394   :  { %v920_v13 = vmul.bf16 1056980736, %v916_v10  ;;  %v6280_v10 = vld [vmem:[#allocation10 + $0x38c] ss:$16 sps:$4 sm:$0xff]   ;;  %v6275_v11 = vld [vmem:[#allocation10 + $0x380] ss:$16 sps:$4 sm:$0xff]  }
 0x395   :  { %v922_v18 = vmul.bf16 1056980736, %v918_v14  ;;  %v923_v19 = vmul.bf16 %v919_v12, %v903_v63  ;;  %v7479_v63 = vpack.c.bf16 %v897_v58, %v897_v58  ;;  %v6278_v12 = vld [vmem:[#allocation10 + $0x388] ss:$16 sps:$4 sm:$0xff]   ;;  %v6286_v14 = vld [vmem:[#allocation10 + $0x3ac] ss:$16 sps:$4 sm:$0xff]  }
 0x396   :  { %v924_v15 = vmul.bf16 %v920_v13, %v904_v2  ;;  %v6268_v2 = vld [vmem:[#allocation10 + $0x34c] ss:$16 sps:$4 sm:$0xff]   ;;  %v6283_v13 = vld [vmem:[#allocation10 + $0x3a4] ss:$16 sps:$4 sm:$0xff]   ;;  %v6332_v58 = vld [vmem:[#allocation11 + $0xa8] ss:$16 sps:$4 sm:$0xff]  }
 0x397   :  { %v926_v22 = vmul.bf16 %v922_v18, %v906_v3  ;;  %v909_v55 = vmul.bf16 1056980736, %v7479_v63  ;;  %v6263_v3 = vld [vmem:[#allocation10 + $0x340] ss:$16 sps:$4 sm:$0xff]   ;;  %v6292_v18 = vld [vmem:[#allocation10 + $0x3cc] ss:$16 sps:$4 sm:$0xff]  }
 0x398   :  { %1749 = vmatprep.mubr.bf16.mxu0 %v924_v15  ;;  %1831 = vmatprep.mubr.bf16.mxu1 %v924_v15  ;;  %v6281_v15 = vld [vmem:[#allocation10 + $0x3a0] ss:$16 sps:$4 sm:$0xff]  }
 0x399   :  { %1750 = vmatmul.mubr.bf16.vlgmr.msra.gmra.mrb[8].mxu0 %v923_v19  ;;  %1832 = vmatmul.mubr.bf16.vlgmr.msra.gmra.mrb[8].mxu1 %v923_v19  ;;  %6917 = vtanh.bf16 %v909_v55  ;;  %v6352_v55 = vld [vmem:[#allocation11 + $0x10c] ss:$16 sps:$4 sm:$0xff]  }
 0x39a   :  { %1759 = vmatpush1.bf16.msra.mxu0 %v6203_v16  ;;  %1841 = vmatpush1.bf16.msra.mxu1 %v6206_v17  ;;  %v6284_v16 = vld [vmem:[#allocation10 + $0x3a8] ss:$16 sps:$4 sm:$0xff]   ;;  %v6289_v17 = vld [vmem:[#allocation10 + $0x3c4] ss:$16 sps:$4 sm:$0xff]  }
 0x39b   :  { %1760 = vmatprep.subr.bf16.mxu0 %v6211_v20  ;;  %1842 = vmatprep.subr.bf16.mxu1 %v6214_v21  ;;  %v6287_v20 = vld [vmem:[#allocation10 + $0x3c0] ss:$16 sps:$4 sm:$0xff]   ;;  %v6290_v21 = vld [vmem:[#allocation10 + $0x3c8] ss:$16 sps:$4 sm:$0xff]  }
 0x39c   :  { %1790 = vmatprep.mubr.bf16.mxu0 %v926_v22  ;;  %1872 = vmatprep.mubr.bf16.mxu1 %v926_v22 }
 0x39e   :  { %1761 = vmatpush1.bf16.msra.mxu0 %v6209_v23  ;;  %1843 = vmatpush1.bf16.msra.mxu1 %v6212_v24  ;;  %v6295_v23 = vld [vmem:[#allocation10 + $0x3e4] ss:$16 sps:$4 sm:$0xff]   ;;  %v6298_v24 = vld [vmem:[#allocation10 + $0x3ec] ss:$16 sps:$4 sm:$0xff]  }
 0x39f   :  { %1762 = vmatprep.subr.bf16.mxu0 %v6217_v25  ;;  %1844 = vmatprep.subr.bf16.mxu1 %v6220_v26  ;;  %v6293_v25 = vld [vmem:[#allocation10 + $0x3e0] ss:$16 sps:$4 sm:$0xff]   ;;  %v6296_v26 = vld [vmem:[#allocation10 + $0x3e8] ss:$16 sps:$4 sm:$0xff]  }
 0x3a2   :  { %1763 = vmatpush1.bf16.msra.mxu0 %v6215_v27  ;;  %1845 = vmatpush1.bf16.msra.mxu1 %v6218_v28  ;;  %v6301_v28 = vld [vmem:[#allocation11 + $0x4] ss:$16 sps:$4 sm:$0xff]  }
 0x3a3   :  { %1764 = vmatprep.subr.bf16.mxu0 %v6223_v29  ;;  %1846 = vmatprep.subr.bf16.mxu1 %v6226_v30  ;;  %v6304_v29 = vld [vmem:[#allocation11 + $0xc] ss:$16 sps:$4 sm:$0xff]   ;;  %v6299_v30 = vld [vmem:[#allocation11] ss:$16 sps:$4 sm:$0xff]  }
 0x3a4   :  { %v6918_v19 = vpop.eup %6917 }
 0x3a5   :  { %v917_v22 = vadd.bf16 1065369472, %v6918_v19  ;;  %v6371_v19 = vld [vmem:[#allocation11 + $0x180] ss:$16 sps:$4 sm:$0xff]  }
 0x3a6   :  { %1765 = vmatpush1.bf16.msra.mxu0 %v6221_v31  ;;  %1847 = vmatpush1.bf16.msra.mxu1 %v6224_v32  ;;  %v6302_v31 = vld [vmem:[#allocation11 + $0x8] ss:$16 sps:$4 sm:$0xff]  }
 0x3a7   :  { %1766 = vmatprep.subr.bf16.mxu0 %v6229_v33  ;;  %1848 = vmatprep.subr.bf16.mxu1 %v6232_v34  ;;  %v921_v27 = vmul.bf16 1056980736, %v917_v22  ;;  %v6307_v33 = vld [vmem:[#allocation11 + $0x24] ss:$16 sps:$4 sm:$0xff]   ;;  %v6310_v34 = vld [vmem:[#allocation11 + $0x2c] ss:$16 sps:$4 sm:$0xff]  }
 0x3a8   :  { %v6382_v22 = vld [vmem:[#allocation11 + $0x1ac] ss:$16 sps:$4 sm:$0xff]  }
 0x3a9   :  { %v925_v32 = vmul.bf16 %v921_v27, %v7479_v63  ;;  %v6343_v63 = vld [vmem:[#allocation11 + $0xe4] ss:$16 sps:$4 sm:$0xff]   ;;  %v6383_v27 = vld [vmem:[#allocation11 + $0x1c0] ss:$16 sps:$4 sm:$0xff]  }
 0x3aa   :  { %1767 = vmatpush1.bf16.msra.mxu0 %v6227_v35  ;;  %1849 = vmatpush1.bf16.msra.mxu1 %v6230_v36  ;;  %v6305_v35 = vld [vmem:[#allocation11 + $0x20] ss:$16 sps:$4 sm:$0xff]   ;;  %v6308_v36 = vld [vmem:[#allocation11 + $0x28] ss:$16 sps:$4 sm:$0xff]  }
 0x3ab   :  { %1768 = vmatprep.subr.bf16.mxu0 %v6235_v37  ;;  %1850 = vmatprep.subr.bf16.mxu1 %v6238_v38  ;;  %v6313_v37 = vld [vmem:[#allocation11 + $0x44] ss:$16 sps:$4 sm:$0xff]   ;;  %v6316_v38 = vld [vmem:[#allocation11 + $0x4c] ss:$16 sps:$4 sm:$0xff]  }
 0x3ae   :  { %1769 = vmatpush1.bf16.msra.mxu0 %v6233_v39  ;;  %1851 = vmatpush1.bf16.msra.mxu1 %v6236_v40  ;;  %v6311_v39 = vld [vmem:[#allocation11 + $0x40] ss:$16 sps:$4 sm:$0xff]   ;;  %v6314_v40 = vld [vmem:[#allocation11 + $0x48] ss:$16 sps:$4 sm:$0xff]  }
 0x3af   :  { %1770 = vmatprep.subr.bf16.mxu0 %v6241_v41  ;;  %1852 = vmatprep.subr.bf16.mxu1 %v6244_v42  ;;  %v6319_v41 = vld [vmem:[#allocation11 + $0x64] ss:$16 sps:$4 sm:$0xff]   ;;  %v6322_v42 = vld [vmem:[#allocation11 + $0x6c] ss:$16 sps:$4 sm:$0xff]  }
 0x3b2   :  { %1771 = vmatpush1.bf16.msra.mxu0 %v6239_v44  ;;  %1853 = vmatpush1.bf16.msra.mxu1 %v6242_v45  ;;  %v6317_v44 = vld [vmem:[#allocation11 + $0x60] ss:$16 sps:$4 sm:$0xff]   ;;  %v6320_v45 = vld [vmem:[#allocation11 + $0x68] ss:$16 sps:$4 sm:$0xff]  }
 0x3b3   :  { %1772 = vmatprep.subr.bf16.mxu0 %v6247_v51  ;;  %1854 = vmatprep.subr.bf16.mxu1 %v6250_v52  ;;  %v6325_v51 = vld [vmem:[#allocation11 + $0x84] ss:$16 sps:$4 sm:$0xff]   ;;  %v6328_v52 = vld [vmem:[#allocation11 + $0x8c] ss:$16 sps:$4 sm:$0xff]  }
 0x3b6   :  { %1773 = vmatpush1.bf16.msra.mxu0 %v6245_v54  ;;  %1855 = vmatpush1.bf16.msra.mxu1 %v6248_v56  ;;  %v6326_v54 = vld [vmem:[#allocation11 + $0x88] ss:$16 sps:$4 sm:$0xff]   ;;  %v6331_v56 = vld [vmem:[#allocation11 + $0xa4] ss:$16 sps:$4 sm:$0xff]  }
 0x3b7   :  { %1774 = vmatprep.subr.bf16.mxu0 %v6253_v57  ;;  %1856 = vmatprep.subr.bf16.mxu1 %v6256_v46  ;;  %v6334_v57 = vld [vmem:[#allocation11 + $0xac] ss:$16 sps:$4 sm:$0xff]   ;;  %v6329_v46 = vld [vmem:[#allocation11 + $0xa0] ss:$16 sps:$4 sm:$0xff]  }
 0x3ba   :  { %1775 = vmatpush1.bf16.msra.mxu0 %v6251_v59  ;;  %1857 = vmatpush1.bf16.msra.mxu1 %v6254_v60  ;;  %v6337_v59 = vld [vmem:[#allocation11 + $0xc4] ss:$16 sps:$4 sm:$0xff]   ;;  %v6340_v60 = vld [vmem:[#allocation11 + $0xcc] ss:$16 sps:$4 sm:$0xff]  }
 0x3bb   :  { %1776 = vmatprep.subr.bf16.mxu0 %v6259_v61  ;;  %1858 = vmatprep.subr.bf16.mxu1 %v6262_v62  ;;  %v6335_v61 = vld [vmem:[#allocation11 + $0xc0] ss:$16 sps:$4 sm:$0xff]   ;;  %v6338_v62 = vld [vmem:[#allocation11 + $0xc8] ss:$16 sps:$4 sm:$0xff]  }
 0x3be   :  { %1777 = vmatpush1.bf16.msra.mxu0 %v6257_v48  ;;  %1859 = vmatpush1.bf16.msra.mxu1 %v6260_v0  ;;  %v6346_v48 = vld [vmem:[#allocation11 + $0xec] ss:$16 sps:$4 sm:$0xff]   ;;  %v6341_v0 = vld [vmem:[#allocation11 + $0xe0] ss:$16 sps:$4 sm:$0xff]  }
 0x3bf   :  { %1778 = vmatprep.subr.bf16.mxu0 %v6265_v1  ;;  %1860 = vmatprep.subr.bf16.mxu1 %v6268_v2  ;;  %v6344_v1 = vld [vmem:[#allocation11 + $0xe8] ss:$16 sps:$4 sm:$0xff]   ;;  %v6349_v2 = vld [vmem:[#allocation11 + $0x104] ss:$16 sps:$4 sm:$0xff]  }
 0x3c2   :  { %1779 = vmatpush1.bf16.msra.mxu0 %v6263_v3  ;;  %1861 = vmatpush1.bf16.msra.mxu1 %v6266_v4  ;;  %v6347_v3 = vld [vmem:[#allocation11 + $0x100] ss:$16 sps:$4 sm:$0xff]   ;;  %v6350_v4 = vld [vmem:[#allocation11 + $0x108] ss:$16 sps:$4 sm:$0xff]  }
 0x3c3   :  { %1780 = vmatprep.subr.bf16.mxu0 %v6271_v5  ;;  %1862 = vmatprep.subr.bf16.mxu1 %v6274_v6  ;;  %v6355_v5 = vld [vmem:[#allocation11 + $0x124] ss:$16 sps:$4 sm:$0xff]   ;;  %v6358_v6 = vld [vmem:[#allocation11 + $0x12c] ss:$16 sps:$4 sm:$0xff]  }
 0x3c6   :  { %1781 = vmatpush1.bf16.msra.mxu0 %v6269_v7  ;;  %1863 = vmatpush1.bf16.msra.mxu1 %v6272_v8  ;;  %v6353_v7 = vld [vmem:[#allocation11 + $0x120] ss:$16 sps:$4 sm:$0xff]   ;;  %v6356_v8 = vld [vmem:[#allocation11 + $0x128] ss:$16 sps:$4 sm:$0xff]  }
 0x3c7   :  { %1782 = vmatprep.subr.bf16.mxu0 %v6277_v9  ;;  %1864 = vmatprep.subr.bf16.mxu1 %v6280_v10  ;;  %v6361_v9 = vld [vmem:[#allocation11 + $0x144] ss:$16 sps:$4 sm:$0xff]   ;;  %v6364_v10 = vld [vmem:[#allocation11 + $0x14c] ss:$16 sps:$4 sm:$0xff]  }
 0x3ca   :  { %1783 = vmatpush1.bf16.msra.mxu0 %v6275_v11  ;;  %1865 = vmatpush1.bf16.msra.mxu1 %v6278_v12  ;;  %v6359_v11 = vld [vmem:[#allocation11 + $0x140] ss:$16 sps:$4 sm:$0xff]   ;;  %v6362_v12 = vld [vmem:[#allocation11 + $0x148] ss:$16 sps:$4 sm:$0xff]  }
 0x3cb   :  { %1784 = vmatprep.subr.bf16.mxu0 %v6283_v13  ;;  %1866 = vmatprep.subr.bf16.mxu1 %v6286_v14  ;;  %v6367_v13 = vld [vmem:[#allocation11 + $0x164] ss:$16 sps:$4 sm:$0xff]   ;;  %v6370_v14 = vld [vmem:[#allocation11 + $0x16c] ss:$16 sps:$4 sm:$0xff]  }
 0x3ce   :  { %1785 = vmatpush1.bf16.msra.mxu0 %v6281_v15  ;;  %1867 = vmatpush1.bf16.msra.mxu1 %v6284_v16  ;;  %v6365_v15 = vld [vmem:[#allocation11 + $0x160] ss:$16 sps:$4 sm:$0xff]   ;;  %v6368_v16 = vld [vmem:[#allocation11 + $0x168] ss:$16 sps:$4 sm:$0xff]  }
 0x3cf   :  { %1786 = vmatprep.subr.bf16.mxu0 %v6289_v17  ;;  %1868 = vmatprep.subr.bf16.mxu1 %v6292_v18  ;;  %v6373_v17 = vld [vmem:[#allocation11 + $0x184] ss:$16 sps:$4 sm:$0xff]   ;;  %v6376_v18 = vld [vmem:[#allocation11 + $0x18c] ss:$16 sps:$4 sm:$0xff]  }
 0x3d2   :  { %1787 = vmatpush1.bf16.msra.mxu0 %v6287_v20  ;;  %1869 = vmatpush1.bf16.msra.mxu1 %v6290_v21  ;;  %v6374_v20 = vld [vmem:[#allocation11 + $0x188] ss:$16 sps:$4 sm:$0xff]   ;;  %v6379_v21 = vld [vmem:[#allocation11 + $0x1a4] ss:$16 sps:$4 sm:$0xff]  }
 0x3d3   :  { %1788 = vmatprep.subr.bf16.mxu0 %v6295_v23  ;;  %1870 = vmatprep.subr.bf16.mxu1 %v6298_v24  ;;  %v6377_v23 = vld [vmem:[#allocation11 + $0x1a0] ss:$16 sps:$4 sm:$0xff]   ;;  %v6380_v24 = vld [vmem:[#allocation11 + $0x1a8] ss:$16 sps:$4 sm:$0xff]  }
 0x3d6   :  { %1789 = vmatpush1.bf16.msra.mxu0 %v6293_v25  ;;  %1871 = vmatpush1.bf16.msra.mxu1 %v6296_v26  ;;  %v6385_v25 = vld [vmem:[#allocation11 + $0x1c4] ss:$16 sps:$4 sm:$0xff]   ;;  %v6388_v26 = vld [vmem:[#allocation11 + $0x1cc] ss:$16 sps:$4 sm:$0xff]  }
 0x3d7   :  { %2695 = vmatprep.subr.bf16.mxu0 %v6301_v28  ;;  %2777 = vmatprep.subr.bf16.mxu1 %v6304_v29  ;;  %v6386_v28 = vld [vmem:[#allocation11 + $0x1c8] ss:$16 sps:$4 sm:$0xff]   ;;  %v6391_v29 = vld [vmem:[#allocation11 + $0x1e4] ss:$16 sps:$4 sm:$0xff]  }
 0x3d9   :  { %1791 = vmatmul.mubr.bf16.vlgmr.msra.gmra.mrb[8].mxu0 %v925_v32  ;;  %1873 = vmatmul.mubr.bf16.vlgmr.msra.gmra.mrb[8].mxu1 %v925_v32  ;;  %v6392_v32 = vld [vmem:[#allocation11 + $0x1e8] ss:$16 sps:$4 sm:$0xff]  }
 0x3da   :  { %2696 = vmatpush1.bf16.msra.mxu0 %v6299_v30  ;;  %2778 = vmatpush1.bf16.msra.mxu1 %v6302_v31  ;;  %v6394_v30 = vld [vmem:[#allocation11 + $0x1ec] ss:$16 sps:$4 sm:$0xff]   ;;  %v6389_v31 = vld [vmem:[#allocation11 + $0x1e0] ss:$16 sps:$4 sm:$0xff]  }
 0x3db   :  { %2697 = vmatprep.subr.bf16.mxu0 %v6307_v33  ;;  %2779 = vmatprep.subr.bf16.mxu1 %v6310_v34  ;;  %v6397_v33 = vld [vmem:[#allocation11 + $0x204] ss:$16 sps:$4 sm:$0xff]   ;;  %v6400_v34 = vld [vmem:[#allocation11 + $0x20c] ss:$16 sps:$4 sm:$0xff]  }
 0x3de   :  { %2698 = vmatpush1.bf16.msra.mxu0 %v6305_v35  ;;  %2780 = vmatpush1.bf16.msra.mxu1 %v6308_v36  ;;  %v7486_v35 = vld [vmem:[%s7573_s8] sm:$0xf] }
 0x3df   :  { %2699 = vmatprep.subr.bf16.mxu0 %v6313_v37  ;;  %2781 = vmatprep.subr.bf16.mxu1 %v6316_v38  ;;  %v1060_v36 = vrot.slane %v7486_v35, %v7452_v47  ;;  %v1064_v37 = vrot.slane %v7486_v35, %v7460_v49  ;;  %v1072_v38 = vrot.slane %v7486_v35, %v7463_v50 }
 0x3e2   :  { %2700 = vmatpush1.bf16.msra.mxu0 %v6311_v39  ;;  %2782 = vmatpush1.bf16.msra.mxu1 %v6314_v40 }
 0x3e3   :  { %2701 = vmatprep.subr.bf16.mxu0 %v6319_v41  ;;  %2783 = vmatprep.subr.bf16.mxu1 %v6322_v42 }
 0x3e6   :  { %2702 = vmatpush1.bf16.msra.mxu0 %v6317_v44  ;;  %2784 = vmatpush1.bf16.msra.mxu1 %v6320_v45 }
 0x3e7   :  { %2703 = vmatprep.subr.bf16.mxu0 %v6325_v51  ;;  %2785 = vmatprep.subr.bf16.mxu1 %v6328_v52 }
 0x3ea   :  { %2704 = vmatpush1.bf16.msra.mxu0 %v6323_v53  ;;  %2786 = vmatpush1.bf16.msra.mxu1 %v6326_v54 }
 0x3eb   :  { %2705 = vmatprep.subr.bf16.mxu0 %v6331_v56  ;;  %2787 = vmatprep.subr.bf16.mxu1 %v6334_v57 }
 0x3ee   :  { %2706 = vmatpush1.bf16.msra.mxu0 %v6329_v46  ;;  %2788 = vmatpush1.bf16.msra.mxu1 %v6332_v58 }
 0x3ef   :  { %2707 = vmatprep.subr.bf16.mxu0 %v6337_v59  ;;  %2789 = vmatprep.subr.bf16.mxu1 %v6340_v60 }
 0x3f2   :  { %2708 = vmatpush1.bf16.msra.mxu0 %v6335_v61  ;;  %2790 = vmatpush1.bf16.msra.mxu1 %v6338_v62 }
 0x3f3   :  { %2709 = vmatprep.subr.bf16.mxu0 %v6343_v63  ;;  %2791 = vmatprep.subr.bf16.mxu1 %v6346_v48 }
 0x3f6   :  { %2710 = vmatpush1.bf16.msra.mxu0 %v6341_v0  ;;  %2792 = vmatpush1.bf16.msra.mxu1 %v6344_v1 }
 0x3f7   :  { %2711 = vmatprep.subr.bf16.mxu0 %v6349_v2  ;;  %2793 = vmatprep.subr.bf16.mxu1 %v6352_v55 }
 0x3fa   :  { %2712 = vmatpush1.bf16.msra.mxu0 %v6347_v3  ;;  %2794 = vmatpush1.bf16.msra.mxu1 %v6350_v4 }
 0x3fb   :  { %2713 = vmatprep.subr.bf16.mxu0 %v6355_v5  ;;  %2795 = vmatprep.subr.bf16.mxu1 %v6358_v6  ;;  %v6395_v6 = vld [vmem:[#allocation11 + $0x200] ss:$16 sps:$4 sm:$0xff]  }
 0x3fe   :  { %2714 = vmatpush1.bf16.msra.mxu0 %v6353_v7  ;;  %2796 = vmatpush1.bf16.msra.mxu1 %v6356_v8  ;;  %v6398_v7 = vld [vmem:[#allocation11 + $0x208] ss:$16 sps:$4 sm:$0xff]  }
 0x3ff   :  { %2715 = vmatprep.subr.bf16.mxu0 %v6361_v9  ;;  %2797 = vmatprep.subr.bf16.mxu1 %v6364_v10  ;;  %v6403_v9 = vld [vmem:[#allocation11 + $0x224] ss:$16 sps:$4 sm:$0xff]   ;;  %v6406_v10 = vld [vmem:[#allocation11 + $0x22c] ss:$16 sps:$4 sm:$0xff]  }
 0x402   :  { %2716 = vmatpush1.bf16.msra.mxu0 %v6359_v11  ;;  %2798 = vmatpush1.bf16.msra.mxu1 %v6362_v12  ;;  %v6401_v12 = vld [vmem:[#allocation11 + $0x220] ss:$16 sps:$4 sm:$0xff]  }
 0x403   :  { %2717 = vmatprep.subr.bf16.mxu0 %v6367_v13  ;;  %2799 = vmatprep.subr.bf16.mxu1 %v6370_v14  ;;  %v6404_v13 = vld [vmem:[#allocation11 + $0x228] ss:$16 sps:$4 sm:$0xff]   ;;  %v6409_v14 = vld [vmem:[#allocation11 + $0x244] ss:$16 sps:$4 sm:$0xff]  }
 0x406   :  { %2718 = vmatpush1.bf16.msra.mxu0 %v6365_v15  ;;  %2800 = vmatpush1.bf16.msra.mxu1 %v6368_v16  ;;  %v6412_v15 = vld [vmem:[#allocation11 + $0x24c] ss:$16 sps:$4 sm:$0xff]   ;;  %v6407_v16 = vld [vmem:[#allocation11 + $0x240] ss:$16 sps:$4 sm:$0xff]  }
 0x407   :  { %2719 = vmatprep.subr.bf16.mxu0 %v6373_v17  ;;  %2801 = vmatprep.subr.bf16.mxu1 %v6376_v18  ;;  %v6410_v17 = vld [vmem:[#allocation11 + $0x248] ss:$16 sps:$4 sm:$0xff]   ;;  %v6415_v18 = vld [vmem:[#allocation11 + $0x264] ss:$16 sps:$4 sm:$0xff]  }
 0x40a   :  { %2720 = vmatpush1.bf16.msra.mxu0 %v6371_v19  ;;  %2802 = vmatpush1.bf16.msra.mxu1 %v6374_v20  ;;  %v6418_v19 = vld [vmem:[#allocation11 + $0x26c] ss:$16 sps:$4 sm:$0xff]   ;;  %v6413_v20 = vld [vmem:[#allocation11 + $0x260] ss:$16 sps:$4 sm:$0xff]  }
 0x40b   :  { %2721 = vmatprep.subr.bf16.mxu0 %v6379_v21  ;;  %2803 = vmatprep.subr.bf16.mxu1 %v6382_v22  ;;  %v6416_v21 = vld [vmem:[#allocation11 + $0x268] ss:$16 sps:$4 sm:$0xff]   ;;  %v6421_v22 = vld [vmem:[#allocation11 + $0x284] ss:$16 sps:$4 sm:$0xff]  }
 0x40e   :  { %2722 = vmatpush1.bf16.msra.mxu0 %v6377_v23  ;;  %2804 = vmatpush1.bf16.msra.mxu1 %v6380_v24  ;;  %v6424_v23 = vld [vmem:[#allocation11 + $0x28c] ss:$16 sps:$4 sm:$0xff]   ;;  %v6419_v24 = vld [vmem:[#allocation11 + $0x280] ss:$16 sps:$4 sm:$0xff]  }
 0x40f   :  { %2723 = vmatprep.subr.bf16.mxu0 %v6385_v25  ;;  %2805 = vmatprep.subr.bf16.mxu1 %v6388_v26  ;;  %v6422_v25 = vld [vmem:[#allocation11 + $0x288] ss:$16 sps:$4 sm:$0xff]   ;;  %v6427_v26 = vld [vmem:[#allocation11 + $0x2a4] ss:$16 sps:$4 sm:$0xff]  }
 0x412   :  { %2724 = vmatpush1.bf16.msra.mxu0 %v6383_v27  ;;  %2806 = vmatpush1.bf16.msra.mxu1 %v6386_v28  ;;  %v6430_v27 = vld [vmem:[#allocation11 + $0x2ac] ss:$16 sps:$4 sm:$0xff]   ;;  %v6425_v28 = vld [vmem:[#allocation11 + $0x2a0] ss:$16 sps:$4 sm:$0xff]  }
 0x413   :  { %2725 = vmatprep.subr.bf16.mxu0 %v6391_v29  ;;  %2807 = vmatprep.subr.bf16.mxu1 %v6394_v30  ;;  %v6428_v29 = vld [vmem:[#allocation11 + $0x2a8] ss:$16 sps:$4 sm:$0xff]   ;;  %v6433_v30 = vld [vmem:[#allocation11 + $0x2c4] ss:$16 sps:$4 sm:$0xff]  }
 0x416   :  { %2726 = vmatpush1.bf16.msra.mxu0 %v6389_v31  ;;  %2808 = vmatpush1.bf16.msra.mxu1 %v6392_v32  ;;  %v6436_v31 = vld [vmem:[#allocation11 + $0x2cc] ss:$16 sps:$4 sm:$0xff]   ;;  %v6431_v32 = vld [vmem:[#allocation11 + $0x2c0] ss:$16 sps:$4 sm:$0xff]  }
 0x417   :  { %2736 = vmatprep.subr.bf16.mxu0 %v6397_v33  ;;  %2818 = vmatprep.subr.bf16.mxu1 %v6400_v34  ;;  %v6434_v33 = vld [vmem:[#allocation11 + $0x2c8] ss:$16 sps:$4 sm:$0xff]   ;;  %v6439_v34 = vld [vmem:[#allocation11 + $0x2e4] ss:$16 sps:$4 sm:$0xff]  }
 0x4ac   :  { %v1792_v39 = vpop.f32.mrb[8].mxu0  ;;  %v7494_v40 = vpop.f32.mrb[8].mxu1 }
 0x4ad   :  { %v5931_v41 = vadd.f32 %v1792_v39, %v1060_v36  ;;  %v1794_v42 = vpop.f32.mrb[9].mxu0  ;;  %v1876_v44 = vpop.f32.mrb[9].mxu1  ;;  %v6442_v36 = vld [vmem:[#allocation11 + $0x2ec] ss:$16 sps:$4 sm:$0xff]   ;;  %v6440_v39 = vld [vmem:[#allocation11 + $0x2e8] ss:$16 sps:$4 sm:$0xff]  }
 0x4ae   :  { %v5932_v45 = vadd.f32 %v1794_v42, %v1064_v37  ;;  %v5934_v51 = vadd.f32 %v1876_v44, %v1072_v38  ;;  %v1796_v52 = vpop.f32.mrb[10].mxu0  ;;  %v1878_v53 = vpop.f32.mrb[10].mxu1  ;;  %v1068_v37 = vrot.slane %v7486_v35, %v7474_v43  ;;  %v6437_v38 = vld [vmem:[#allocation11 + $0x2e0] ss:$16 sps:$4 sm:$0xff]   ;;  %v6448_v42 = vld [vmem:[#allocation11 + $0x30c] ss:$16 sps:$4 sm:$0xff]  }
 0x4af   :  { %v1881_v54 = vpack.c.bf16 %v5931_v41, %v5931_v41  ;;  %v1797_v56 = vpop.f32.mrb[11].mxu0  ;;  %v1879_v57 = vpop.f32.mrb[11].mxu1  ;;  %v6445_v41 = vld [vmem:[#allocation11 + $0x304] ss:$16 sps:$4 sm:$0xff]   ;;  %v6454_v53 = vld [vmem:[#allocation11 + $0x32c] ss:$16 sps:$4 sm:$0xff]  }
 0x4b0   :  { %v1882_v46 = vpack.c.bf16 %v5932_v45, %v5932_v45  ;;  %v1884_v58 = vpack.c.bf16 %v5934_v51, %v5934_v51  ;;  %v5933_v44 = vadd.f32 %v7494_v40, %v1068_v37  ;;  %v6443_v45 = vld [vmem:[#allocation11 + $0x300] ss:$16 sps:$4 sm:$0xff]   ;;  %v6446_v51 = vld [vmem:[#allocation11 + $0x308] ss:$16 sps:$4 sm:$0xff]   ;;  %v6451_v52 = vld [vmem:[#allocation11 + $0x324] ss:$16 sps:$4 sm:$0xff]  }
 0x4b1   :  { %v1885_v59 = vmul.bf16 1056980736, %v1881_v54  ;;  %v6449_v35 = vld [vmem:[#allocation11 + $0x320] ss:$16 sps:$4 sm:$0xff]   ;;  %v6452_v56 = vld [vmem:[#allocation11 + $0x328] ss:$16 sps:$4 sm:$0xff]  }
 0x4b2   :  { %v1886_v60 = vmul.bf16 1056980736, %v1882_v46  ;;  %v1888_v61 = vmul.bf16 1056980736, %v1884_v58  ;;  %v6457_v57 = vld [vmem:[#allocation11 + $0x344] ss:$16 sps:$4 sm:$0xff]  }
 0x4b3   :  { %6919 = vtanh.bf16 %v1885_v59  ;;  %v6458_v59 = vld [vmem:[#allocation11 + $0x348] ss:$16 sps:$4 sm:$0xff]   ;;  %v6515_v37 = vld [vmem:[#allocation13 + $0x80] ss:$16 sps:$4 sm:$0xff]  }
 0x4b4   :  { %6921 = vtanh.bf16 %v1886_v60  ;;  %v6463_v60 = vld [vmem:[#allocation11 + $0x364] ss:$16 sps:$4 sm:$0xff]  }
 0x4b5   :  { %6923 = vtanh.bf16 %v1888_v61  ;;  %v6466_v61 = vld [vmem:[#allocation11 + $0x36c] ss:$16 sps:$4 sm:$0xff]  }
 0x4be   :  { %v6920_v62 = vpop.eup %6919 }
 0x4bf   :  { %v1893_v63 = vadd.bf16 1065369472, %v6920_v62  ;;  %v6922_v48 = vpop.eup %6921  ;;  %v6461_v62 = vld [vmem:[#allocation11 + $0x360] ss:$16 sps:$4 sm:$0xff]  }
 0x4c0   :  { %v6924_v0 = vpop.eup %6923  ;;  %v1894_v1 = vadd.bf16 1065369472, %v6922_v48  ;;  %v6469_v48 = vld [vmem:[#allocation11 + $0x384] ss:$16 sps:$4 sm:$0xff]  }
 0x4c1   :  { %v1897_v2 = vmul.bf16 1056980736, %v1893_v63  ;;  %v1896_v55 = vadd.bf16 1065369472, %v6924_v0  ;;  %v6464_v63 = vld [vmem:[#allocation11 + $0x368] ss:$16 sps:$4 sm:$0xff]  }
 0x4c2   :  { %v1898_v3 = vmul.bf16 1056980736, %v1894_v1  ;;  %v6472_v0 = vld [vmem:[#allocation11 + $0x38c] ss:$16 sps:$4 sm:$0xff]   ;;  %v6467_v1 = vld [vmem:[#allocation11 + $0x380] ss:$16 sps:$4 sm:$0xff]  }
 0x4c3   :  { %v1900_v4 = vmul.bf16 1056980736, %v1896_v55  ;;  %v1901_v8 = vmul.bf16 %v1897_v2, %v1881_v54  ;;  %v7499_v54 = vpack.c.bf16 %v5933_v44, %v5933_v44  ;;  %v6470_v2 = vld [vmem:[#allocation11 + $0x388] ss:$16 sps:$4 sm:$0xff]   ;;  %v6475_v55 = vld [vmem:[#allocation11 + $0x3a4] ss:$16 sps:$4 sm:$0xff]  }
 0x4c4   :  { %v1902_v5 = vmul.bf16 %v1898_v3, %v1882_v46  ;;  %v6460_v46 = vld [vmem:[#allocation11 + $0x34c] ss:$16 sps:$4 sm:$0xff]   ;;  %v6524_v44 = vld [vmem:[#allocation13 + $0xa8] ss:$16 sps:$4 sm:$0xff]  }
 0x4c5   :  { %v1904_v11 = vmul.bf16 %v1900_v4, %v1884_v58  ;;  %v1887_v40 = vmul.bf16 1056980736, %v7499_v54  ;;  %v6455_v58 = vld [vmem:[#allocation11 + $0x340] ss:$16 sps:$4 sm:$0xff]   ;;  %v6478_v3 = vld [vmem:[#allocation11 + $0x3ac] ss:$16 sps:$4 sm:$0xff]  }
 0x4c6   :  { %2727 = vmatprep.mubr.bf16.mxu0 %v1902_v5  ;;  %2809 = vmatprep.mubr.bf16.mxu1 %v1902_v5  ;;  %v6473_v4 = vld [vmem:[#allocation11 + $0x3a0] ss:$16 sps:$4 sm:$0xff]   ;;  %v6476_v5 = vld [vmem:[#allocation11 + $0x3a8] ss:$16 sps:$4 sm:$0xff]  }
 0x4c7   :  { %2728 = vmatmul.mubr.bf16.vlgmr.msra.gmra.mrb[12].mxu0 %v1901_v8  ;;  %2810 = vmatmul.mubr.bf16.vlgmr.msra.gmra.mrb[12].mxu1 %v1901_v8  ;;  %6925 = vtanh.bf16 %v1887_v40  ;;  %v6544_v40 = vld [vmem:[#allocation13 + $0x10c] ss:$16 sps:$4 sm:$0xff]  }
 0x4c8   :  { %2737 = vmatpush1.bf16.msra.mxu0 %v6395_v6  ;;  %2819 = vmatpush1.bf16.msra.mxu1 %v6398_v7  ;;  %v6481_v6 = vld [vmem:[#allocation11 + $0x3c4] ss:$16 sps:$4 sm:$0xff]   ;;  %v6484_v7 = vld [vmem:[#allocation11 + $0x3cc] ss:$16 sps:$4 sm:$0xff]  }
 0x4c9   :  { %2768 = vmatprep.mubr.bf16.mxu0 %v1904_v11  ;;  %2850 = vmatprep.mubr.bf16.mxu1 %v1904_v11 }
 0x4ca   :  { %2738 = vmatprep.subr.bf16.mxu0 %v6403_v9  ;;  %2820 = vmatprep.subr.bf16.mxu1 %v6406_v10  ;;  %v6479_v9 = vld [vmem:[#allocation11 + $0x3c0] ss:$16 sps:$4 sm:$0xff]   ;;  %v6482_v10 = vld [vmem:[#allocation11 + $0x3c8] ss:$16 sps:$4 sm:$0xff]  }
 0x4cc   :  { %2739 = vmatpush1.bf16.msra.mxu0 %v6401_v12  ;;  %2821 = vmatpush1.bf16.msra.mxu1 %v6404_v13  ;;  %v6487_v12 = vld [vmem:[#allocation11 + $0x3e4] ss:$16 sps:$4 sm:$0xff]   ;;  %v6490_v13 = vld [vmem:[#allocation11 + $0x3ec] ss:$16 sps:$4 sm:$0xff]  }
 0x4cd   :  { %2740 = vmatprep.subr.bf16.mxu0 %v6409_v14  ;;  %2822 = vmatprep.subr.bf16.mxu1 %v6412_v15  ;;  %v6485_v14 = vld [vmem:[#allocation11 + $0x3e0] ss:$16 sps:$4 sm:$0xff]   ;;  %v6488_v15 = vld [vmem:[#allocation11 + $0x3e8] ss:$16 sps:$4 sm:$0xff]  }
 0x4d0   :  { %2741 = vmatpush1.bf16.msra.mxu0 %v6407_v16  ;;  %2823 = vmatpush1.bf16.msra.mxu1 %v6410_v17  ;;  %v6493_v17 = vld [vmem:[#allocation13 + $0x4] ss:$16 sps:$4 sm:$0xff]  }
 0x4d1   :  { %2742 = vmatprep.subr.bf16.mxu0 %v6415_v18  ;;  %2824 = vmatprep.subr.bf16.mxu1 %v6418_v19  ;;  %v6496_v18 = vld [vmem:[#allocation13 + $0xc] ss:$16 sps:$4 sm:$0xff]   ;;  %v6491_v19 = vld [vmem:[#allocation13] ss:$16 sps:$4 sm:$0xff]  }
 0x4d2   :  { %v6926_v8 = vpop.eup %6925 }
 0x4d3   :  { %v1895_v11 = vadd.bf16 1065369472, %v6926_v8  ;;  %v6563_v8 = vld [vmem:[#allocation13 + $0x180] ss:$16 sps:$4 sm:$0xff]  }
 0x4d4   :  { %2743 = vmatpush1.bf16.msra.mxu0 %v6413_v20  ;;  %2825 = vmatpush1.bf16.msra.mxu1 %v6416_v21  ;;  %v6494_v20 = vld [vmem:[#allocation13 + $0x8] ss:$16 sps:$4 sm:$0xff]  }
 0x4d5   :  { %2744 = vmatprep.subr.bf16.mxu0 %v6421_v22  ;;  %2826 = vmatprep.subr.bf16.mxu1 %v6424_v23  ;;  %v1899_v16 = vmul.bf16 1056980736, %v1895_v11  ;;  %v6499_v22 = vld [vmem:[#allocation13 + $0x24] ss:$16 sps:$4 sm:$0xff]   ;;  %v6502_v23 = vld [vmem:[#allocation13 + $0x2c] ss:$16 sps:$4 sm:$0xff]  }
 0x4d6   :  { %v6574_v11 = vld [vmem:[#allocation13 + $0x1ac] ss:$16 sps:$4 sm:$0xff]  }
 0x4d7   :  { %v1903_v21 = vmul.bf16 %v1899_v16, %v7499_v54  ;;  %v6535_v54 = vld [vmem:[#allocation13 + $0xe4] ss:$16 sps:$4 sm:$0xff]   ;;  %v6575_v16 = vld [vmem:[#allocation13 + $0x1c0] ss:$16 sps:$4 sm:$0xff]  }
 0x4d8   :  { %2745 = vmatpush1.bf16.msra.mxu0 %v6419_v24  ;;  %2827 = vmatpush1.bf16.msra.mxu1 %v6422_v25  ;;  %v6497_v24 = vld [vmem:[#allocation13 + $0x20] ss:$16 sps:$4 sm:$0xff]   ;;  %v6500_v25 = vld [vmem:[#allocation13 + $0x28] ss:$16 sps:$4 sm:$0xff]  }
 0x4d9   :  { %2746 = vmatprep.subr.bf16.mxu0 %v6427_v26  ;;  %2828 = vmatprep.subr.bf16.mxu1 %v6430_v27  ;;  %v6505_v26 = vld [vmem:[#allocation13 + $0x44] ss:$16 sps:$4 sm:$0xff]   ;;  %v6508_v27 = vld [vmem:[#allocation13 + $0x4c] ss:$16 sps:$4 sm:$0xff]  }
 0x4dc   :  { %2747 = vmatpush1.bf16.msra.mxu0 %v6425_v28  ;;  %2829 = vmatpush1.bf16.msra.mxu1 %v6428_v29  ;;  %v6503_v28 = vld [vmem:[#allocation13 + $0x40] ss:$16 sps:$4 sm:$0xff]   ;;  %v6506_v29 = vld [vmem:[#allocation13 + $0x48] ss:$16 sps:$4 sm:$0xff]  }
 0x4dd   :  { %2748 = vmatprep.subr.bf16.mxu0 %v6433_v30  ;;  %2830 = vmatprep.subr.bf16.mxu1 %v6436_v31  ;;  %v6511_v30 = vld [vmem:[#allocation13 + $0x64] ss:$16 sps:$4 sm:$0xff]   ;;  %v6514_v31 = vld [vmem:[#allocation13 + $0x6c] ss:$16 sps:$4 sm:$0xff]  }
 0x4e0   :  { %2749 = vmatpush1.bf16.msra.mxu0 %v6431_v32  ;;  %2831 = vmatpush1.bf16.msra.mxu1 %v6434_v33  ;;  %v6509_v32 = vld [vmem:[#allocation13 + $0x60] ss:$16 sps:$4 sm:$0xff]   ;;  %v6512_v33 = vld [vmem:[#allocation13 + $0x68] ss:$16 sps:$4 sm:$0xff]  }
 0x4e1   :  { %2750 = vmatprep.subr.bf16.mxu0 %v6439_v34  ;;  %2832 = vmatprep.subr.bf16.mxu1 %v6442_v36  ;;  %v6517_v34 = vld [vmem:[#allocation13 + $0x84] ss:$16 sps:$4 sm:$0xff]   ;;  %v6520_v36 = vld [vmem:[#allocation13 + $0x8c] ss:$16 sps:$4 sm:$0xff]  }
 0x4e4   :  { %2751 = vmatpush1.bf16.msra.mxu0 %v6437_v38  ;;  %2833 = vmatpush1.bf16.msra.mxu1 %v6440_v39  ;;  %v6518_v38 = vld [vmem:[#allocation13 + $0x88] ss:$16 sps:$4 sm:$0xff]   ;;  %v6523_v39 = vld [vmem:[#allocation13 + $0xa4] ss:$16 sps:$4 sm:$0xff]  }
 0x4e5   :  { %2752 = vmatprep.subr.bf16.mxu0 %v6445_v41  ;;  %2834 = vmatprep.subr.bf16.mxu1 %v6448_v42  ;;  %v6526_v41 = vld [vmem:[#allocation13 + $0xac] ss:$16 sps:$4 sm:$0xff]   ;;  %v6521_v42 = vld [vmem:[#allocation13 + $0xa0] ss:$16 sps:$4 sm:$0xff]  }
 0x4e8   :  { %2753 = vmatpush1.bf16.msra.mxu0 %v6443_v45  ;;  %2835 = vmatpush1.bf16.msra.mxu1 %v6446_v51  ;;  %v6529_v45 = vld [vmem:[#allocation13 + $0xc4] ss:$16 sps:$4 sm:$0xff]   ;;  %v6532_v51 = vld [vmem:[#allocation13 + $0xcc] ss:$16 sps:$4 sm:$0xff]  }
 0x4e9   :  { %2754 = vmatprep.subr.bf16.mxu0 %v6451_v52  ;;  %2836 = vmatprep.subr.bf16.mxu1 %v6454_v53  ;;  %v6527_v52 = vld [vmem:[#allocation13 + $0xc0] ss:$16 sps:$4 sm:$0xff]   ;;  %v6530_v53 = vld [vmem:[#allocation13 + $0xc8] ss:$16 sps:$4 sm:$0xff]  }
 0x4ec   :  { %2755 = vmatpush1.bf16.msra.mxu0 %v6449_v35  ;;  %2837 = vmatpush1.bf16.msra.mxu1 %v6452_v56  ;;  %v6538_v35 = vld [vmem:[#allocation13 + $0xec] ss:$16 sps:$4 sm:$0xff]   ;;  %v6533_v56 = vld [vmem:[#allocation13 + $0xe0] ss:$16 sps:$4 sm:$0xff]  }
 0x4ed   :  { %2756 = vmatprep.subr.bf16.mxu0 %v6457_v57  ;;  %2838 = vmatprep.subr.bf16.mxu1 %v6460_v46  ;;  %v6536_v57 = vld [vmem:[#allocation13 + $0xe8] ss:$16 sps:$4 sm:$0xff]   ;;  %v6541_v46 = vld [vmem:[#allocation13 + $0x104] ss:$16 sps:$4 sm:$0xff]  }
 0x4f0   :  { %2757 = vmatpush1.bf16.msra.mxu0 %v6455_v58  ;;  %2839 = vmatpush1.bf16.msra.mxu1 %v6458_v59  ;;  %v6539_v58 = vld [vmem:[#allocation13 + $0x100] ss:$16 sps:$4 sm:$0xff]   ;;  %v6542_v59 = vld [vmem:[#allocation13 + $0x108] ss:$16 sps:$4 sm:$0xff]  }
 0x4f1   :  { %2758 = vmatprep.subr.bf16.mxu0 %v6463_v60  ;;  %2840 = vmatprep.subr.bf16.mxu1 %v6466_v61  ;;  %v6547_v60 = vld [vmem:[#allocation13 + $0x124] ss:$16 sps:$4 sm:$0xff]   ;;  %v6550_v61 = vld [vmem:[#allocation13 + $0x12c] ss:$16 sps:$4 sm:$0xff]  }
 0x4f4   :  { %2759 = vmatpush1.bf16.msra.mxu0 %v6461_v62  ;;  %2841 = vmatpush1.bf16.msra.mxu1 %v6464_v63  ;;  %v6545_v62 = vld [vmem:[#allocation13 + $0x120] ss:$16 sps:$4 sm:$0xff]   ;;  %v6548_v63 = vld [vmem:[#allocation13 + $0x128] ss:$16 sps:$4 sm:$0xff]  }
 0x4f5   :  { %2760 = vmatprep.subr.bf16.mxu0 %v6469_v48  ;;  %2842 = vmatprep.subr.bf16.mxu1 %v6472_v0  ;;  %v6553_v48 = vld [vmem:[#allocation13 + $0x144] ss:$16 sps:$4 sm:$0xff]   ;;  %v6556_v0 = vld [vmem:[#allocation13 + $0x14c] ss:$16 sps:$4 sm:$0xff]  }
 0x4f8   :  { %2761 = vmatpush1.bf16.msra.mxu0 %v6467_v1  ;;  %2843 = vmatpush1.bf16.msra.mxu1 %v6470_v2  ;;  %v6551_v1 = vld [vmem:[#allocation13 + $0x140] ss:$16 sps:$4 sm:$0xff]   ;;  %v6554_v2 = vld [vmem:[#allocation13 + $0x148] ss:$16 sps:$4 sm:$0xff]  }
 0x4f9   :  { %2762 = vmatprep.subr.bf16.mxu0 %v6475_v55  ;;  %2844 = vmatprep.subr.bf16.mxu1 %v6478_v3  ;;  %v6559_v55 = vld [vmem:[#allocation13 + $0x164] ss:$16 sps:$4 sm:$0xff]   ;;  %v6562_v3 = vld [vmem:[#allocation13 + $0x16c] ss:$16 sps:$4 sm:$0xff]  }
 0x4fc   :  { %2763 = vmatpush1.bf16.msra.mxu0 %v6473_v4  ;;  %2845 = vmatpush1.bf16.msra.mxu1 %v6476_v5  ;;  %v6557_v4 = vld [vmem:[#allocation13 + $0x160] ss:$16 sps:$4 sm:$0xff]   ;;  %v6560_v5 = vld [vmem:[#allocation13 + $0x168] ss:$16 sps:$4 sm:$0xff]  }
 0x4fd   :  { %2764 = vmatprep.subr.bf16.mxu0 %v6481_v6  ;;  %2846 = vmatprep.subr.bf16.mxu1 %v6484_v7  ;;  %v6565_v6 = vld [vmem:[#allocation13 + $0x184] ss:$16 sps:$4 sm:$0xff]   ;;  %v6568_v7 = vld [vmem:[#allocation13 + $0x18c] ss:$16 sps:$4 sm:$0xff]  }
 0x500   :  { %2765 = vmatpush1.bf16.msra.mxu0 %v6479_v9  ;;  %2847 = vmatpush1.bf16.msra.mxu1 %v6482_v10  ;;  %v6566_v9 = vld [vmem:[#allocation13 + $0x188] ss:$16 sps:$4 sm:$0xff]   ;;  %v6571_v10 = vld [vmem:[#allocation13 + $0x1a4] ss:$16 sps:$4 sm:$0xff]  }
 0x501   :  { %2766 = vmatprep.subr.bf16.mxu0 %v6487_v12  ;;  %2848 = vmatprep.subr.bf16.mxu1 %v6490_v13  ;;  %v6569_v12 = vld [vmem:[#allocation13 + $0x1a0] ss:$16 sps:$4 sm:$0xff]   ;;  %v6572_v13 = vld [vmem:[#allocation13 + $0x1a8] ss:$16 sps:$4 sm:$0xff]  }
 0x504   :  { %2767 = vmatpush1.bf16.msra.mxu0 %v6485_v14  ;;  %2849 = vmatpush1.bf16.msra.mxu1 %v6488_v15  ;;  %v6577_v14 = vld [vmem:[#allocation13 + $0x1c4] ss:$16 sps:$4 sm:$0xff]   ;;  %v6580_v15 = vld [vmem:[#allocation13 + $0x1cc] ss:$16 sps:$4 sm:$0xff]  }
 0x505   :  { %3673 = vmatprep.subr.bf16.mxu0 %v6493_v17  ;;  %3755 = vmatprep.subr.bf16.mxu1 %v6496_v18  ;;  %v6578_v17 = vld [vmem:[#allocation13 + $0x1c8] ss:$16 sps:$4 sm:$0xff]   ;;  %v6583_v18 = vld [vmem:[#allocation13 + $0x1e4] ss:$16 sps:$4 sm:$0xff]  }
 0x507   :  { %2769 = vmatmul.mubr.bf16.vlgmr.msra.gmra.mrb[12].mxu0 %v1903_v21  ;;  %2851 = vmatmul.mubr.bf16.vlgmr.msra.gmra.mrb[12].mxu1 %v1903_v21  ;;  %v6584_v21 = vld [vmem:[#allocation13 + $0x1e8] ss:$16 sps:$4 sm:$0xff]  }
 0x508   :  { %3674 = vmatpush1.bf16.msra.mxu0 %v6491_v19  ;;  %3756 = vmatpush1.bf16.msra.mxu1 %v6494_v20  ;;  %v6586_v19 = vld [vmem:[#allocation13 + $0x1ec] ss:$16 sps:$4 sm:$0xff]   ;;  %v6581_v20 = vld [vmem:[#allocation13 + $0x1e0] ss:$16 sps:$4 sm:$0xff]  }
 0x509   :  { %3675 = vmatprep.subr.bf16.mxu0 %v6499_v22  ;;  %3757 = vmatprep.subr.bf16.mxu1 %v6502_v23  ;;  %v6589_v22 = vld [vmem:[#allocation13 + $0x204] ss:$16 sps:$4 sm:$0xff]   ;;  %v6592_v23 = vld [vmem:[#allocation13 + $0x20c] ss:$16 sps:$4 sm:$0xff]  }
 0x50c   :  { %3676 = vmatpush1.bf16.msra.mxu0 %v6497_v24  ;;  %3758 = vmatpush1.bf16.msra.mxu1 %v6500_v25  ;;  %v7506_v24 = vld [vmem:[%s7575_s10] sm:$0xf] }
 0x50d   :  { %3677 = vmatprep.subr.bf16.mxu0 %v6505_v26  ;;  %3759 = vmatprep.subr.bf16.mxu1 %v6508_v27  ;;  %v2038_v25 = vrot.slane %v7506_v24, %v7452_v47  ;;  %v2042_v26 = vrot.slane %v7506_v24, %v7460_v49  ;;  %v2050_v27 = vrot.slane %v7506_v24, %v7463_v50 }
 0x510   :  { %3678 = vmatpush1.bf16.msra.mxu0 %v6503_v28  ;;  %3760 = vmatpush1.bf16.msra.mxu1 %v6506_v29 }
 0x511   :  { %3679 = vmatprep.subr.bf16.mxu0 %v6511_v30  ;;  %3761 = vmatprep.subr.bf16.mxu1 %v6514_v31 }
 0x514   :  { %3680 = vmatpush1.bf16.msra.mxu0 %v6509_v32  ;;  %3762 = vmatpush1.bf16.msra.mxu1 %v6512_v33 }
 0x515   :  { %3681 = vmatprep.subr.bf16.mxu0 %v6517_v34  ;;  %3763 = vmatprep.subr.bf16.mxu1 %v6520_v36 }
 0x518   :  { %3682 = vmatpush1.bf16.msra.mxu0 %v6515_v37  ;;  %3764 = vmatpush1.bf16.msra.mxu1 %v6518_v38 }
 0x519   :  { %3683 = vmatprep.subr.bf16.mxu0 %v6523_v39  ;;  %3765 = vmatprep.subr.bf16.mxu1 %v6526_v41 }
 0x51c   :  { %3684 = vmatpush1.bf16.msra.mxu0 %v6521_v42  ;;  %3766 = vmatpush1.bf16.msra.mxu1 %v6524_v44 }
 0x51d   :  { %3685 = vmatprep.subr.bf16.mxu0 %v6529_v45  ;;  %3767 = vmatprep.subr.bf16.mxu1 %v6532_v51 }
 0x520   :  { %3686 = vmatpush1.bf16.msra.mxu0 %v6527_v52  ;;  %3768 = vmatpush1.bf16.msra.mxu1 %v6530_v53 }
 0x521   :  { %3687 = vmatprep.subr.bf16.mxu0 %v6535_v54  ;;  %3769 = vmatprep.subr.bf16.mxu1 %v6538_v35 }
 0x524   :  { %3688 = vmatpush1.bf16.msra.mxu0 %v6533_v56  ;;  %3770 = vmatpush1.bf16.msra.mxu1 %v6536_v57 }
 0x525   :  { %3689 = vmatprep.subr.bf16.mxu0 %v6541_v46  ;;  %3771 = vmatprep.subr.bf16.mxu1 %v6544_v40 }
 0x528   :  { %3690 = vmatpush1.bf16.msra.mxu0 %v6539_v58  ;;  %3772 = vmatpush1.bf16.msra.mxu1 %v6542_v59 }
 0x529   :  { %3691 = vmatprep.subr.bf16.mxu0 %v6547_v60  ;;  %3773 = vmatprep.subr.bf16.mxu1 %v6550_v61  ;;  %v6587_v61 = vld [vmem:[#allocation13 + $0x200] ss:$16 sps:$4 sm:$0xff]  }
 0x52c   :  { %3692 = vmatpush1.bf16.msra.mxu0 %v6545_v62  ;;  %3774 = vmatpush1.bf16.msra.mxu1 %v6548_v63  ;;  %v6590_v62 = vld [vmem:[#allocation13 + $0x208] ss:$16 sps:$4 sm:$0xff]  }
 0x52d   :  { %3693 = vmatprep.subr.bf16.mxu0 %v6553_v48  ;;  %3775 = vmatprep.subr.bf16.mxu1 %v6556_v0  ;;  %v6595_v48 = vld [vmem:[#allocation13 + $0x224] ss:$16 sps:$4 sm:$0xff]   ;;  %v6598_v0 = vld [vmem:[#allocation13 + $0x22c] ss:$16 sps:$4 sm:$0xff]  }
 0x530   :  { %3694 = vmatpush1.bf16.msra.mxu0 %v6551_v1  ;;  %3776 = vmatpush1.bf16.msra.mxu1 %v6554_v2  ;;  %v6593_v2 = vld [vmem:[#allocation13 + $0x220] ss:$16 sps:$4 sm:$0xff]  }
 0x531   :  { %3695 = vmatprep.subr.bf16.mxu0 %v6559_v55  ;;  %3777 = vmatprep.subr.bf16.mxu1 %v6562_v3  ;;  %v6596_v55 = vld [vmem:[#allocation13 + $0x228] ss:$16 sps:$4 sm:$0xff]   ;;  %v6601_v3 = vld [vmem:[#allocation13 + $0x244] ss:$16 sps:$4 sm:$0xff]  }
 0x534   :  { %3696 = vmatpush1.bf16.msra.mxu0 %v6557_v4  ;;  %3778 = vmatpush1.bf16.msra.mxu1 %v6560_v5  ;;  %v6604_v4 = vld [vmem:[#allocation13 + $0x24c] ss:$16 sps:$4 sm:$0xff]   ;;  %v6599_v5 = vld [vmem:[#allocation13 + $0x240] ss:$16 sps:$4 sm:$0xff]  }
 0x535   :  { %3697 = vmatprep.subr.bf16.mxu0 %v6565_v6  ;;  %3779 = vmatprep.subr.bf16.mxu1 %v6568_v7  ;;  %v6602_v6 = vld [vmem:[#allocation13 + $0x248] ss:$16 sps:$4 sm:$0xff]   ;;  %v6607_v7 = vld [vmem:[#allocation13 + $0x264] ss:$16 sps:$4 sm:$0xff]  }
 0x538   :  { %3698 = vmatpush1.bf16.msra.mxu0 %v6563_v8  ;;  %3780 = vmatpush1.bf16.msra.mxu1 %v6566_v9  ;;  %v6610_v8 = vld [vmem:[#allocation13 + $0x26c] ss:$16 sps:$4 sm:$0xff]   ;;  %v6605_v9 = vld [vmem:[#allocation13 + $0x260] ss:$16 sps:$4 sm:$0xff]  }
 0x539   :  { %3699 = vmatprep.subr.bf16.mxu0 %v6571_v10  ;;  %3781 = vmatprep.subr.bf16.mxu1 %v6574_v11  ;;  %v6608_v10 = vld [vmem:[#allocation13 + $0x268] ss:$16 sps:$4 sm:$0xff]   ;;  %v6613_v11 = vld [vmem:[#allocation13 + $0x284] ss:$16 sps:$4 sm:$0xff]  }
 0x53c   :  { %3700 = vmatpush1.bf16.msra.mxu0 %v6569_v12  ;;  %3782 = vmatpush1.bf16.msra.mxu1 %v6572_v13  ;;  %v6616_v12 = vld [vmem:[#allocation13 + $0x28c] ss:$16 sps:$4 sm:$0xff]   ;;  %v6611_v13 = vld [vmem:[#allocation13 + $0x280] ss:$16 sps:$4 sm:$0xff]  }
 0x53d   :  { %3701 = vmatprep.subr.bf16.mxu0 %v6577_v14  ;;  %3783 = vmatprep.subr.bf16.mxu1 %v6580_v15  ;;  %v6614_v14 = vld [vmem:[#allocation13 + $0x288] ss:$16 sps:$4 sm:$0xff]   ;;  %v6619_v15 = vld [vmem:[#allocation13 + $0x2a4] ss:$16 sps:$4 sm:$0xff]  }
 0x540   :  { %3702 = vmatpush1.bf16.msra.mxu0 %v6575_v16  ;;  %3784 = vmatpush1.bf16.msra.mxu1 %v6578_v17  ;;  %v6622_v16 = vld [vmem:[#allocation13 + $0x2ac] ss:$16 sps:$4 sm:$0xff]   ;;  %v6617_v17 = vld [vmem:[#allocation13 + $0x2a0] ss:$16 sps:$4 sm:$0xff]  }
 0x541   :  { %3703 = vmatprep.subr.bf16.mxu0 %v6583_v18  ;;  %3785 = vmatprep.subr.bf16.mxu1 %v6586_v19  ;;  %v6620_v18 = vld [vmem:[#allocation13 + $0x2a8] ss:$16 sps:$4 sm:$0xff]   ;;  %v6625_v19 = vld [vmem:[#allocation13 + $0x2c4] ss:$16 sps:$4 sm:$0xff]  }
 0x544   :  { %3704 = vmatpush1.bf16.msra.mxu0 %v6581_v20  ;;  %3786 = vmatpush1.bf16.msra.mxu1 %v6584_v21  ;;  %v6628_v20 = vld [vmem:[#allocation13 + $0x2cc] ss:$16 sps:$4 sm:$0xff]   ;;  %v6623_v21 = vld [vmem:[#allocation13 + $0x2c0] ss:$16 sps:$4 sm:$0xff]  }
 0x545   :  { %3714 = vmatprep.subr.bf16.mxu0 %v6589_v22  ;;  %3796 = vmatprep.subr.bf16.mxu1 %v6592_v23  ;;  %v6626_v22 = vld [vmem:[#allocation13 + $0x2c8] ss:$16 sps:$4 sm:$0xff]   ;;  %v6631_v23 = vld [vmem:[#allocation13 + $0x2e4] ss:$16 sps:$4 sm:$0xff]  }
 0x5da   :  { %v2770_v28 = vpop.f32.mrb[12].mxu0  ;;  %v7514_v29 = vpop.f32.mrb[12].mxu1 }
 0x5db   :  { %v5935_v30 = vadd.f32 %v2770_v28, %v2038_v25  ;;  %v2772_v31 = vpop.f32.mrb[13].mxu0  ;;  %v2854_v32 = vpop.f32.mrb[13].mxu1  ;;  %v6634_v25 = vld [vmem:[#allocation13 + $0x2ec] ss:$16 sps:$4 sm:$0xff]   ;;  %v6632_v28 = vld [vmem:[#allocation13 + $0x2e8] ss:$16 sps:$4 sm:$0xff]  }
 0x5dc   :  { %v5936_v33 = vadd.f32 %v2772_v31, %v2042_v26  ;;  %v5938_v34 = vadd.f32 %v2854_v32, %v2050_v27  ;;  %v2774_v36 = vpop.f32.mrb[14].mxu0  ;;  %v2856_v37 = vpop.f32.mrb[14].mxu1  ;;  %v2046_v26 = vrot.slane %v7506_v24, %v7474_v43  ;;  %v6629_v27 = vld [vmem:[#allocation13 + $0x2e0] ss:$16 sps:$4 sm:$0xff]   ;;  %v6640_v31 = vld [vmem:[#allocation13 + $0x30c] ss:$16 sps:$4 sm:$0xff]  }
 0x5dd   :  { %v2859_v38 = vpack.c.bf16 %v5935_v30, %v5935_v30  ;;  %v2775_v39 = vpop.f32.mrb[15].mxu0  ;;  %v2857_v41 = vpop.f32.mrb[15].mxu1  ;;  %v6637_v30 = vld [vmem:[#allocation13 + $0x304] ss:$16 sps:$4 sm:$0xff]   ;;  %v6646_v37 = vld [vmem:[#allocation13 + $0x32c] ss:$16 sps:$4 sm:$0xff]  }
 0x5de   :  { %v2860_v42 = vpack.c.bf16 %v5936_v33, %v5936_v33  ;;  %v2862_v44 = vpack.c.bf16 %v5938_v34, %v5938_v34  ;;  %v5937_v32 = vadd.f32 %v7514_v29, %v2046_v26  ;;  %v6635_v33 = vld [vmem:[#allocation13 + $0x300] ss:$16 sps:$4 sm:$0xff]   ;;  %v6638_v34 = vld [vmem:[#allocation13 + $0x308] ss:$16 sps:$4 sm:$0xff]   ;;  %v6643_v36 = vld [vmem:[#allocation13 + $0x324] ss:$16 sps:$4 sm:$0xff]  }
 0x5df   :  { %v2863_v45 = vmul.bf16 1056980736, %v2859_v38  ;;  %v6641_v24 = vld [vmem:[#allocation13 + $0x320] ss:$16 sps:$4 sm:$0xff]   ;;  %v6644_v39 = vld [vmem:[#allocation13 + $0x328] ss:$16 sps:$4 sm:$0xff]  }
 0x5e0   :  { %v2864_v51 = vmul.bf16 1056980736, %v2860_v42  ;;  %v2866_v52 = vmul.bf16 1056980736, %v2862_v44  ;;  %v6649_v41 = vld [vmem:[#allocation13 + $0x344] ss:$16 sps:$4 sm:$0xff]  }
 0x5e1   :  { %6927 = vtanh.bf16 %v2863_v45  ;;  %v6650_v45 = vld [vmem:[#allocation13 + $0x348] ss:$16 sps:$4 sm:$0xff]   ;;  %v6707_v26 = vld [vmem:[#allocation14 + $0x80] ss:$16 sps:$4 sm:$0xff]  }
 0x5e2   :  { %6929 = vtanh.bf16 %v2864_v51  ;;  %v6655_v51 = vld [vmem:[#allocation13 + $0x364] ss:$16 sps:$4 sm:$0xff]  }
 0x5e3   :  { %6931 = vtanh.bf16 %v2866_v52  ;;  %v6658_v52 = vld [vmem:[#allocation13 + $0x36c] ss:$16 sps:$4 sm:$0xff]  }
 0x5ec   :  { %v6928_v53 = vpop.eup %6927 }
 0x5ed   :  { %v2871_v54 = vadd.bf16 1065369472, %v6928_v53  ;;  %v6930_v35 = vpop.eup %6929  ;;  %v6653_v53 = vld [vmem:[#allocation13 + $0x360] ss:$16 sps:$4 sm:$0xff]  }
 0x5ee   :  { %v6932_v56 = vpop.eup %6931  ;;  %v2872_v57 = vadd.bf16 1065369472, %v6930_v35  ;;  %v6661_v35 = vld [vmem:[#allocation13 + $0x384] ss:$16 sps:$4 sm:$0xff]  }
 0x5ef   :  { %v2875_v46 = vmul.bf16 1056980736, %v2871_v54  ;;  %v2874_v40 = vadd.bf16 1065369472, %v6932_v56  ;;  %v6656_v54 = vld [vmem:[#allocation13 + $0x368] ss:$16 sps:$4 sm:$0xff]  }
 0x5f0   :  { %v2876_v58 = vmul.bf16 1056980736, %v2872_v57  ;;  %v6664_v56 = vld [vmem:[#allocation13 + $0x38c] ss:$16 sps:$4 sm:$0xff]   ;;  %v6659_v57 = vld [vmem:[#allocation13 + $0x380] ss:$16 sps:$4 sm:$0xff]  }
 0x5f1   :  { %v2878_v59 = vmul.bf16 1056980736, %v2874_v40  ;;  %v2879_v63 = vmul.bf16 %v2875_v46, %v2859_v38  ;;  %v7519_v38 = vpack.c.bf16 %v5937_v32, %v5937_v32  ;;  %v6662_v46 = vld [vmem:[#allocation13 + $0x388] ss:$16 sps:$4 sm:$0xff]   ;;  %v6667_v40 = vld [vmem:[#allocation13 + $0x3a4] ss:$16 sps:$4 sm:$0xff]  }
 0x5f2   :  { %v2880_v60 = vmul.bf16 %v2876_v58, %v2860_v42  ;;  %v6652_v42 = vld [vmem:[#allocation13 + $0x34c] ss:$16 sps:$4 sm:$0xff]   ;;  %v6716_v32 = vld [vmem:[#allocation14 + $0xa8] ss:$16 sps:$4 sm:$0xff]  }
 0x5f3   :  { %v2882_v1 = vmul.bf16 %v2878_v59, %v2862_v44  ;;  %v2865_v29 = vmul.bf16 1056980736, %v7519_v38  ;;  %v6647_v44 = vld [vmem:[#allocation13 + $0x340] ss:$16 sps:$4 sm:$0xff]   ;;  %v6670_v58 = vld [vmem:[#allocation13 + $0x3ac] ss:$16 sps:$4 sm:$0xff]  }
 0x5f4   :  { %3705 = vmatprep.mubr.bf16.mxu0 %v2880_v60  ;;  %3787 = vmatprep.mubr.bf16.mxu1 %v2880_v60  ;;  %v6665_v59 = vld [vmem:[#allocation13 + $0x3a0] ss:$16 sps:$4 sm:$0xff]   ;;  %v6668_v60 = vld [vmem:[#allocation13 + $0x3a8] ss:$16 sps:$4 sm:$0xff]  }
 0x5f5   :  { %3706 = vmatmul.mubr.bf16.vlgmr.msra.gmra.mrb[16].mxu0 %v2879_v63  ;;  %3788 = vmatmul.mubr.bf16.vlgmr.msra.gmra.mrb[16].mxu1 %v2879_v63  ;;  %6933 = vtanh.bf16 %v2865_v29  ;;  %v6736_v29 = vld [vmem:[#allocation14 + $0x10c] ss:$16 sps:$4 sm:$0xff]  }
 0x5f6   :  { %3715 = vmatpush1.bf16.msra.mxu0 %v6587_v61  ;;  %3797 = vmatpush1.bf16.msra.mxu1 %v6590_v62  ;;  %v6673_v61 = vld [vmem:[#allocation13 + $0x3c4] ss:$16 sps:$4 sm:$0xff]   ;;  %v6676_v62 = vld [vmem:[#allocation13 + $0x3cc] ss:$16 sps:$4 sm:$0xff]  }
 0x5f7   :  { %3746 = vmatprep.mubr.bf16.mxu0 %v2882_v1  ;;  %3828 = vmatprep.mubr.bf16.mxu1 %v2882_v1 }
 0x5f8   :  { %3716 = vmatprep.subr.bf16.mxu0 %v6595_v48  ;;  %3798 = vmatprep.subr.bf16.mxu1 %v6598_v0  ;;  %v6671_v48 = vld [vmem:[#allocation13 + $0x3c0] ss:$16 sps:$4 sm:$0xff]   ;;  %v6674_v0 = vld [vmem:[#allocation13 + $0x3c8] ss:$16 sps:$4 sm:$0xff]  }
 0x5fa   :  { %3717 = vmatpush1.bf16.msra.mxu0 %v6593_v2  ;;  %3799 = vmatpush1.bf16.msra.mxu1 %v6596_v55  ;;  %v6679_v2 = vld [vmem:[#allocation13 + $0x3e4] ss:$16 sps:$4 sm:$0xff]   ;;  %v6682_v55 = vld [vmem:[#allocation13 + $0x3ec] ss:$16 sps:$4 sm:$0xff]  }
 0x5fb   :  { %3718 = vmatprep.subr.bf16.mxu0 %v6601_v3  ;;  %3800 = vmatprep.subr.bf16.mxu1 %v6604_v4  ;;  %v6677_v3 = vld [vmem:[#allocation13 + $0x3e0] ss:$16 sps:$4 sm:$0xff]   ;;  %v6680_v4 = vld [vmem:[#allocation13 + $0x3e8] ss:$16 sps:$4 sm:$0xff]  }
 0x5fe   :  { %3719 = vmatpush1.bf16.msra.mxu0 %v6599_v5  ;;  %3801 = vmatpush1.bf16.msra.mxu1 %v6602_v6  ;;  %v6685_v6 = vld [vmem:[#allocation14 + $0x4] ss:$16 sps:$4 sm:$0xff]  }
 0x5ff   :  { %3720 = vmatprep.subr.bf16.mxu0 %v6607_v7  ;;  %3802 = vmatprep.subr.bf16.mxu1 %v6610_v8  ;;  %v6688_v7 = vld [vmem:[#allocation14 + $0xc] ss:$16 sps:$4 sm:$0xff]   ;;  %v6683_v8 = vld [vmem:[#allocation14] ss:$16 sps:$4 sm:$0xff]  }
 0x600   :  { %v6934_v63 = vpop.eup %6933 }
 0x601   :  { %v2873_v1 = vadd.bf16 1065369472, %v6934_v63  ;;  %v6755_v63 = vld [vmem:[#allocation14 + $0x180] ss:$16 sps:$4 sm:$0xff]  }
 0x602   :  { %3721 = vmatpush1.bf16.msra.mxu0 %v6605_v9  ;;  %3803 = vmatpush1.bf16.msra.mxu1 %v6608_v10  ;;  %v6686_v9 = vld [vmem:[#allocation14 + $0x8] ss:$16 sps:$4 sm:$0xff]  }
 0x603   :  { %3722 = vmatprep.subr.bf16.mxu0 %v6613_v11  ;;  %3804 = vmatprep.subr.bf16.mxu1 %v6616_v12  ;;  %v2877_v5 = vmul.bf16 1056980736, %v2873_v1  ;;  %v6691_v11 = vld [vmem:[#allocation14 + $0x24] ss:$16 sps:$4 sm:$0xff]   ;;  %v6694_v12 = vld [vmem:[#allocation14 + $0x2c] ss:$16 sps:$4 sm:$0xff]  }
 0x604   :  { %v6766_v1 = vld [vmem:[#allocation14 + $0x1ac] ss:$16 sps:$4 sm:$0xff]  }
 0x605   :  { %v2881_v10 = vmul.bf16 %v2877_v5, %v7519_v38  ;;  %v6727_v38 = vld [vmem:[#allocation14 + $0xe4] ss:$16 sps:$4 sm:$0xff]   ;;  %v6767_v5 = vld [vmem:[#allocation14 + $0x1c0] ss:$16 sps:$4 sm:$0xff]  }
 0x606   :  { %3723 = vmatpush1.bf16.msra.mxu0 %v6611_v13  ;;  %3805 = vmatpush1.bf16.msra.mxu1 %v6614_v14  ;;  %v6689_v13 = vld [vmem:[#allocation14 + $0x20] ss:$16 sps:$4 sm:$0xff]   ;;  %v6692_v14 = vld [vmem:[#allocation14 + $0x28] ss:$16 sps:$4 sm:$0xff]  }
 0x607   :  { %3724 = vmatprep.subr.bf16.mxu0 %v6619_v15  ;;  %3806 = vmatprep.subr.bf16.mxu1 %v6622_v16  ;;  %v6697_v15 = vld [vmem:[#allocation14 + $0x44] ss:$16 sps:$4 sm:$0xff]   ;;  %v6700_v16 = vld [vmem:[#allocation14 + $0x4c] ss:$16 sps:$4 sm:$0xff]  }
 0x60a   :  { %3725 = vmatpush1.bf16.msra.mxu0 %v6617_v17  ;;  %3807 = vmatpush1.bf16.msra.mxu1 %v6620_v18  ;;  %v6695_v17 = vld [vmem:[#allocation14 + $0x40] ss:$16 sps:$4 sm:$0xff]   ;;  %v6698_v18 = vld [vmem:[#allocation14 + $0x48] ss:$16 sps:$4 sm:$0xff]  }
 0x60b   :  { %3726 = vmatprep.subr.bf16.mxu0 %v6625_v19  ;;  %3808 = vmatprep.subr.bf16.mxu1 %v6628_v20  ;;  %v6703_v19 = vld [vmem:[#allocation14 + $0x64] ss:$16 sps:$4 sm:$0xff]   ;;  %v6706_v20 = vld [vmem:[#allocation14 + $0x6c] ss:$16 sps:$4 sm:$0xff]  }
 0x60e   :  { %3727 = vmatpush1.bf16.msra.mxu0 %v6623_v21  ;;  %3809 = vmatpush1.bf16.msra.mxu1 %v6626_v22  ;;  %v6701_v21 = vld [vmem:[#allocation14 + $0x60] ss:$16 sps:$4 sm:$0xff]   ;;  %v6704_v22 = vld [vmem:[#allocation14 + $0x68] ss:$16 sps:$4 sm:$0xff]  }
 0x60f   :  { %3728 = vmatprep.subr.bf16.mxu0 %v6631_v23  ;;  %3810 = vmatprep.subr.bf16.mxu1 %v6634_v25  ;;  %v6709_v23 = vld [vmem:[#allocation14 + $0x84] ss:$16 sps:$4 sm:$0xff]   ;;  %v6712_v25 = vld [vmem:[#allocation14 + $0x8c] ss:$16 sps:$4 sm:$0xff]  }
 0x612   :  { %3729 = vmatpush1.bf16.msra.mxu0 %v6629_v27  ;;  %3811 = vmatpush1.bf16.msra.mxu1 %v6632_v28  ;;  %v6710_v27 = vld [vmem:[#allocation14 + $0x88] ss:$16 sps:$4 sm:$0xff]   ;;  %v6715_v28 = vld [vmem:[#allocation14 + $0xa4] ss:$16 sps:$4 sm:$0xff]  }
 0x613   :  { %3730 = vmatprep.subr.bf16.mxu0 %v6637_v30  ;;  %3812 = vmatprep.subr.bf16.mxu1 %v6640_v31  ;;  %v6718_v30 = vld [vmem:[#allocation14 + $0xac] ss:$16 sps:$4 sm:$0xff]   ;;  %v6713_v31 = vld [vmem:[#allocation14 + $0xa0] ss:$16 sps:$4 sm:$0xff]  }
 0x616   :  { %3731 = vmatpush1.bf16.msra.mxu0 %v6635_v33  ;;  %3813 = vmatpush1.bf16.msra.mxu1 %v6638_v34  ;;  %v6721_v33 = vld [vmem:[#allocation14 + $0xc4] ss:$16 sps:$4 sm:$0xff]   ;;  %v6724_v34 = vld [vmem:[#allocation14 + $0xcc] ss:$16 sps:$4 sm:$0xff]  }
 0x617   :  { %3732 = vmatprep.subr.bf16.mxu0 %v6643_v36  ;;  %3814 = vmatprep.subr.bf16.mxu1 %v6646_v37  ;;  %v6719_v36 = vld [vmem:[#allocation14 + $0xc0] ss:$16 sps:$4 sm:$0xff]   ;;  %v6722_v37 = vld [vmem:[#allocation14 + $0xc8] ss:$16 sps:$4 sm:$0xff]  }
 0x61a   :  { %3733 = vmatpush1.bf16.msra.mxu0 %v6641_v24  ;;  %3815 = vmatpush1.bf16.msra.mxu1 %v6644_v39  ;;  %v6730_v24 = vld [vmem:[#allocation14 + $0xec] ss:$16 sps:$4 sm:$0xff]   ;;  %v6725_v39 = vld [vmem:[#allocation14 + $0xe0] ss:$16 sps:$4 sm:$0xff]  }
 0x61b   :  { %3734 = vmatprep.subr.bf16.mxu0 %v6649_v41  ;;  %3816 = vmatprep.subr.bf16.mxu1 %v6652_v42  ;;  %v6728_v41 = vld [vmem:[#allocation14 + $0xe8] ss:$16 sps:$4 sm:$0xff]   ;;  %v6733_v42 = vld [vmem:[#allocation14 + $0x104] ss:$16 sps:$4 sm:$0xff]  }
 0x61e   :  { %3735 = vmatpush1.bf16.msra.mxu0 %v6647_v44  ;;  %3817 = vmatpush1.bf16.msra.mxu1 %v6650_v45  ;;  %v6731_v44 = vld [vmem:[#allocation14 + $0x100] ss:$16 sps:$4 sm:$0xff]   ;;  %v6734_v45 = vld [vmem:[#allocation14 + $0x108] ss:$16 sps:$4 sm:$0xff]  }
 0x61f   :  { %3736 = vmatprep.subr.bf16.mxu0 %v6655_v51  ;;  %3818 = vmatprep.subr.bf16.mxu1 %v6658_v52  ;;  %v6739_v51 = vld [vmem:[#allocation14 + $0x124] ss:$16 sps:$4 sm:$0xff]   ;;  %v6742_v52 = vld [vmem:[#allocation14 + $0x12c] ss:$16 sps:$4 sm:$0xff]  }
 0x622   :  { %3737 = vmatpush1.bf16.msra.mxu0 %v6653_v53  ;;  %3819 = vmatpush1.bf16.msra.mxu1 %v6656_v54  ;;  %v6737_v53 = vld [vmem:[#allocation14 + $0x120] ss:$16 sps:$4 sm:$0xff]   ;;  %v6740_v54 = vld [vmem:[#allocation14 + $0x128] ss:$16 sps:$4 sm:$0xff]  }
 0x623   :  { %3738 = vmatprep.subr.bf16.mxu0 %v6661_v35  ;;  %3820 = vmatprep.subr.bf16.mxu1 %v6664_v56  ;;  %v6745_v35 = vld [vmem:[#allocation14 + $0x144] ss:$16 sps:$4 sm:$0xff]   ;;  %v6748_v56 = vld [vmem:[#allocation14 + $0x14c] ss:$16 sps:$4 sm:$0xff]  }
 0x626   :  { %3739 = vmatpush1.bf16.msra.mxu0 %v6659_v57  ;;  %3821 = vmatpush1.bf16.msra.mxu1 %v6662_v46  ;;  %v6743_v57 = vld [vmem:[#allocation14 + $0x140] ss:$16 sps:$4 sm:$0xff]   ;;  %v6746_v46 = vld [vmem:[#allocation14 + $0x148] ss:$16 sps:$4 sm:$0xff]  }
 0x627   :  { %3740 = vmatprep.subr.bf16.mxu0 %v6667_v40  ;;  %3822 = vmatprep.subr.bf16.mxu1 %v6670_v58  ;;  %v6751_v40 = vld [vmem:[#allocation14 + $0x164] ss:$16 sps:$4 sm:$0xff]   ;;  %v6754_v58 = vld [vmem:[#allocation14 + $0x16c] ss:$16 sps:$4 sm:$0xff]  }
 0x62a   :  { %3741 = vmatpush1.bf16.msra.mxu0 %v6665_v59  ;;  %3823 = vmatpush1.bf16.msra.mxu1 %v6668_v60  ;;  %v6749_v59 = vld [vmem:[#allocation14 + $0x160] ss:$16 sps:$4 sm:$0xff]   ;;  %v6752_v60 = vld [vmem:[#allocation14 + $0x168] ss:$16 sps:$4 sm:$0xff]  }
 0x62b   :  { %3742 = vmatprep.subr.bf16.mxu0 %v6673_v61  ;;  %3824 = vmatprep.subr.bf16.mxu1 %v6676_v62  ;;  %v6757_v61 = vld [vmem:[#allocation14 + $0x184] ss:$16 sps:$4 sm:$0xff]   ;;  %v6760_v62 = vld [vmem:[#allocation14 + $0x18c] ss:$16 sps:$4 sm:$0xff]  }
 0x62e   :  { %3743 = vmatpush1.bf16.msra.mxu0 %v6671_v48  ;;  %3825 = vmatpush1.bf16.msra.mxu1 %v6674_v0  ;;  %v6758_v48 = vld [vmem:[#allocation14 + $0x188] ss:$16 sps:$4 sm:$0xff]   ;;  %v6763_v0 = vld [vmem:[#allocation14 + $0x1a4] ss:$16 sps:$4 sm:$0xff]  }
 0x62f   :  { %3744 = vmatprep.subr.bf16.mxu0 %v6679_v2  ;;  %3826 = vmatprep.subr.bf16.mxu1 %v6682_v55  ;;  %v6761_v2 = vld [vmem:[#allocation14 + $0x1a0] ss:$16 sps:$4 sm:$0xff]   ;;  %v6764_v55 = vld [vmem:[#allocation14 + $0x1a8] ss:$16 sps:$4 sm:$0xff]  }
 0x632   :  { %3745 = vmatpush1.bf16.msra.mxu0 %v6677_v3  ;;  %3827 = vmatpush1.bf16.msra.mxu1 %v6680_v4  ;;  %v6769_v3 = vld [vmem:[#allocation14 + $0x1c4] ss:$16 sps:$4 sm:$0xff]   ;;  %v6772_v4 = vld [vmem:[#allocation14 + $0x1cc] ss:$16 sps:$4 sm:$0xff]  }
 0x633   :  { %4651 = vmatprep.subr.bf16.mxu0 %v6685_v6  ;;  %4733 = vmatprep.subr.bf16.mxu1 %v6688_v7  ;;  %v6770_v6 = vld [vmem:[#allocation14 + $0x1c8] ss:$16 sps:$4 sm:$0xff]   ;;  %v6775_v7 = vld [vmem:[#allocation14 + $0x1e4] ss:$16 sps:$4 sm:$0xff]  }
 0x635   :  { %3747 = vmatmul.mubr.bf16.vlgmr.msra.gmra.mrb[16].mxu0 %v2881_v10  ;;  %3829 = vmatmul.mubr.bf16.vlgmr.msra.gmra.mrb[16].mxu1 %v2881_v10  ;;  %v6776_v10 = vld [vmem:[#allocation14 + $0x1e8] ss:$16 sps:$4 sm:$0xff]  }
 0x636   :  { %4652 = vmatpush1.bf16.msra.mxu0 %v6683_v8  ;;  %4734 = vmatpush1.bf16.msra.mxu1 %v6686_v9  ;;  %v6778_v8 = vld [vmem:[#allocation14 + $0x1ec] ss:$16 sps:$4 sm:$0xff]   ;;  %v6773_v9 = vld [vmem:[#allocation14 + $0x1e0] ss:$16 sps:$4 sm:$0xff]  }
 0x637   :  { %4653 = vmatprep.subr.bf16.mxu0 %v6691_v11  ;;  %4735 = vmatprep.subr.bf16.mxu1 %v6694_v12  ;;  %v6781_v11 = vld [vmem:[#allocation14 + $0x204] ss:$16 sps:$4 sm:$0xff]   ;;  %v6784_v12 = vld [vmem:[#allocation14 + $0x20c] ss:$16 sps:$4 sm:$0xff]  }
 0x63a   :  { %4654 = vmatpush1.bf16.msra.mxu0 %v6689_v13  ;;  %4736 = vmatpush1.bf16.msra.mxu1 %v6692_v14  ;;  %v7526_v13 = vld [vmem:[%s7577_s12] sm:$0xf] }
 0x63b   :  { %4655 = vmatprep.subr.bf16.mxu0 %v6697_v15  ;;  %4737 = vmatprep.subr.bf16.mxu1 %v6700_v16  ;;  %v3016_v14 = vrot.slane %v7526_v13, %v7452_v47  ;;  %v3020_v15 = vrot.slane %v7526_v13, %v7460_v49  ;;  %v3028_v16 = vrot.slane %v7526_v13, %v7463_v50 }
 0x63e   :  { %4656 = vmatpush1.bf16.msra.mxu0 %v6695_v17  ;;  %4738 = vmatpush1.bf16.msra.mxu1 %v6698_v18 }
 0x63f   :  { %4657 = vmatprep.subr.bf16.mxu0 %v6703_v19  ;;  %4739 = vmatprep.subr.bf16.mxu1 %v6706_v20 }
 0x642   :  { %4658 = vmatpush1.bf16.msra.mxu0 %v6701_v21  ;;  %4740 = vmatpush1.bf16.msra.mxu1 %v6704_v22 }
 0x643   :  { %4659 = vmatprep.subr.bf16.mxu0 %v6709_v23  ;;  %4741 = vmatprep.subr.bf16.mxu1 %v6712_v25 }
 0x646   :  { %4660 = vmatpush1.bf16.msra.mxu0 %v6707_v26  ;;  %4742 = vmatpush1.bf16.msra.mxu1 %v6710_v27 }
 0x647   :  { %4661 = vmatprep.subr.bf16.mxu0 %v6715_v28  ;;  %4743 = vmatprep.subr.bf16.mxu1 %v6718_v30 }
 0x64a   :  { %4662 = vmatpush1.bf16.msra.mxu0 %v6713_v31  ;;  %4744 = vmatpush1.bf16.msra.mxu1 %v6716_v32 }
 0x64b   :  { %4663 = vmatprep.subr.bf16.mxu0 %v6721_v33  ;;  %4745 = vmatprep.subr.bf16.mxu1 %v6724_v34 }
 0x64e   :  { %4664 = vmatpush1.bf16.msra.mxu0 %v6719_v36  ;;  %4746 = vmatpush1.bf16.msra.mxu1 %v6722_v37 }
 0x64f   :  { %4665 = vmatprep.subr.bf16.mxu0 %v6727_v38  ;;  %4747 = vmatprep.subr.bf16.mxu1 %v6730_v24 }
 0x652   :  { %4666 = vmatpush1.bf16.msra.mxu0 %v6725_v39  ;;  %4748 = vmatpush1.bf16.msra.mxu1 %v6728_v41 }
 0x653   :  { %4667 = vmatprep.subr.bf16.mxu0 %v6733_v42  ;;  %4749 = vmatprep.subr.bf16.mxu1 %v6736_v29 }
 0x656   :  { %4668 = vmatpush1.bf16.msra.mxu0 %v6731_v44  ;;  %4750 = vmatpush1.bf16.msra.mxu1 %v6734_v45 }
 0x657   :  { %4669 = vmatprep.subr.bf16.mxu0 %v6739_v51  ;;  %4751 = vmatprep.subr.bf16.mxu1 %v6742_v52  ;;  %v6779_v52 = vld [vmem:[#allocation14 + $0x200] ss:$16 sps:$4 sm:$0xff]  }
 0x65a   :  { %4670 = vmatpush1.bf16.msra.mxu0 %v6737_v53  ;;  %4752 = vmatpush1.bf16.msra.mxu1 %v6740_v54  ;;  %v6782_v53 = vld [vmem:[#allocation14 + $0x208] ss:$16 sps:$4 sm:$0xff]  }
 0x65b   :  { %4671 = vmatprep.subr.bf16.mxu0 %v6745_v35  ;;  %4753 = vmatprep.subr.bf16.mxu1 %v6748_v56  ;;  %v6787_v35 = vld [vmem:[#allocation14 + $0x224] ss:$16 sps:$4 sm:$0xff]   ;;  %v6790_v56 = vld [vmem:[#allocation14 + $0x22c] ss:$16 sps:$4 sm:$0xff]  }
 0x65e   :  { %4672 = vmatpush1.bf16.msra.mxu0 %v6743_v57  ;;  %4754 = vmatpush1.bf16.msra.mxu1 %v6746_v46  ;;  %v6785_v46 = vld [vmem:[#allocation14 + $0x220] ss:$16 sps:$4 sm:$0xff]  }
 0x65f   :  { %4673 = vmatprep.subr.bf16.mxu0 %v6751_v40  ;;  %4755 = vmatprep.subr.bf16.mxu1 %v6754_v58  ;;  %v6788_v40 = vld [vmem:[#allocation14 + $0x228] ss:$16 sps:$4 sm:$0xff]   ;;  %v6793_v58 = vld [vmem:[#allocation14 + $0x244] ss:$16 sps:$4 sm:$0xff]  }
 0x662   :  { %4674 = vmatpush1.bf16.msra.mxu0 %v6749_v59  ;;  %4756 = vmatpush1.bf16.msra.mxu1 %v6752_v60  ;;  %v6796_v59 = vld [vmem:[#allocation14 + $0x24c] ss:$16 sps:$4 sm:$0xff]   ;;  %v6791_v60 = vld [vmem:[#allocation14 + $0x240] ss:$16 sps:$4 sm:$0xff]  }
 0x663   :  { %4675 = vmatprep.subr.bf16.mxu0 %v6757_v61  ;;  %4757 = vmatprep.subr.bf16.mxu1 %v6760_v62  ;;  %v6794_v61 = vld [vmem:[#allocation14 + $0x248] ss:$16 sps:$4 sm:$0xff]   ;;  %v6799_v62 = vld [vmem:[#allocation14 + $0x264] ss:$16 sps:$4 sm:$0xff]  }
 0x666   :  { %4676 = vmatpush1.bf16.msra.mxu0 %v6755_v63  ;;  %4758 = vmatpush1.bf16.msra.mxu1 %v6758_v48  ;;  %v6802_v63 = vld [vmem:[#allocation14 + $0x26c] ss:$16 sps:$4 sm:$0xff]   ;;  %v6797_v48 = vld [vmem:[#allocation14 + $0x260] ss:$16 sps:$4 sm:$0xff]  }
 0x667   :  { %4677 = vmatprep.subr.bf16.mxu0 %v6763_v0  ;;  %4759 = vmatprep.subr.bf16.mxu1 %v6766_v1  ;;  %v6800_v0 = vld [vmem:[#allocation14 + $0x268] ss:$16 sps:$4 sm:$0xff]   ;;  %v6805_v1 = vld [vmem:[#allocation14 + $0x284] ss:$16 sps:$4 sm:$0xff]  }
 0x66a   :  { %4678 = vmatpush1.bf16.msra.mxu0 %v6761_v2  ;;  %4760 = vmatpush1.bf16.msra.mxu1 %v6764_v55  ;;  %v6808_v2 = vld [vmem:[#allocation14 + $0x28c] ss:$16 sps:$4 sm:$0xff]   ;;  %v6803_v55 = vld [vmem:[#allocation14 + $0x280] ss:$16 sps:$4 sm:$0xff]  }
 0x66b   :  { %4679 = vmatprep.subr.bf16.mxu0 %v6769_v3  ;;  %4761 = vmatprep.subr.bf16.mxu1 %v6772_v4  ;;  %v6806_v3 = vld [vmem:[#allocation14 + $0x288] ss:$16 sps:$4 sm:$0xff]   ;;  %v6811_v4 = vld [vmem:[#allocation14 + $0x2a4] ss:$16 sps:$4 sm:$0xff]  }
 0x66e   :  { %4680 = vmatpush1.bf16.msra.mxu0 %v6767_v5  ;;  %4762 = vmatpush1.bf16.msra.mxu1 %v6770_v6  ;;  %v6814_v5 = vld [vmem:[#allocation14 + $0x2ac] ss:$16 sps:$4 sm:$0xff]   ;;  %v6809_v6 = vld [vmem:[#allocation14 + $0x2a0] ss:$16 sps:$4 sm:$0xff]  }
 0x66f   :  { %4681 = vmatprep.subr.bf16.mxu0 %v6775_v7  ;;  %4763 = vmatprep.subr.bf16.mxu1 %v6778_v8  ;;  %v6812_v7 = vld [vmem:[#allocation14 + $0x2a8] ss:$16 sps:$4 sm:$0xff]   ;;  %v6817_v8 = vld [vmem:[#allocation14 + $0x2c4] ss:$16 sps:$4 sm:$0xff]  }
 0x672   :  { %4682 = vmatpush1.bf16.msra.mxu0 %v6773_v9  ;;  %4764 = vmatpush1.bf16.msra.mxu1 %v6776_v10  ;;  %v6820_v9 = vld [vmem:[#allocation14 + $0x2cc] ss:$16 sps:$4 sm:$0xff]   ;;  %v6815_v10 = vld [vmem:[#allocation14 + $0x2c0] ss:$16 sps:$4 sm:$0xff]  }
 0x673   :  { %4692 = vmatprep.subr.bf16.mxu0 %v6781_v11  ;;  %4774 = vmatprep.subr.bf16.mxu1 %v6784_v12  ;;  %v6818_v11 = vld [vmem:[#allocation14 + $0x2c8] ss:$16 sps:$4 sm:$0xff]   ;;  %v6823_v12 = vld [vmem:[#allocation14 + $0x2e4] ss:$16 sps:$4 sm:$0xff]  }
 0x708   :  { %v3748_v17 = vpop.f32.mrb[16].mxu0  ;;  %v7534_v18 = vpop.f32.mrb[16].mxu1 }
 0x709   :  { %v5939_v19 = vadd.f32 %v3748_v17, %v3016_v14  ;;  %v3750_v20 = vpop.f32.mrb[17].mxu0  ;;  %v3832_v21 = vpop.f32.mrb[17].mxu1  ;;  %v6826_v14 = vld [vmem:[#allocation14 + $0x2ec] ss:$16 sps:$4 sm:$0xff]   ;;  %v6824_v17 = vld [vmem:[#allocation14 + $0x2e8] ss:$16 sps:$4 sm:$0xff]  }
 0x70a   :  { %v5940_v22 = vadd.f32 %v3750_v20, %v3020_v15  ;;  %v5942_v23 = vadd.f32 %v3832_v21, %v3028_v16  ;;  %v3752_v25 = vpop.f32.mrb[18].mxu0  ;;  %v3834_v26 = vpop.f32.mrb[18].mxu1  ;;  %v3024_v15 = vrot.slane %v7526_v13, %v7474_v43  ;;  %v6821_v16 = vld [vmem:[#allocation14 + $0x2e0] ss:$16 sps:$4 sm:$0xff]   ;;  %v6832_v20 = vld [vmem:[#allocation14 + $0x30c] ss:$16 sps:$4 sm:$0xff]  }
 0x70b   :  { %v3837_v27 = vpack.c.bf16 %v5939_v19, %v5939_v19  ;;  %v3753_v28 = vpop.f32.mrb[19].mxu0  ;;  %v3835_v30 = vpop.f32.mrb[19].mxu1  ;;  %v6829_v19 = vld [vmem:[#allocation14 + $0x304] ss:$16 sps:$4 sm:$0xff]   ;;  %v6838_v26 = vld [vmem:[#allocation14 + $0x32c] ss:$16 sps:$4 sm:$0xff]  }
 0x70c   :  { %v3838_v31 = vpack.c.bf16 %v5940_v22, %v5940_v22  ;;  %v3840_v32 = vpack.c.bf16 %v5942_v23, %v5942_v23  ;;  %v5941_v21 = vadd.f32 %v7534_v18, %v3024_v15  ;;  %v6827_v22 = vld [vmem:[#allocation14 + $0x300] ss:$16 sps:$4 sm:$0xff]   ;;  %v6830_v23 = vld [vmem:[#allocation14 + $0x308] ss:$16 sps:$4 sm:$0xff]   ;;  %v6835_v25 = vld [vmem:[#allocation14 + $0x324] ss:$16 sps:$4 sm:$0xff]  }
 0x70d   :  { %v3841_v33 = vmul.bf16 1056980736, %v3837_v27  ;;  %v6833_v13 = vld [vmem:[#allocation14 + $0x320] ss:$16 sps:$4 sm:$0xff]   ;;  %v6836_v28 = vld [vmem:[#allocation14 + $0x328] ss:$16 sps:$4 sm:$0xff]  }
 0x70e   :  { %v3842_v34 = vmul.bf16 1056980736, %v3838_v31  ;;  %v3844_v36 = vmul.bf16 1056980736, %v3840_v32  ;;  %v6841_v30 = vld [vmem:[#allocation14 + $0x344] ss:$16 sps:$4 sm:$0xff]  }
 0x70f   :  { %6935 = vtanh.bf16 %v3841_v33  ;;  %v6842_v33 = vld [vmem:[#allocation14 + $0x348] ss:$16 sps:$4 sm:$0xff]   ;;  %v6893_v15 = vld [vmem:[#allocation16 + $0x20] sm:$0xff]  }
 0x710   :  { %6937 = vtanh.bf16 %v3842_v34  ;;  %v6847_v34 = vld [vmem:[#allocation14 + $0x364] ss:$16 sps:$4 sm:$0xff]  }
 0x711   :  { %6939 = vtanh.bf16 %v3844_v36  ;;  %v6850_v36 = vld [vmem:[#allocation14 + $0x36c] ss:$16 sps:$4 sm:$0xff]  }
 0x71a   :  { %v6936_v37 = vpop.eup %6935 }
 0x71b   :  { %v3849_v38 = vadd.bf16 1065369472, %v6936_v37  ;;  %v6938_v24 = vpop.eup %6937  ;;  %v6845_v37 = vld [vmem:[#allocation14 + $0x360] ss:$16 sps:$4 sm:$0xff]  }
 0x71c   :  { %v6940_v39 = vpop.eup %6939  ;;  %v3850_v41 = vadd.bf16 1065369472, %v6938_v24  ;;  %v6853_v24 = vld [vmem:[#allocation14 + $0x384] ss:$16 sps:$4 sm:$0xff]  }
 0x71d   :  { %v3853_v42 = vmul.bf16 1056980736, %v3849_v38  ;;  %v3852_v29 = vadd.bf16 1065369472, %v6940_v39  ;;  %v6848_v38 = vld [vmem:[#allocation14 + $0x368] ss:$16 sps:$4 sm:$0xff]  }
 0x71e   :  { %v3854_v44 = vmul.bf16 1056980736, %v3850_v41  ;;  %v6856_v39 = vld [vmem:[#allocation14 + $0x38c] ss:$16 sps:$4 sm:$0xff]   ;;  %v6851_v41 = vld [vmem:[#allocation14 + $0x380] ss:$16 sps:$4 sm:$0xff]  }
 0x71f   :  { %v3856_v45 = vmul.bf16 1056980736, %v3852_v29  ;;  %v3857_v54 = vmul.bf16 %v3853_v42, %v3837_v27  ;;  %v7539_v27 = vpack.c.bf16 %v5941_v21, %v5941_v21  ;;  %v6854_v42 = vld [vmem:[#allocation14 + $0x388] ss:$16 sps:$4 sm:$0xff]   ;;  %v6859_v29 = vld [vmem:[#allocation14 + $0x3a4] ss:$16 sps:$4 sm:$0xff]  }
 0x720   :  { %v3858_v51 = vmul.bf16 %v3854_v44, %v3838_v31  ;;  %v6844_v31 = vld [vmem:[#allocation14 + $0x34c] ss:$16 sps:$4 sm:$0xff]  }
 0x721   :  { %v3860_v57 = vmul.bf16 %v3856_v45, %v3840_v32  ;;  %v3843_v18 = vmul.bf16 1056980736, %v7539_v27  ;;  %v6839_v32 = vld [vmem:[#allocation14 + $0x340] ss:$16 sps:$4 sm:$0xff]   ;;  %v6862_v44 = vld [vmem:[#allocation14 + $0x3ac] ss:$16 sps:$4 sm:$0xff]  }
 0x722   :  { %4683 = vmatprep.mubr.bf16.mxu0 %v3858_v51  ;;  %4765 = vmatprep.mubr.bf16.mxu1 %v3858_v51  ;;  %v6857_v45 = vld [vmem:[#allocation14 + $0x3a0] ss:$16 sps:$4 sm:$0xff]   ;;  %v6860_v51 = vld [vmem:[#allocation14 + $0x3a8] ss:$16 sps:$4 sm:$0xff]  }
 0x723   :  { %4684 = vmatmul.mubr.bf16.vlgmr.msra.gmra.mrb[20].mxu0 %v3857_v54  ;;  %4766 = vmatmul.mubr.bf16.vlgmr.msra.gmra.mrb[20].mxu1 %v3857_v54  ;;  %6941 = vtanh.bf16 %v3843_v18  ;;  %v6898_v21 = vld [vmem:[#allocation16 + $0xa8] sm:$0xff]  }
 0x724   :  { %4693 = vmatpush1.bf16.msra.mxu0 %v6779_v52  ;;  %4775 = vmatpush1.bf16.msra.mxu1 %v6782_v53  ;;  %v6865_v52 = vld [vmem:[#allocation14 + $0x3c4] ss:$16 sps:$4 sm:$0xff]   ;;  %v6868_v53 = vld [vmem:[#allocation14 + $0x3cc] ss:$16 sps:$4 sm:$0xff]  }
 0x725   :  { %4724 = vmatprep.mubr.bf16.mxu0 %v3860_v57  ;;  %4806 = vmatprep.mubr.bf16.mxu1 %v3860_v57 }
 0x726   :  { %4694 = vmatprep.subr.bf16.mxu0 %v6787_v35  ;;  %4776 = vmatprep.subr.bf16.mxu1 %v6790_v56  ;;  %v6863_v35 = vld [vmem:[#allocation14 + $0x3c0] ss:$16 sps:$4 sm:$0xff]   ;;  %v6866_v56 = vld [vmem:[#allocation14 + $0x3c8] ss:$16 sps:$4 sm:$0xff]  }
 0x728   :  { %4695 = vmatpush1.bf16.msra.mxu0 %v6785_v46  ;;  %4777 = vmatpush1.bf16.msra.mxu1 %v6788_v40  ;;  %v6871_v46 = vld [vmem:[#allocation14 + $0x3e4] ss:$16 sps:$4 sm:$0xff]   ;;  %v6874_v40 = vld [vmem:[#allocation14 + $0x3ec] ss:$16 sps:$4 sm:$0xff]  }
 0x729   :  { %4696 = vmatprep.subr.bf16.mxu0 %v6793_v58  ;;  %4778 = vmatprep.subr.bf16.mxu1 %v6796_v59  ;;  %v6869_v58 = vld [vmem:[#allocation14 + $0x3e0] ss:$16 sps:$4 sm:$0xff]   ;;  %v6872_v59 = vld [vmem:[#allocation14 + $0x3e8] ss:$16 sps:$4 sm:$0xff]  }
 0x72c   :  { %4697 = vmatpush1.bf16.msra.mxu0 %v6791_v60  ;;  %4779 = vmatpush1.bf16.msra.mxu1 %v6794_v61  ;;  %v6875_v61 = vld [vmem:[#allocation16 + $0x40] sm:$0xff]  }
 0x72d   :  { %4698 = vmatprep.subr.bf16.mxu0 %v6799_v62  ;;  %4780 = vmatprep.subr.bf16.mxu1 %v6802_v63  ;;  %v6876_v62 = vld [vmem:[#allocation16 + $0xc0] sm:$0xff]  }
 0x72e   :  { %v6942_v54 = vpop.eup %6941  ;;  %v6877_v63 = vld [vmem:[#allocation16] sm:$0xff]  }
 0x72f   :  { %v3851_v57 = vadd.bf16 1065369472, %v6942_v54 }
 0x730   :  { %4699 = vmatpush1.bf16.msra.mxu0 %v6797_v48  ;;  %4781 = vmatpush1.bf16.msra.mxu1 %v6800_v0  ;;  %v6878_v48 = vld [vmem:[#allocation16 + $0x80] sm:$0xff]  }
 0x731   :  { %4700 = vmatprep.subr.bf16.mxu0 %v6805_v1  ;;  %4782 = vmatprep.subr.bf16.mxu1 %v6808_v2  ;;  %v3855_v60 = vmul.bf16 1056980736, %v3851_v57  ;;  %v6879_v1 = vld [vmem:[#allocation16 + $0x48] sm:$0xff]  }
 0x732   :  { %v6880_v2 = vld [vmem:[#allocation16 + $0xc8] sm:$0xff]  }
 0x733   :  { %v3859_v0 = vmul.bf16 %v3855_v60, %v7539_v27  ;;  %v6903_v27 = vld [vmem:[#allocation16 + $0x78] sm:$0xff]  }
 0x734   :  { %4701 = vmatpush1.bf16.msra.mxu0 %v6803_v55  ;;  %4783 = vmatpush1.bf16.msra.mxu1 %v6806_v3  ;;  %v6881_v55 = vld [vmem:[#allocation16 + $0x8] sm:$0xff]  }
 0x735   :  { %4702 = vmatprep.subr.bf16.mxu0 %v6811_v4  ;;  %4784 = vmatprep.subr.bf16.mxu1 %v6814_v5  ;;  %v6882_v3 = vld [vmem:[#allocation16 + $0x88] sm:$0xff]   ;;  %v6883_v4 = vld [vmem:[#allocation16 + $0x50] sm:$0xff]  }
 0x736   :  { %v6884_v5 = vld [vmem:[#allocation16 + $0xd0] sm:$0xff]  }
 0x738   :  { %4703 = vmatpush1.bf16.msra.mxu0 %v6809_v6  ;;  %4785 = vmatpush1.bf16.msra.mxu1 %v6812_v7  ;;  %v6885_v6 = vld [vmem:[#allocation16 + $0x10] sm:$0xff]  }
 0x739   :  { %4704 = vmatprep.subr.bf16.mxu0 %v6817_v8  ;;  %4786 = vmatprep.subr.bf16.mxu1 %v6820_v9  ;;  %v6886_v7 = vld [vmem:[#allocation16 + $0x90] sm:$0xff]   ;;  %v6887_v8 = vld [vmem:[#allocation16 + $0x58] sm:$0xff]  }
 0x73a   :  { %v6888_v9 = vld [vmem:[#allocation16 + $0xd8] sm:$0xff]  }
 0x73c   :  { %4705 = vmatpush1.bf16.msra.mxu0 %v6815_v10  ;;  %4787 = vmatpush1.bf16.msra.mxu1 %v6818_v11  ;;  %v6889_v10 = vld [vmem:[#allocation16 + $0x18] sm:$0xff]  }
 0x73d   :  { %4706 = vmatprep.subr.bf16.mxu0 %v6823_v12  ;;  %4788 = vmatprep.subr.bf16.mxu1 %v6826_v14  ;;  %v6890_v11 = vld [vmem:[#allocation16 + $0x98] sm:$0xff]   ;;  %v6891_v12 = vld [vmem:[#allocation16 + $0x60] sm:$0xff]  }
 0x73e   :  { %v6892_v14 = vld [vmem:[#allocation16 + $0xe0] sm:$0xff]  }
 0x740   :  { %4707 = vmatpush1.bf16.msra.mxu0 %v6821_v16  ;;  %4789 = vmatpush1.bf16.msra.mxu1 %v6824_v17  ;;  %v6894_v16 = vld [vmem:[#allocation16 + $0xa0] sm:$0xff]   ;;  %v6895_v17 = vld [vmem:[#allocation16 + $0x68] sm:$0xff]  }
 0x741   :  { %4708 = vmatprep.subr.bf16.mxu0 %v6829_v19  ;;  %4790 = vmatprep.subr.bf16.mxu1 %v6832_v20  ;;  %v6896_v19 = vld [vmem:[#allocation16 + $0xe8] sm:$0xff]  }
 0x742   :  { %v6897_v20 = vld [vmem:[#allocation16 + $0x28] sm:$0xff]  }
 0x744   :  { %4709 = vmatpush1.bf16.msra.mxu0 %v6827_v22  ;;  %4791 = vmatpush1.bf16.msra.mxu1 %v6830_v23  ;;  %v6899_v22 = vld [vmem:[#allocation16 + $0x70] sm:$0xff]  }
 0x745   :  { %4710 = vmatprep.subr.bf16.mxu0 %v6835_v25  ;;  %4792 = vmatprep.subr.bf16.mxu1 %v6838_v26  ;;  %v6900_v23 = vld [vmem:[#allocation16 + $0xf0] sm:$0xff]  }
 0x746   :  { %v6901_v25 = vld [vmem:[#allocation16 + $0x30] sm:$0xff]  }
 0x747   :  { %v6902_v26 = vld [vmem:[#allocation16 + $0xb0] sm:$0xff]  }
 0x748   :  { %4711 = vmatpush1.bf16.msra.mxu0 %v6833_v13  ;;  %4793 = vmatpush1.bf16.msra.mxu1 %v6836_v28  ;;  %v6904_v13 = vld [vmem:[#allocation16 + $0xf8] sm:$0xff]  }
 0x749   :  { %4712 = vmatprep.subr.bf16.mxu0 %v6841_v30  ;;  %4794 = vmatprep.subr.bf16.mxu1 %v6844_v31  ;;  %v6905_v28 = vld [vmem:[#allocation16 + $0x38] sm:$0xff]  }
 0x74a   :  { %v6906_v30 = vld [vmem:[#allocation16 + $0xb8] sm:$0xff]  }
 0x74b   :  { %v3989_v31 = vld [vmem:[%s7579_s14] sm:$0xf] }
 0x74c   :  { %4713 = vmatpush1.bf16.msra.mxu0 %v6839_v32  ;;  %4795 = vmatpush1.bf16.msra.mxu1 %v6842_v33  ;;  %v3994_v18 = vrot.slane %v3989_v31, %v7452_v47  ;;  %v4002_v32 = vrot.slane %v3989_v31, %v7474_v43  ;;  %v3998_v33 = vrot.slane %v3989_v31, %v7460_v49 }
 0x74d   :  { %4714 = vmatprep.subr.bf16.mxu0 %v6847_v34  ;;  %4796 = vmatprep.subr.bf16.mxu1 %v6850_v36  ;;  %v4006_v34 = vrot.slane %v3989_v31, %v7463_v50 }
 0x750   :  { %4715 = vmatpush1.bf16.msra.mxu0 %v6845_v37  ;;  %4797 = vmatpush1.bf16.msra.mxu1 %v6848_v38 }
 0x751   :  { %4716 = vmatprep.subr.bf16.mxu0 %v6853_v24  ;;  %4798 = vmatprep.subr.bf16.mxu1 %v6856_v39 }
 0x754   :  { %4717 = vmatpush1.bf16.msra.mxu0 %v6851_v41  ;;  %4799 = vmatpush1.bf16.msra.mxu1 %v6854_v42 }
 0x755   :  { %4718 = vmatprep.subr.bf16.mxu0 %v6859_v29  ;;  %4800 = vmatprep.subr.bf16.mxu1 %v6862_v44 }
 0x758   :  { %4719 = vmatpush1.bf16.msra.mxu0 %v6857_v45  ;;  %4801 = vmatpush1.bf16.msra.mxu1 %v6860_v51 }
 0x759   :  { %4720 = vmatprep.subr.bf16.mxu0 %v6865_v52  ;;  %4802 = vmatprep.subr.bf16.mxu1 %v6868_v53 }
 0x75c   :  { %4721 = vmatpush1.bf16.msra.mxu0 %v6863_v35  ;;  %4803 = vmatpush1.bf16.msra.mxu1 %v6866_v56 }
 0x75d   :  { %4722 = vmatprep.subr.bf16.mxu0 %v6871_v46  ;;  %4804 = vmatprep.subr.bf16.mxu1 %v6874_v40 }
 0x760   :  { %4723 = vmatpush1.bf16.msra.mxu0 %v6869_v58  ;;  %4805 = vmatpush1.bf16.msra.mxu1 %v6872_v59 }
 0x761   :  { %5847 = vmatprep.subr.bf16.mxu0 %v6875_v61  ;;  %5869 = vmatprep.subr.bf16.mxu1 %v6876_v62 }
 0x763   :  { %4725 = vmatmul.mubr.bf16.vlgmr.msra.gmra.mrb[20].mxu0 %v3859_v0  ;;  %4807 = vmatmul.mubr.bf16.vlgmr.msra.gmra.mrb[20].mxu1 %v3859_v0 }
 0x764   :  { %5848 = vmatpush3.bf16.msra.mxu0 %v6877_v63  ;;  %5870 = vmatpush3.bf16.msra.mxu1 %v6878_v48 }
 0x765   :  { %5849 = vmatprep.subr.bf16.mxu0 %v6879_v1  ;;  %5871 = vmatprep.subr.bf16.mxu1 %v6880_v2 }
 0x768   :  { %5850 = vmatpush3.bf16.msra.mxu0 %v6881_v55  ;;  %5872 = vmatpush3.bf16.msra.mxu1 %v6882_v3 }
 0x769   :  { %5851 = vmatprep.subr.bf16.mxu0 %v6883_v4  ;;  %5873 = vmatprep.subr.bf16.mxu1 %v6884_v5 }
 0x76c   :  { %5852 = vmatpush3.bf16.msra.mxu0 %v6885_v6  ;;  %5874 = vmatpush3.bf16.msra.mxu1 %v6886_v7  ;;  %v5796_v7 = vld [vmem:[%s7581_s16] ss:$0 sm:$0xff] }
 0x76d   :  { %5853 = vmatprep.subr.bf16.mxu0 %v6887_v8  ;;  %5875 = vmatprep.subr.bf16.mxu1 %v6888_v9 }
 0x770   :  { %5854 = vmatpush3.bf16.msra.mxu0 %v6889_v10  ;;  %5876 = vmatpush3.bf16.msra.mxu1 %v6890_v11 }
 0x771   :  { %5855 = vmatprep.subr.bf16.mxu0 %v6891_v12  ;;  %5877 = vmatprep.subr.bf16.mxu1 %v6892_v14 }
 0x774   :  { %5856 = vmatpush3.bf16.msra.mxu0 %v6893_v15  ;;  %5878 = vmatpush3.bf16.msra.mxu1 %v6894_v16 }
 0x775   :  { %5857 = vmatprep.subr.bf16.mxu0 %v6895_v17  ;;  %5879 = vmatprep.subr.bf16.mxu1 %v6896_v19 }
 0x778   :  { %5858 = vmatpush3.bf16.msra.mxu0 %v6897_v20  ;;  %5880 = vmatpush3.bf16.msra.mxu1 %v6898_v21 }
 0x779   :  { %5859 = vmatprep.subr.bf16.mxu0 %v6899_v22  ;;  %5881 = vmatprep.subr.bf16.mxu1 %v6900_v23 }
 0x77c   :  { %5860 = vmatpush3.bf16.msra.mxu0 %v6901_v25  ;;  %5882 = vmatpush3.bf16.msra.mxu1 %v6902_v26 }
 0x77d   :  { %5861 = vmatprep.subr.bf16.mxu0 %v6903_v27  ;;  %5883 = vmatprep.subr.bf16.mxu1 %v6904_v13 }
 0x780   :  { %5862 = vmatpush3.bf16.msra.mxu0 %v6905_v28  ;;  %5884 = vmatpush3.bf16.msra.mxu1 %v6906_v30 }
 0x836   :  { %v4726_v36 = vpop.f32.mrb[20].mxu0  ;;  %v4808_v37 = vpop.f32.mrb[20].mxu1 }
 0x837   :  { %v5943_v38 = vadd.f32 %v4726_v36, %v3994_v18  ;;  %v5945_v24 = vadd.f32 %v4808_v37, %v4002_v32  ;;  %v4728_v39 = vpop.f32.mrb[21].mxu0  ;;  %v4810_v41 = vpop.f32.mrb[21].mxu1 }
 0x838   :  { %v5944_v42 = vadd.f32 %v4728_v39, %v3998_v33  ;;  %v5946_v29 = vadd.f32 %v4810_v41, %v4006_v34  ;;  %v4730_v44 = vpop.f32.mrb[22].mxu0  ;;  %v4812_v45 = vpop.f32.mrb[22].mxu1 }
 0x839   :  { %v4815_v51 = vpack.c.bf16 %v5943_v38, %v5943_v38  ;;  %v4817_v52 = vpack.c.bf16 %v5945_v24, %v5945_v24  ;;  %v4731_v53 = vpop.f32.mrb[23].mxu0  ;;  %v4813_v47 = vpop.f32.mrb[23].mxu1 }
 0x83a   :  { %v4816_v54 = vpack.c.bf16 %v5944_v42, %v5944_v42  ;;  %v4818_v43 = vpack.c.bf16 %v5946_v29, %v5946_v29 }
 0x83b   :  { %v4819_v35 = vmul.bf16 1056980736, %v4815_v51  ;;  %v4821_v49 = vmul.bf16 1056980736, %v4817_v52 }
 0x83c   :  { %v4820_v56 = vmul.bf16 1056980736, %v4816_v54  ;;  %v4822_v50 = vmul.bf16 1056980736, %v4818_v43 }
 0x83d   :  { %6943 = vtanh.bf16 %v4819_v35 }
 0x83e   :  { %6945 = vtanh.bf16 %v4821_v49 }
 0x83f   :  { %6947 = vtanh.bf16 %v4820_v56 }
 0x840   :  { %6949 = vtanh.bf16 %v4822_v50 }
 0x848   :  { %v6944_v57 = vpop.eup %6943 }
 0x849   :  { %v6946_v46 = vpop.eup %6945  ;;  %v4827_v40 = vadd.bf16 1065369472, %v6944_v57 }
 0x84a   :  { %v6948_v58 = vpop.eup %6947  ;;  %v4829_v59 = vadd.bf16 1065369472, %v6946_v46 }
 0x84b   :  { %v6950_v60 = vpop.eup %6949  ;;  %v4828_v61 = vadd.bf16 1065369472, %v6948_v58  ;;  %v4831_v62 = vmul.bf16 1056980736, %v4827_v40 }
 0x84c   :  { %v4830_v63 = vadd.bf16 1065369472, %v6950_v60  ;;  %v4833_v48 = vmul.bf16 1056980736, %v4829_v59 }
 0x84d   :  { %v4832_v0 = vmul.bf16 1056980736, %v4828_v61  ;;  %v4835_v55 = vmul.bf16 %v4831_v62, %v4815_v51 }
 0x84e   :  { %v4834_v1 = vmul.bf16 1056980736, %v4830_v63  ;;  %v4837_v4 = vmul.bf16 %v4833_v48, %v4817_v52 }
 0x84f   :  { %v4836_v2 = vmul.bf16 %v4832_v0, %v4816_v54 }
 0x850   :  { %v4838_v3 = vmul.bf16 %v4834_v1, %v4818_v43 }
 0x851   :  { %5134 = vmatprep.mubr.bf16.mxu0 %v4836_v2 }
 0x852   :  { %5174 = vmatprep.mubr.bf16.mxu1 %v4838_v3  ;;  %5135 = vmatmul.mubr.bf16.vlgmr.msra.gmra.mrb[24].mxu0 %v4835_v55 }
 0x853   :  { %5175 = vmatmul.mubr.bf16.vlgmr.msra.gmra.mrb[24].mxu1 %v4837_v4 }
 0x925   :  { %v5863_v5 = vpop.f32.mrb[24].mxu0 }
 0x926   :  { %v5885_v6 = vpop.f32.mrb[24].mxu1  ;;  %v5864_v8 = vpop.f32.mrb[25].mxu0 }
 0x927   :  { %v5865_v9 = vadd.f32 %v5864_v8, %v5863_v5  ;;  %v5886_v10 = vpop.f32.mrb[25].mxu1  ;;  %v5866_v11 = vpop.f32.mrb[26].mxu0 }
 0x928   :  { %v5887_v12 = vadd.f32 %v5886_v10, %v5885_v6  ;;  %v5888_v14 = vpop.f32.mrb[26].mxu1  ;;  %v5867_v15 = vpop.f32.mrb[27].mxu0 }
 0x929   :  { %v5137_v16 = vadd.f32 %v5865_v9, %v5796_v7  ;;  %v5889_v17 = vpop.f32.mrb[27].mxu1 }
 0x92b   :  { %v5177_v19 = vadd.f32 %v5887_v12, %v5137_v16 }
 0x92d   :  { %5182 = vst [vmem:[#allocation17] sm:$0xff] %v5177_v19 }
 0x92e   :  { %7161 = shalt.err (!%p7158_p6)
}
 0x92f   :  { %s7597_s20 = sld [smem:[#allocation26_spill]] }
 0x935   :  { %s7162_s3 = scalar_lea.hbm %s7597_s20, 128 }
 0x936   :  { %p7163_p7 = scmp.ne.s32.totalorder %s7597_s20, %s7162_s3  ;;  %p7166_p8 = scmp.lt.u32.totalorder %s7162_s3, %s7597_s20 }
 0x938   :  { %p7168_p9 = pnand %p7166_p8, %p7163_p7 }
 0x93a   :  { %7171 = shalt.err (!%p7168_p9)
}
 0x93b   :  { %5192 = dma.vmem_to_hbm [thread:$0]  %s5190_s13, 128, %s7597_s20, [#allocation4]  }
 0x93c   :  { %7182 = dma.done.wait [#allocation4], 128  }
 0x93d   :  { %7183 = vsyncadd [#allocation4], 4294967168 }
 0x93e   :  { %5196 = vsyncpa [#allocation3], 1 }
 0x93f   :  { %5197 = vsyncpa [#allocation6], 1 }
 0x940   :  { %5198 = vsyncpa [#allocation9], 1 }
 0x941   :  { %5199 = vsyncpa [#allocation12], 1 }
 0x942   :  { %5200 = vsyncpa [#allocation15], 1 }
 0x943   :  { %5201 = vsyncpa [#allocation4], 1 }

</bundles_post_ra>
